<compile_context>
chip_gen: v7x
topology: tpu7x:2x2x1
jax: 0.10.0
libtpu: 0.0.40
codegen_flags: <defaults>
</compile_context>

<pallas_src>
import jax
import jax.numpy as jnp
from jax.experimental import pallas as pl
from jax.experimental.pallas import tpu as pltpu


# ----------------------------------------------------------------------------
# Fused Stem kernel: 3x (in-VMEM im2col -> single matmul -> bias (+ReLU))
# ----------------------------------------------------------------------------
def _stem_fused_kernel(p1_ref, w1_ref, w2_ref, w3_ref, b1_ref, b2_ref, b3_ref,
                       o_ref, s2_ref, s3_ref, pat1_ref, pat2_ref, pat3_ref):
    # ---- static sizes (derived from ref shapes) ----
    cin = p1_ref.shape[4]                   # (1, 4, H+2, V1, Cin)
    _, hp2, v2, c1 = s2_ref.shape           # (2, Ho1+2, Wo1/2+1, C1)
    ho1, wo1h = hp2 - 2, v2 - 1
    hp3, wp3, c2 = s3_ref.shape             # (Ho2+2, Wo2+2, C2)
    ho2, wo2 = hp3 - 2, wp3 - 2
    ho3, wo3 = ho2, wo2
    m1h = ho1 * wo1h                        # stage-1 rows per output-col parity
    assert o_ref.shape[1] == ho3 * wo3
    assert pat1_ref.shape == (2 * m1h, 9 * cin)

    f32 = jnp.float32
    bf16 = jnp.bfloat16

    # ---- zero ONLY the halo rows/cols of the inter-stage scratch buffers ----
    # Interiors are fully overwritten below and halos are never written.
    s2_ref[0, 0] = jnp.zeros((v2, c1), f32)                 # even half, row 0
    s2_ref[1, 0] = jnp.zeros((v2, c1), f32)                 # odd  half, row 0
    s2_ref[0, :, 0:1, :] = jnp.zeros((hp2, 1, c1), f32)     # even half, col 0
    s3_ref[0] = jnp.zeros((wp3, c2), f32)
    s3_ref[hp3 - 1] = jnp.zeros((wp3, c2), f32)
    s3_ref[:, 0:1, :] = jnp.zeros((hp3, 1, c2), f32)
    s3_ref[:, wp3 - 1:wp3, :] = jnp.zeros((hp3, 1, c2), f32)

    # ================= stage 1: conv3x3, stride 2, BN, ReLU ==================
    # Patch rows ordered (q = output-col parity, y, x2), so the matmul result
    # scatters with contiguous slices into the column-parity-packed s2 buffer.
    # p1[0, rw, h, v, c] = x_pad[h, 4*v + rw, c];  padded col = 4*x2 + (2q+dj).
    for q in range(2):
        for y in range(ho1):
            base = q * m1h + y * wo1h
            for di in range(3):
                row = 2 * y + di
                for dj in range(3):
                    f = 2 * q + dj
                    rw, v0 = f % 4, f // 4
                    k = 3 * di + dj
                    pat1_ref[base:base + wo1h, k * cin:(k + 1) * cin] = \
                        p1_ref[0, rw, row, v0:v0 + wo1h, :]

    y1 = jnp.dot(pat1_ref[...].astype(bf16), w1_ref[...],
                 preferred_element_type=f32)
    y1 = jnp.maximum(y1 + b1_ref[...], 0.0)

    # scatter: output col x = 2*x2 + q sits at padded col x + 1
    #   q=0 -> odd half, slot x2     q=1 -> even half, slot x2+1
    for q in range(2):
        half, c0 = (1, 0) if q == 0 else (0, 1)
        for y in range(ho1):
            r0 = q * m1h + y * wo1h
            s2_ref[half, y + 1, c0:c0 + wo1h, :] = y1[r0:r0 + wo1h, :]

    # ================= stage 2: conv3x3, stride 2, BN, ReLU ==================
    # s2[half, h, u, c] = pad(out1)[h, 2*u + half, c]
    for y2 in range(ho2):
        base = y2 * wo2
        for di in range(3):
            row = 2 * y2 + di
            for dj in range(3):
                half, c0 = (0, 0) if dj == 0 else ((1, 0) if dj == 1 else (0, 1))
                k = 3 * di + dj
                pat2_ref[base:base + wo2, k * c1:(k + 1) * c1] = \
                    s2_ref[half, row, c0:c0 + wo2, :]

    y2v = jnp.dot(pat2_ref[...].astype(bf16), w2_ref[...],
                  preferred_element_type=f32)
    y2v = jnp.maximum(y2v + b2_ref[...], 0.0)
    for r in range(ho2):
        s3_ref[r + 1, 1:wo2 + 1, :] = y2v[r * wo2:(r + 1) * wo2, :]

    # ================= stage 3: conv3x3, stride 1, BN (no ReLU) ==============
    for y3 in range(ho3):
        base = y3 * wo3
        for di in range(3):
            for dj in range(3):
                k = 3 * di + dj
                pat3_ref[base:base + wo3, k * c2:(k + 1) * c2] = \
                    s3_ref[y3 + di, dj:dj + wo3, :]

    y3v = jnp.dot(pat3_ref[...].astype(bf16), w3_ref[...],
                  preferred_element_type=f32)
    o_ref[0] = (y3v + b3_ref[...]).astype(o_ref.dtype)


# ----------------------------------------------------------------------------
# Wrapper: NCHW in / NCHW out, single fused pallas_call
# ----------------------------------------------------------------------------
def stem_forward(x_nchw, params, *, eps=1e-5):
    N, Cin, H, W = x_nchw.shape
    assert H % 4 == 0 and W % 4 == 0, "fused Stem kernel assumes H, W % 4 == 0"
    C1 = params[0][0].shape[0]
    C2 = params[1][0].shape[0]
    C3 = params[2][0].shape[0]
    Ho1, Wo1 = H // 2, W // 2
    Ho2, Wo2 = Ho1 // 2, Wo1 // 2
    Ho3, Wo3 = Ho2, Wo2
    Wo1h = Wo1 // 2
    V1 = W // 4 + 1

    # NCHW -> NHWC (f32 activations; weights go bf16, accumulation is f32).
    x = jnp.transpose(x_nchw, (0, 2, 3, 1)).astype(jnp.float32)

    # conv padding=1; pad width to 4*V1 and expose col%4 as an explicit axis
    # so every in-kernel stride-2 window read is a contiguous slice.
    xp = jnp.pad(x, ((0, 0), (1, 1), (1, 4 * V1 - W - 1), (0, 0)))
    p1 = xp.reshape(N, H + 2, V1, 4, Cin).transpose(0, 3, 1, 2, 4)

    def fold(w, b, g, beta, mean, var):
        cout, cin_ = w.shape[0], w.shape[1]
        scale = g / jnp.sqrt(var + eps)
        # torch (Cout, Cin, 3, 3) -> (9*Cin, Cout); row = (3*di+dj)*Cin + c,
        # matching the in-kernel patch column layout; BN scale folded in.
        wm = jnp.transpose(w, (2, 3, 1, 0)).reshape(9 * cin_, cout)
        wm = (wm * scale[None, :]).astype(jnp.bfloat16)
        bias = ((b - mean) * scale + beta).astype(jnp.float32).reshape(1, cout)
        return wm, bias

    w1m, b1f = fold(*params[0])
    w2m, b2f = fold(*params[1])
    w3m, b3f = fold(*params[2])

    out = pl.pallas_call(
        _stem_fused_kernel,
        out_shape=jax.ShapeDtypeStruct((N, Ho3 * Wo3, C3), jnp.float32),
        grid_spec=pltpu.PrefetchScalarGridSpec(
            num_scalar_prefetch=0,
            grid=(N,),
            in_specs=[
                pl.BlockSpec((1, 4, H + 2, V1, Cin),
                             lambda n: (n, 0, 0, 0, 0)),
                pl.BlockSpec((9 * Cin, C1), lambda n: (0, 0)),
                pl.BlockSpec((9 * C1, C2), lambda n: (0, 0)),
                pl.BlockSpec((9 * C2, C3), lambda n: (0, 0)),
                pl.BlockSpec((1, C1), lambda n: (0, 0)),
                pl.BlockSpec((1, C2), lambda n: (0, 0)),
                pl.BlockSpec((1, C3), lambda n: (0, 0)),
            ],
            out_specs=pl.BlockSpec((1, Ho3 * Wo3, C3), lambda n: (n, 0, 0)),
            scratch_shapes=[
                # column-parity packed, zero-padded stage-1 output (f32)
                pltpu.VMEM((2, Ho1 + 2, Wo1h + 1, C1), jnp.float32),
                # zero-padded stage-2 output (f32)
                pltpu.VMEM((Ho2 + 2, Wo2 + 2, C2), jnp.float32),
                # per-stage im2col patch matrices
                pltpu.VMEM((2 * Ho1 * Wo1h, 9 * Cin), jnp.float32),
                pltpu.VMEM((Ho2 * Wo2, 9 * C1), jnp.float32),
                pltpu.VMEM((Ho3 * Wo3, 9 * C2), jnp.float32),
            ],
        ),
        compiler_params=pltpu.CompilerParams(
            dimension_semantics=("parallel",)),
    )(p1, w1m, w2m, w3m, b1f, b2f, b3f)

    out = out.reshape(N, Ho3, Wo3, C3)
    return jnp.transpose(out, (0, 3, 1, 2))                    # NHWC -> NCHW


# ----------------------------------------------------------------------------
# Pure-JAX reference (lax.conv, f32) for a correctness check
# ----------------------------------------------------------------------------
def _ref_stage(x_nhwc, w, b, gamma, beta, mean, var, *, stride, relu,
               eps=1e-5):
    y = jax.lax.conv_general_dilated(
        x_nhwc, jnp.transpose(w, (2, 3, 1, 0)),
        window_strides=(stride, stride), padding=((1, 1), (1, 1)),
        dimension_numbers=("NHWC", "HWIO", "NHWC"))
    y = y + b
    y = (y - mean) / jnp.sqrt(var + eps) * gamma + beta
    if relu:
        y = jnp.maximum(y, 0.0)
    return y


def stem_reference(x_nchw, params):
    x = jnp.transpose(x_nchw, (0, 2, 3, 1))
    x = _ref_stage(x, *params[0], stride=2, relu=True)
    x = _ref_stage(x, *params[1], stride=2, relu=True)
    x = _ref_stage(x, *params[2], stride=1, relu=False)
    return jnp.transpose(x, (0, 3, 1, 2))


# ----------------------------------------------------------------------------
# Deterministic parameter construction
# ----------------------------------------------------------------------------
def make_stage_params(key, cin, cout, k=3):
    kw_, kb, kg, kbeta, km, kv = jax.random.split(key, 6)
    fan_in = cin * k * k
    w = jax.random.normal(kw_, (cout, cin, k, k), jnp.float32) / jnp.sqrt(fan_in)
    b = 0.01 * jax.random.normal(kb, (cout,), jnp.float32)
    gamma = 1.0 + 0.1 * jax.random.normal(kg, (cout,), jnp.float32)
    beta = 0.05 * jax.random.normal(kbeta, (cout,), jnp.float32)
    mean = 0.02 * jax.random.normal(km, (cout,), jnp.float32)
    var = 1.0 + 0.1 * jax.random.uniform(kv, (cout,), jnp.float32)
    return (w, b, gamma, beta, mean, var)


if __name__ == "__main__":
    # Small shapes consistent with the module: Stem(in_dim=4, out_dim=32)
    N, Cin, H, W = 2, 4, 16, 16
    Cout = 32

    root = jax.random.PRNGKey(0)
    kx, k1, k2, k3 = jax.random.split(root, 4)

    x = jax.random.normal(kx, (N, Cin, H, W), jnp.float32)  # NCHW input
    params = [
        make_stage_params(k1, Cin, Cout // 2),       # conv1: stride 2
        make_stage_params(k2, Cout // 2, Cout),      # conv2: stride 2
        make_stage_params(k3, Cout, Cout),           # conv3: stride 1
    ]

    fwd = jax.jit(stem_forward)
    out = jax.block_until_ready(fwd(x, params))

    ref = jax.block_until_ready(stem_reference(x, params))
    assert out.shape == (N, Cout, H // 4, W // 4), out.shape
    # Tolerance loosened vs. the f32 reference because matmul operands are
    # bf16 (weights + patch operands); inter-stage activations stay f32.
    max_err = float(jnp.max(jnp.abs(out - ref)))
    assert jnp.allclose(out, ref, rtol=5e-2, atol=1e-1), max_err

    print("KERNEL_OK")
</pallas_src>

<mosaic_0001>
module attributes {stable_mosaic.version = 11 : i64} {
  func.func @_stem_fused_kernel(%arg0: i32, %arg1: memref<1x4x18x5x4xf32, #tpu.memory_space<vmem>>, %arg2: memref<36x16xbf16, #tpu.memory_space<vmem>>, %arg3: memref<144x32xbf16, #tpu.memory_space<vmem>>, %arg4: memref<288x32xbf16, #tpu.memory_space<vmem>>, %arg5: memref<1x16xf32, #tpu.memory_space<vmem>>, %arg6: memref<1x32xf32, #tpu.memory_space<vmem>>, %arg7: memref<1x32xf32, #tpu.memory_space<vmem>>, %arg8: memref<1x16x32xf32, #tpu.memory_space<vmem>>, %arg9: memref<2x10x5x16xf32, #tpu.memory_space<vmem>>, %arg10: memref<6x6x32xf32, #tpu.memory_space<vmem>>, %arg11: memref<64x36xf32, #tpu.memory_space<vmem>>, %arg12: memref<16x144xf32, #tpu.memory_space<vmem>>, %arg13: memref<16x288xf32, #tpu.memory_space<vmem>>) attributes {dimension_semantics = [#tpu.dimension_semantics<parallel>], iteration_bounds = array<i64: 2>, scalar_prefetch = 0 : i64, scratch_operands = 5 : i64, tpu.core_type = #tpu.core_type<tc>, window_params = [{transform_indices = @transform_0, window_bounds = array<i64: 1, 4, 18, 5, 4>}, {pipeline_mode = #tpu.pipeline_mode<synchronous>, transform_indices = @transform_1, window_bounds = array<i64: 36, 16>}, {pipeline_mode = #tpu.pipeline_mode<synchronous>, transform_indices = @transform_2, window_bounds = array<i64: 144, 32>}, {pipeline_mode = #tpu.pipeline_mode<synchronous>, transform_indices = @transform_3, window_bounds = array<i64: 288, 32>}, {pipeline_mode = #tpu.pipeline_mode<synchronous>, transform_indices = @transform_4, window_bounds = array<i64: 1, 16>}, {pipeline_mode = #tpu.pipeline_mode<synchronous>, transform_indices = @transform_5, window_bounds = array<i64: 1, 32>}, {pipeline_mode = #tpu.pipeline_mode<synchronous>, transform_indices = @transform_6, window_bounds = array<i64: 1, 32>}, {transform_indices = @transform_7, window_bounds = array<i64: 1, 16, 32>}]} {
    %cst = arith.constant 0.000000e+00 : f32
    %0 = vector.broadcast %cst : f32 to vector<5x16xf32>
    %c0 = arith.constant 0 : index
    %c0_0 = arith.constant 0 : index
    %c0_1 = arith.constant 0 : index
    %c0_2 = arith.constant 0 : index
    %1 = vector.load %arg9[%c0, %c0_0, %c0_1, %c0_2] : memref<2x10x5x16xf32, #tpu.memory_space<vmem>>, vector<1x1x5x16xf32>
    %2 = vector.shape_cast %1 : vector<1x1x5x16xf32> to vector<5x16xf32>
    %3 = vector.shape_cast %0 : vector<5x16xf32> to vector<1x1x5x16xf32>
    tpu.vector_store %arg9[%c0, %c0_0, %c0_1, %c0_2], %3 {strides = array<i32>} : memref<2x10x5x16xf32, #tpu.memory_space<vmem>>, vector<1x1x5x16xf32>,
    %cst_3 = arith.constant 0.000000e+00 : f32
    %4 = vector.broadcast %cst_3 : f32 to vector<5x16xf32>
    %c1 = arith.constant 1 : index
    %c0_4 = arith.constant 0 : index
    %c0_5 = arith.constant 0 : index
    %c0_6 = arith.constant 0 : index
    %5 = vector.load %arg9[%c1, %c0_4, %c0_5, %c0_6] : memref<2x10x5x16xf32, #tpu.memory_space<vmem>>, vector<1x1x5x16xf32>
    %6 = vector.shape_cast %5 : vector<1x1x5x16xf32> to vector<5x16xf32>
    %7 = vector.shape_cast %4 : vector<5x16xf32> to vector<1x1x5x16xf32>
    tpu.vector_store %arg9[%c1, %c0_4, %c0_5, %c0_6], %7 {strides = array<i32>} : memref<2x10x5x16xf32, #tpu.memory_space<vmem>>, vector<1x1x5x16xf32>,
    %cst_7 = arith.constant 0.000000e+00 : f32
    %8 = vector.broadcast %cst_7 : f32 to vector<10x1x16xf32>
    %c0_8 = arith.constant 0 : index
    %c0_9 = arith.constant 0 : index
    %c0_10 = arith.constant 0 : index
    %c0_11 = arith.constant 0 : index
    %9 = vector.load %arg9[%c0_8, %c0_9, %c0_10, %c0_11] : memref<2x10x5x16xf32, #tpu.memory_space<vmem>>, vector<1x10x1x16xf32>
    %10 = vector.shape_cast %9 : vector<1x10x1x16xf32> to vector<10x1x16xf32>
    %11 = vector.shape_cast %8 : vector<10x1x16xf32> to vector<1x10x1x16xf32>
    tpu.vector_store %arg9[%c0_8, %c0_9, %c0_10, %c0_11], %11 {strides = array<i32>} : memref<2x10x5x16xf32, #tpu.memory_space<vmem>>, vector<1x10x1x16xf32>,
    %cst_12 = arith.constant 0.000000e+00 : f32
    %12 = vector.broadcast %cst_12 : f32 to vector<6x32xf32>
    %c0_13 = arith.constant 0 : index
    %c0_14 = arith.constant 0 : index
    %c0_15 = arith.constant 0 : index
    %13 = vector.load %arg10[%c0_13, %c0_14, %c0_15] : memref<6x6x32xf32, #tpu.memory_space<vmem>>, vector<1x6x32xf32>
    %14 = vector.shape_cast %13 : vector<1x6x32xf32> to vector<6x32xf32>
    %15 = vector.shape_cast %12 : vector<6x32xf32> to vector<1x6x32xf32>
    tpu.vector_store %arg10[%c0_13, %c0_14, %c0_15], %15 {strides = array<i32>} : memref<6x6x32xf32, #tpu.memory_space<vmem>>, vector<1x6x32xf32>,
    %cst_16 = arith.constant 0.000000e+00 : f32
    %16 = vector.broadcast %cst_16 : f32 to vector<6x32xf32>
    %c5 = arith.constant 5 : index
    %c0_17 = arith.constant 0 : index
    %c0_18 = arith.constant 0 : index
    %17 = vector.load %arg10[%c5, %c0_17, %c0_18] : memref<6x6x32xf32, #tpu.memory_space<vmem>>, vector<1x6x32xf32>
    %18 = vector.shape_cast %17 : vector<1x6x32xf32> to vector<6x32xf32>
    %19 = vector.shape_cast %16 : vector<6x32xf32> to vector<1x6x32xf32>
    tpu.vector_store %arg10[%c5, %c0_17, %c0_18], %19 {strides = array<i32>} : memref<6x6x32xf32, #tpu.memory_space<vmem>>, vector<1x6x32xf32>,
    %cst_19 = arith.constant 0.000000e+00 : f32
    %20 = vector.broadcast %cst_19 : f32 to vector<6x1x32xf32>
    %c0_20 = arith.constant 0 : index
    %c0_21 = arith.constant 0 : index
    %c0_22 = arith.constant 0 : index
    %21 = vector.load %arg10[%c0_20, %c0_21, %c0_22] : memref<6x6x32xf32, #tpu.memory_space<vmem>>, vector<6x1x32xf32>
    tpu.vector_store %arg10[%c0_20, %c0_21, %c0_22], %20 {strides = array<i32>} : memref<6x6x32xf32, #tpu.memory_space<vmem>>, vector<6x1x32xf32>,
    %cst_23 = arith.constant 0.000000e+00 : f32
    %22 = vector.broadcast %cst_23 : f32 to vector<6x1x32xf32>
    %c0_24 = arith.constant 0 : index
    %c5_25 = arith.constant 5 : index
    %c0_26 = arith.constant 0 : index
    %23 = vector.load %arg10[%c0_24, %c5_25, %c0_26] : memref<6x6x32xf32, #tpu.memory_space<vmem>>, vector<6x1x32xf32>
    tpu.vector_store %arg10[%c0_24, %c5_25, %c0_26], %22 {strides = array<i32>} : memref<6x6x32xf32, #tpu.memory_space<vmem>>, vector<6x1x32xf32>,
    %c0_27 = arith.constant 0 : index
    %c0_28 = arith.constant 0 : index
    %c0_29 = arith.constant 0 : index
    %c0_30 = arith.constant 0 : index
    %c0_31 = arith.constant 0 : index
    %24 = vector.load %arg1[%c0_27, %c0_28, %c0_29, %c0_30, %c0_31] : memref<1x4x18x5x4xf32, #tpu.memory_space<vmem>>, vector<1x1x1x4x4xf32>
    %25 = vector.shape_cast %24 : vector<1x1x1x4x4xf32> to vector<4x4xf32>
    %c0_32 = arith.constant 0 : index
    %c0_33 = arith.constant 0 : index
    %26 = vector.load %arg11[%c0_32, %c0_33] : memref<64x36xf32, #tpu.memory_space<vmem>>, vector<4x4xf32>
    tpu.vector_store %arg11[%c0_32, %c0_33], %25 {strides = array<i32>} : memref<64x36xf32, #tpu.memory_space<vmem>>, vector<4x4xf32>,
    %c0_34 = arith.constant 0 : index
    %c1_35 = arith.constant 1 : index
    %c0_36 = arith.constant 0 : index
    %c0_37 = arith.constant 0 : index
    %c0_38 = arith.constant 0 : index
    %27 = vector.load %arg1[%c0_34, %c1_35, %c0_36, %c0_37, %c0_38] : memref<1x4x18x5x4xf32, #tpu.memory_space<vmem>>, vector<1x1x1x4x4xf32>
    %28 = vector.shape_cast %27 : vector<1x1x1x4x4xf32> to vector<4x4xf32>
    %c0_39 = arith.constant 0 : index
    %c4 = arith.constant 4 : index
    %29 = vector.load %arg11[%c0_39, %c4] : memref<64x36xf32, #tpu.memory_space<vmem>>, vector<4x4xf32>
    tpu.vector_store %arg11[%c0_39, %c4], %28 {strides = array<i32>} : memref<64x36xf32, #tpu.memory_space<vmem>>, vector<4x4xf32>,
    %c0_40 = arith.constant 0 : index
    %c2 = arith.constant 2 : index
    %c0_41 = arith.constant 0 : index
    %c0_42 = arith.constant 0 : index
    %c0_43 = arith.constant 0 : index
    %30 = vector.load %arg1[%c0_40, %c2, %c0_41, %c0_42, %c0_43] : memref<1x4x18x5x4xf32, #tpu.memory_space<vmem>>, vector<1x1x1x4x4xf32>
    %31 = vector.shape_cast %30 : vector<1x1x1x4x4xf32> to vector<4x4xf32>
    %c0_44 = arith.constant 0 : index
    %c8 = arith.constant 8 : index
    %32 = vector.load %arg11[%c0_44, %c8] : memref<64x36xf32, #tpu.memory_space<vmem>>, vector<4x4xf32>
    tpu.vector_store %arg11[%c0_44, %c8], %31 {strides = array<i32>} : memref<64x36xf32, #tpu.memory_space<vmem>>, vector<4x4xf32>,
    %c0_45 = arith.constant 0 : index
    %c0_46 = arith.constant 0 : index
    %c1_47 = arith.constant 1 : index
    %c0_48 = arith.constant 0 : index
    %c0_49 = arith.constant 0 : index
    %33 = vector.load %arg1[%c0_45, %c0_46, %c1_47, %c0_48, %c0_49] : memref<1x4x18x5x4xf32, #tpu.memory_space<vmem>>, vector<1x1x1x4x4xf32>
    %34 = vector.shape_cast %33 : vector<1x1x1x4x4xf32> to vector<4x4xf32>
    %c0_50 = arith.constant 0 : index
    %c12 = arith.constant 12 : index
    %35 = vector.load %arg11[%c0_50, %c12] : memref<64x36xf32, #tpu.memory_space<vmem>>, vector<4x4xf32>
    tpu.vector_store %arg11[%c0_50, %c12], %34 {strides = array<i32>} : memref<64x36xf32, #tpu.memory_space<vmem>>, vector<4x4xf32>,
    %c0_51 = arith.constant 0 : index
    %c1_52 = arith.constant 1 : index
    %c1_53 = arith.constant 1 : index
    %c0_54 = arith.constant 0 : index
    %c0_55 = arith.constant 0 : index
    %36 = vector.load %arg1[%c0_51, %c1_52, %c1_53, %c0_54, %c0_55] : memref<1x4x18x5x4xf32, #tpu.memory_space<vmem>>, vector<1x1x1x4x4xf32>
    %37 = vector.shape_cast %36 : vector<1x1x1x4x4xf32> to vector<4x4xf32>
    %c0_56 = arith.constant 0 : index
    %c16 = arith.constant 16 : index
    %38 = vector.load %arg11[%c0_56, %c16] : memref<64x36xf32, #tpu.memory_space<vmem>>, vector<4x4xf32>
    tpu.vector_store %arg11[%c0_56, %c16], %37 {strides = array<i32>} : memref<64x36xf32, #tpu.memory_space<vmem>>, vector<4x4xf32>,
    %c0_57 = arith.constant 0 : index
    %c2_58 = arith.constant 2 : index
    %c1_59 = arith.constant 1 : index
    %c0_60 = arith.constant 0 : index
    %c0_61 = arith.constant 0 : index
    %39 = vector.load %arg1[%c0_57, %c2_58, %c1_59, %c0_60, %c0_61] : memref<1x4x18x5x4xf32, #tpu.memory_space<vmem>>, vector<1x1x1x4x4xf32>
    %40 = vector.shape_cast %39 : vector<1x1x1x4x4xf32> to vector<4x4xf32>
    %c0_62 = arith.constant 0 : index
    %c20 = arith.constant 20 : index
    %41 = vector.load %arg11[%c0_62, %c20] : memref<64x36xf32, #tpu.memory_space<vmem>>, vector<4x4xf32>
    tpu.vector_store %arg11[%c0_62, %c20], %40 {strides = array<i32>} : memref<64x36xf32, #tpu.memory_space<vmem>>, vector<4x4xf32>,
    %c0_63 = arith.constant 0 : index
    %c0_64 = arith.constant 0 : index
    %c2_65 = arith.constant 2 : index
    %c0_66 = arith.constant 0 : index
    %c0_67 = arith.constant 0 : index
    %42 = vector.load %arg1[%c0_63, %c0_64, %c2_65, %c0_66, %c0_67] : memref<1x4x18x5x4xf32, #tpu.memory_space<vmem>>, vector<1x1x1x4x4xf32>
    %43 = vector.shape_cast %42 : vector<1x1x1x4x4xf32> to vector<4x4xf32>
    %c0_68 = arith.constant 0 : index
    %c24 = arith.constant 24 : index
    %44 = vector.load %arg11[%c0_68, %c24] : memref<64x36xf32, #tpu.memory_space<vmem>>, vector<4x4xf32>
    tpu.vector_store %arg11[%c0_68, %c24], %43 {strides = array<i32>} : memref<64x36xf32, #tpu.memory_space<vmem>>, vector<4x4xf32>,
    %c0_69 = arith.constant 0 : index
    %c1_70 = arith.constant 1 : index
    %c2_71 = arith.constant 2 : index
    %c0_72 = arith.constant 0 : index
    %c0_73 = arith.constant 0 : index
    %45 = vector.load %arg1[%c0_69, %c1_70, %c2_71, %c0_72, %c0_73] : memref<1x4x18x5x4xf32, #tpu.memory_space<vmem>>, vector<1x1x1x4x4xf32>
    %46 = vector.shape_cast %45 : vector<1x1x1x4x4xf32> to vector<4x4xf32>
    %c0_74 = arith.constant 0 : index
    %c28 = arith.constant 28 : index
    %47 = vector.load %arg11[%c0_74, %c28] : memref<64x36xf32, #tpu.memory_space<vmem>>, vector<4x4xf32>
    tpu.vector_store %arg11[%c0_74, %c28], %46 {strides = array<i32>} : memref<64x36xf32, #tpu.memory_space<vmem>>, vector<4x4xf32>,
    %c0_75 = arith.constant 0 : index
    %c2_76 = arith.constant 2 : index
    %c2_77 = arith.constant 2 : index
    %c0_78 = arith.constant 0 : index
    %c0_79 = arith.constant 0 : index
    %48 = vector.load %arg1[%c0_75, %c2_76, %c2_77, %c0_78, %c0_79] : memref<1x4x18x5x4xf32, #tpu.memory_space<vmem>>, vector<1x1x1x4x4xf32>
    %49 = vector.shape_cast %48 : vector<1x1x1x4x4xf32> to vector<4x4xf32>
    %c0_80 = arith.constant 0 : index
    %c32 = arith.constant 32 : index
    %50 = vector.load %arg11[%c0_80, %c32] : memref<64x36xf32, #tpu.memory_space<vmem>>, vector<4x4xf32>
    tpu.vector_store %arg11[%c0_80, %c32], %49 {strides = array<i32>} : memref<64x36xf32, #tpu.memory_space<vmem>>, vector<4x4xf32>,
    %c0_81 = arith.constant 0 : index
    %c0_82 = arith.constant 0 : index
    %c2_83 = arith.constant 2 : index
    %c0_84 = arith.constant 0 : index
    %c0_85 = arith.constant 0 : index
    %51 = vector.load %arg1[%c0_81, %c0_82, %c2_83, %c0_84, %c0_85] : memref<1x4x18x5x4xf32, #tpu.memory_space<vmem>>, vector<1x1x1x4x4xf32>
    %52 = vector.shape_cast %51 : vector<1x1x1x4x4xf32> to vector<4x4xf32>
    %c4_86 = arith.constant 4 : index
    %c0_87 = arith.constant 0 : index
    %53 = vector.load %arg11[%c4_86, %c0_87] : memref<64x36xf32, #tpu.memory_space<vmem>>, vector<4x4xf32>
    tpu.vector_store %arg11[%c4_86, %c0_87], %52 {strides = array<i32>} : memref<64x36xf32, #tpu.memory_space<vmem>>, vector<4x4xf32>,
    %c0_88 = arith.constant 0 : index
    %c1_89 = arith.constant 1 : index
    %c2_90 = arith.constant 2 : index
    %c0_91 = arith.constant 0 : index
    %c0_92 = arith.constant 0 : index
    %54 = vector.load %arg1[%c0_88, %c1_89, %c2_90, %c0_91, %c0_92] : memref<1x4x18x5x4xf32, #tpu.memory_space<vmem>>, vector<1x1x1x4x4xf32>
    %55 = vector.shape_cast %54 : vector<1x1x1x4x4xf32> to vector<4x4xf32>
    %c4_93 = arith.constant 4 : index
    %c4_94 = arith.constant 4 : index
    %56 = vector.load %arg11[%c4_93, %c4_94] : memref<64x36xf32, #tpu.memory_space<vmem>>, vector<4x4xf32>
    tpu.vector_store %arg11[%c4_93, %c4_94], %55 {strides = array<i32>} : memref<64x36xf32, #tpu.memory_space<vmem>>, vector<4x4xf32>,
    %c0_95 = arith.constant 0 : index
    %c2_96 = arith.constant 2 : index
    %c2_97 = arith.constant 2 : index
    %c0_98 = arith.constant 0 : index
    %c0_99 = arith.constant 0 : index
    %57 = vector.load %arg1[%c0_95, %c2_96, %c2_97, %c0_98, %c0_99] : memref<1x4x18x5x4xf32, #tpu.memory_space<vmem>>, vector<1x1x1x4x4xf32>
    %58 = vector.shape_cast %57 : vector<1x1x1x4x4xf32> to vector<4x4xf32>
    %c4_100 = arith.constant 4 : index
    %c8_101 = arith.constant 8 : index
    %59 = vector.load %arg11[%c4_100, %c8_101] : memref<64x36xf32, #tpu.memory_space<vmem>>, vector<4x4xf32>
    tpu.vector_store %arg11[%c4_100, %c8_101], %58 {strides = array<i32>} : memref<64x36xf32, #tpu.memory_space<vmem>>, vector<4x4xf32>,
    %c0_102 = arith.constant 0 : index
    %c0_103 = arith.constant 0 : index
    %c3 = arith.constant 3 : index
    %c0_104 = arith.constant 0 : index
    %c0_105 = arith.constant 0 : index
    %60 = vector.load %arg1[%c0_102, %c0_103, %c3, %c0_104, %c0_105] : memref<1x4x18x5x4xf32, #tpu.memory_space<vmem>>, vector<1x1x1x4x4xf32>
    %61 = vector.shape_cast %60 : vector<1x1x1x4x4xf32> to vector<4x4xf32>
    %c4_106 = arith.constant 4 : index
    %c12_107 = arith.constant 12 : index
    %62 = vector.load %arg11[%c4_106, %c12_107] : memref<64x36xf32, #tpu.memory_space<vmem>>, vector<4x4xf32>
    tpu.vector_store %arg11[%c4_106, %c12_107], %61 {strides = array<i32>} : memref<64x36xf32, #tpu.memory_space<vmem>>, vector<4x4xf32>,
    %c0_108 = arith.constant 0 : index
    %c1_109 = arith.constant 1 : index
    %c3_110 = arith.constant 3 : index
    %c0_111 = arith.constant 0 : index
    %c0_112 = arith.constant 0 : index
    %63 = vector.load %arg1[%c0_108, %c1_109, %c3_110, %c0_111, %c0_112] : memref<1x4x18x5x4xf32, #tpu.memory_space<vmem>>, vector<1x1x1x4x4xf32>
    %64 = vector.shape_cast %63 : vector<1x1x1x4x4xf32> to vector<4x4xf32>
    %c4_113 = arith.constant 4 : index
    %c16_114 = arith.constant 16 : index
    %65 = vector.load %arg11[%c4_113, %c16_114] : memref<64x36xf32, #tpu.memory_space<vmem>>, vector<4x4xf32>
    tpu.vector_store %arg11[%c4_113, %c16_114], %64 {strides = array<i32>} : memref<64x36xf32, #tpu.memory_space<vmem>>, vector<4x4xf32>,
    %c0_115 = arith.constant 0 : index
    %c2_116 = arith.constant 2 : index
    %c3_117 = arith.constant 3 : index
    %c0_118 = arith.constant 0 : index
    %c0_119 = arith.constant 0 : index
    %66 = vector.load %arg1[%c0_115, %c2_116, %c3_117, %c0_118, %c0_119] : memref<1x4x18x5x4xf32, #tpu.memory_space<vmem>>, vector<1x1x1x4x4xf32>
    %67 = vector.shape_cast %66 : vector<1x1x1x4x4xf32> to vector<4x4xf32>
    %c4_120 = arith.constant 4 : index
    %c20_121 = arith.constant 20 : index
    %68 = vector.load %arg11[%c4_120, %c20_121] : memref<64x36xf32, #tpu.memory_space<vmem>>, vector<4x4xf32>
    tpu.vector_store %arg11[%c4_120, %c20_121], %67 {strides = array<i32>} : memref<64x36xf32, #tpu.memory_space<vmem>>, vector<4x4xf32>,
    %c0_122 = arith.constant 0 : index
    %c0_123 = arith.constant 0 : index
    %c4_124 = arith.constant 4 : index
    %c0_125 = arith.constant 0 : index
    %c0_126 = arith.constant 0 : index
    %69 = vector.load %arg1[%c0_122, %c0_123, %c4_124, %c0_125, %c0_126] : memref<1x4x18x5x4xf32, #tpu.memory_space<vmem>>, vector<1x1x1x4x4xf32>
    %70 = vector.shape_cast %69 : vector<1x1x1x4x4xf32> to vector<4x4xf32>
    %c4_127 = arith.constant 4 : index
    %c24_128 = arith.constant 24 : index
    %71 = vector.load %arg11[%c4_127, %c24_128] : memref<64x36xf32, #tpu.memory_space<vmem>>, vector<4x4xf32>
    tpu.vector_store %arg11[%c4_127, %c24_128], %70 {strides = array<i32>} : memref<64x36xf32, #tpu.memory_space<vmem>>, vector<4x4xf32>,
    %c0_129 = arith.constant 0 : index
    %c1_130 = arith.constant 1 : index
    %c4_131 = arith.constant 4 : index
    %c0_132 = arith.constant 0 : index
    %c0_133 = arith.constant 0 : index
    %72 = vector.load %arg1[%c0_129, %c1_130, %c4_131, %c0_132, %c0_133] : memref<1x4x18x5x4xf32, #tpu.memory_space<vmem>>, vector<1x1x1x4x4xf32>
    %73 = vector.shape_cast %72 : vector<1x1x1x4x4xf32> to vector<4x4xf32>
    %c4_134 = arith.constant 4 : index
    %c28_135 = arith.constant 28 : index
    %74 = vector.load %arg11[%c4_134, %c28_135] : memref<64x36xf32, #tpu.memory_space<vmem>>, vector<4x4xf32>
    tpu.vector_store %arg11[%c4_134, %c28_135], %73 {strides = array<i32>} : memref<64x36xf32, #tpu.memory_space<vmem>>, vector<4x4xf32>,
    %c0_136 = arith.constant 0 : index
    %c2_137 = arith.constant 2 : index
    %c4_138 = arith.constant 4 : index
    %c0_139 = arith.constant 0 : index
    %c0_140 = arith.constant 0 : index
    %75 = vector.load %arg1[%c0_136, %c2_137, %c4_138, %c0_139, %c0_140] : memref<1x4x18x5x4xf32, #tpu.memory_space<vmem>>, vector<1x1x1x4x4xf32>
    %76 = vector.shape_cast %75 : vector<1x1x1x4x4xf32> to vector<4x4xf32>
    %c4_141 = arith.constant 4 : index
    %c32_142 = arith.constant 32 : index
    %77 = vector.load %arg11[%c4_141, %c32_142] : memref<64x36xf32, #tpu.memory_space<vmem>>, vector<4x4xf32>
    tpu.vector_store %arg11[%c4_141, %c32_142], %76 {strides = array<i32>} : memref<64x36xf32, #tpu.memory_space<vmem>>, vector<4x4xf32>,
    %c0_143 = arith.constant 0 : index
    %c0_144 = arith.constant 0 : index
    %c4_145 = arith.constant 4 : index
    %c0_146 = arith.constant 0 : index
    %c0_147 = arith.constant 0 : index
    %78 = vector.load %arg1[%c0_143, %c0_144, %c4_145, %c0_146, %c0_147] : memref<1x4x18x5x4xf32, #tpu.memory_space<vmem>>, vector<1x1x1x4x4xf32>
    %79 = vector.shape_cast %78 : vector<1x1x1x4x4xf32> to vector<4x4xf32>
    %c8_148 = arith.constant 8 : index
    %c0_149 = arith.constant 0 : index
    %80 = vector.load %arg11[%c8_148, %c0_149] : memref<64x36xf32, #tpu.memory_space<vmem>>, vector<4x4xf32>
    tpu.vector_store %arg11[%c8_148, %c0_149], %79 {strides = array<i32>} : memref<64x36xf32, #tpu.memory_space<vmem>>, vector<4x4xf32>,
    %c0_150 = arith.constant 0 : index
    %c1_151 = arith.constant 1 : index
    %c4_152 = arith.constant 4 : index
    %c0_153 = arith.constant 0 : index
    %c0_154 = arith.constant 0 : index
    %81 = vector.load %arg1[%c0_150, %c1_151, %c4_152, %c0_153, %c0_154] : memref<1x4x18x5x4xf32, #tpu.memory_space<vmem>>, vector<1x1x1x4x4xf32>
    %82 = vector.shape_cast %81 : vector<1x1x1x4x4xf32> to vector<4x4xf32>
    %c8_155 = arith.constant 8 : index
    %c4_156 = arith.constant 4 : index
    %83 = vector.load %arg11[%c8_155, %c4_156] : memref<64x36xf32, #tpu.memory_space<vmem>>, vector<4x4xf32>
    tpu.vector_store %arg11[%c8_155, %c4_156], %82 {strides = array<i32>} : memref<64x36xf32, #tpu.memory_space<vmem>>, vector<4x4xf32>,
    %c0_157 = arith.constant 0 : index
    %c2_158 = arith.constant 2 : index
    %c4_159 = arith.constant 4 : index
    %c0_160 = arith.constant 0 : index
    %c0_161 = arith.constant 0 : index
    %84 = vector.load %arg1[%c0_157, %c2_158, %c4_159, %c0_160, %c0_161] : memref<1x4x18x5x4xf32, #tpu.memory_space<vmem>>, vector<1x1x1x4x4xf32>
    %85 = vector.shape_cast %84 : vector<1x1x1x4x4xf32> to vector<4x4xf32>
    %c8_162 = arith.constant 8 : index
    %c8_163 = arith.constant 8 : index
    %86 = vector.load %arg11[%c8_162, %c8_163] : memref<64x36xf32, #tpu.memory_space<vmem>>, vector<4x4xf32>
    tpu.vector_store %arg11[%c8_162, %c8_163], %85 {strides = array<i32>} : memref<64x36xf32, #tpu.memory_space<vmem>>, vector<4x4xf32>,
    %c0_164 = arith.constant 0 : index
    %c0_165 = arith.constant 0 : index
    %c5_166 = arith.constant 5 : index
    %c0_167 = arith.constant 0 : index
    %c0_168 = arith.constant 0 : index
    %87 = vector.load %arg1[%c0_164, %c0_165, %c5_166, %c0_167, %c0_168] : memref<1x4x18x5x4xf32, #tpu.memory_space<vmem>>, vector<1x1x1x4x4xf32>
    %88 = vector.shape_cast %87 : vector<1x1x1x4x4xf32> to vector<4x4xf32>
    %c8_169 = arith.constant 8 : index
    %c12_170 = arith.constant 12 : index
    %89 = vector.load %arg11[%c8_169, %c12_170] : memref<64x36xf32, #tpu.memory_space<vmem>>, vector<4x4xf32>
    tpu.vector_store %arg11[%c8_169, %c12_170], %88 {strides = array<i32>} : memref<64x36xf32, #tpu.memory_space<vmem>>, vector<4x4xf32>,
    %c0_171 = arith.constant 0 : index
    %c1_172 = arith.constant 1 : index
    %c5_173 = arith.constant 5 : index
    %c0_174 = arith.constant 0 : index
    %c0_175 = arith.constant 0 : index
    %90 = vector.load %arg1[%c0_171, %c1_172, %c5_173, %c0_174, %c0_175] : memref<1x4x18x5x4xf32, #tpu.memory_space<vmem>>, vector<1x1x1x4x4xf32>
    %91 = vector.shape_cast %90 : vector<1x1x1x4x4xf32> to vector<4x4xf32>
    %c8_176 = arith.constant 8 : index
    %c16_177 = arith.constant 16 : index
    %92 = vector.load %arg11[%c8_176, %c16_177] : memref<64x36xf32, #tpu.memory_space<vmem>>, vector<4x4xf32>
    tpu.vector_store %arg11[%c8_176, %c16_177], %91 {strides = array<i32>} : memref<64x36xf32, #tpu.memory_space<vmem>>, vector<4x4xf32>,
    %c0_178 = arith.constant 0 : index
    %c2_179 = arith.constant 2 : index
    %c5_180 = arith.constant 5 : index
    %c0_181 = arith.constant 0 : index
    %c0_182 = arith.constant 0 : index
    %93 = vector.load %arg1[%c0_178, %c2_179, %c5_180, %c0_181, %c0_182] : memref<1x4x18x5x4xf32, #tpu.memory_space<vmem>>, vector<1x1x1x4x4xf32>
    %94 = vector.shape_cast %93 : vector<1x1x1x4x4xf32> to vector<4x4xf32>
    %c8_183 = arith.constant 8 : index
    %c20_184 = arith.constant 20 : index
    %95 = vector.load %arg11[%c8_183, %c20_184] : memref<64x36xf32, #tpu.memory_space<vmem>>, vector<4x4xf32>
    tpu.vector_store %arg11[%c8_183, %c20_184], %94 {strides = array<i32>} : memref<64x36xf32, #tpu.memory_space<vmem>>, vector<4x4xf32>,
    %c0_185 = arith.constant 0 : index
    %c0_186 = arith.constant 0 : index
    %c6 = arith.constant 6 : index
    %c0_187 = arith.constant 0 : index
    %c0_188 = arith.constant 0 : index
    %96 = vector.load %arg1[%c0_185, %c0_186, %c6, %c0_187, %c0_188] : memref<1x4x18x5x4xf32, #tpu.memory_space<vmem>>, vector<1x1x1x4x4xf32>
    %97 = vector.shape_cast %96 : vector<1x1x1x4x4xf32> to vector<4x4xf32>
    %c8_189 = arith.constant 8 : index
    %c24_190 = arith.constant 24 : index
    %98 = vector.load %arg11[%c8_189, %c24_190] : memref<64x36xf32, #tpu.memory_space<vmem>>, vector<4x4xf32>
    tpu.vector_store %arg11[%c8_189, %c24_190], %97 {strides = array<i32>} : memref<64x36xf32, #tpu.memory_space<vmem>>, vector<4x4xf32>,
    %c0_191 = arith.constant 0 : index
    %c1_192 = arith.constant 1 : index
    %c6_193 = arith.constant 6 : index
    %c0_194 = arith.constant 0 : index
    %c0_195 = arith.constant 0 : index
    %99 = vector.load %arg1[%c0_191, %c1_192, %c6_193, %c0_194, %c0_195] : memref<1x4x18x5x4xf32, #tpu.memory_space<vmem>>, vector<1x1x1x4x4xf32>
    %100 = vector.shape_cast %99 : vector<1x1x1x4x4xf32> to vector<4x4xf32>
    %c8_196 = arith.constant 8 : index
    %c28_197 = arith.constant 28 : index
    %101 = vector.load %arg11[%c8_196, %c28_197] : memref<64x36xf32, #tpu.memory_space<vmem>>, vector<4x4xf32>
    tpu.vector_store %arg11[%c8_196, %c28_197], %100 {strides = array<i32>} : memref<64x36xf32, #tpu.memory_space<vmem>>, vector<4x4xf32>,
    %c0_198 = arith.constant 0 : index
    %c2_199 = arith.constant 2 : index
    %c6_200 = arith.constant 6 : index
    %c0_201 = arith.constant 0 : index
    %c0_202 = arith.constant 0 : index
    %102 = vector.load %arg1[%c0_198, %c2_199, %c6_200, %c0_201, %c0_202] : memref<1x4x18x5x4xf32, #tpu.memory_space<vmem>>, vector<1x1x1x4x4xf32>
    %103 = vector.shape_cast %102 : vector<1x1x1x4x4xf32> to vector<4x4xf32>
    %c8_203 = arith.constant 8 : index
    %c32_204 = arith.constant 32 : index
    %104 = vector.load %arg11[%c8_203, %c32_204] : memref<64x36xf32, #tpu.memory_space<vmem>>, vector<4x4xf32>
    tpu.vector_store %arg11[%c8_203, %c32_204], %103 {strides = array<i32>} : memref<64x36xf32, #tpu.memory_space<vmem>>, vector<4x4xf32>,
    %c0_205 = arith.constant 0 : index
    %c0_206 = arith.constant 0 : index
    %c6_207 = arith.constant 6 : index
    %c0_208 = arith.constant 0 : index
    %c0_209 = arith.constant 0 : index
    %105 = vector.load %arg1[%c0_205, %c0_206, %c6_207, %c0_208, %c0_209] : memref<1x4x18x5x4xf32, #tpu.memory_space<vmem>>, vector<1x1x1x4x4xf32>
    %106 = vector.shape_cast %105 : vector<1x1x1x4x4xf32> to vector<4x4xf32>
    %c12_210 = arith.constant 12 : index
    %c0_211 = arith.constant 0 : index
    %107 = vector.load %arg11[%c12_210, %c0_211] : memref<64x36xf32, #tpu.memory_space<vmem>>, vector<4x4xf32>
    tpu.vector_store %arg11[%c12_210, %c0_211], %106 {strides = array<i32>} : memref<64x36xf32, #tpu.memory_space<vmem>>, vector<4x4xf32>,
    %c0_212 = arith.constant 0 : index
    %c1_213 = arith.constant 1 : index
    %c6_214 = arith.constant 6 : index
    %c0_215 = arith.constant 0 : index
    %c0_216 = arith.constant 0 : index
    %108 = vector.load %arg1[%c0_212, %c1_213, %c6_214, %c0_215, %c0_216] : memref<1x4x18x5x4xf32, #tpu.memory_space<vmem>>, vector<1x1x1x4x4xf32>
    %109 = vector.shape_cast %108 : vector<1x1x1x4x4xf32> to vector<4x4xf32>
    %c12_217 = arith.constant 12 : index
    %c4_218 = arith.constant 4 : index
    %110 = vector.load %arg11[%c12_217, %c4_218] : memref<64x36xf32, #tpu.memory_space<vmem>>, vector<4x4xf32>
    tpu.vector_store %arg11[%c12_217, %c4_218], %109 {strides = array<i32>} : memref<64x36xf32, #tpu.memory_space<vmem>>, vector<4x4xf32>,
    %c0_219 = arith.constant 0 : index
    %c2_220 = arith.constant 2 : index
    %c6_221 = arith.constant 6 : index
    %c0_222 = arith.constant 0 : index
    %c0_223 = arith.constant 0 : index
    %111 = vector.load %arg1[%c0_219, %c2_220, %c6_221, %c0_222, %c0_223] : memref<1x4x18x5x4xf32, #tpu.memory_space<vmem>>, vector<1x1x1x4x4xf32>
    %112 = vector.shape_cast %111 : vector<1x1x1x4x4xf32> to vector<4x4xf32>
    %c12_224 = arith.constant 12 : index
    %c8_225 = arith.constant 8 : index
    %113 = vector.load %arg11[%c12_224, %c8_225] : memref<64x36xf32, #tpu.memory_space<vmem>>, vector<4x4xf32>
    tpu.vector_store %arg11[%c12_224, %c8_225], %112 {strides = array<i32>} : memref<64x36xf32, #tpu.memory_space<vmem>>, vector<4x4xf32>,
    %c0_226 = arith.constant 0 : index
    %c0_227 = arith.constant 0 : index
    %c7 = arith.constant 7 : index
    %c0_228 = arith.constant 0 : index
    %c0_229 = arith.constant 0 : index
    %114 = vector.load %arg1[%c0_226, %c0_227, %c7, %c0_228, %c0_229] : memref<1x4x18x5x4xf32, #tpu.memory_space<vmem>>, vector<1x1x1x4x4xf32>
    %115 = vector.shape_cast %114 : vector<1x1x1x4x4xf32> to vector<4x4xf32>
    %c12_230 = arith.constant 12 : index
    %c12_231 = arith.constant 12 : index
    %116 = vector.load %arg11[%c12_230, %c12_231] : memref<64x36xf32, #tpu.memory_space<vmem>>, vector<4x4xf32>
    tpu.vector_store %arg11[%c12_230, %c12_231], %115 {strides = array<i32>} : memref<64x36xf32, #tpu.memory_space<vmem>>, vector<4x4xf32>,
    %c0_232 = arith.constant 0 : index
    %c1_233 = arith.constant 1 : index
    %c7_234 = arith.constant 7 : index
    %c0_235 = arith.constant 0 : index
    %c0_236 = arith.constant 0 : index
    %117 = vector.load %arg1[%c0_232, %c1_233, %c7_234, %c0_235, %c0_236] : memref<1x4x18x5x4xf32, #tpu.memory_space<vmem>>, vector<1x1x1x4x4xf32>
    %118 = vector.shape_cast %117 : vector<1x1x1x4x4xf32> to vector<4x4xf32>
    %c12_237 = arith.constant 12 : index
    %c16_238 = arith.constant 16 : index
    %119 = vector.load %arg11[%c12_237, %c16_238] : memref<64x36xf32, #tpu.memory_space<vmem>>, vector<4x4xf32>
    tpu.vector_store %arg11[%c12_237, %c16_238], %118 {strides = array<i32>} : memref<64x36xf32, #tpu.memory_space<vmem>>, vector<4x4xf32>,
    %c0_239 = arith.constant 0 : index
    %c2_240 = arith.constant 2 : index
    %c7_241 = arith.constant 7 : index
    %c0_242 = arith.constant 0 : index
    %c0_243 = arith.constant 0 : index
    %120 = vector.load %arg1[%c0_239, %c2_240, %c7_241, %c0_242, %c0_243] : memref<1x4x18x5x4xf32, #tpu.memory_space<vmem>>, vector<1x1x1x4x4xf32>
    %121 = vector.shape_cast %120 : vector<1x1x1x4x4xf32> to vector<4x4xf32>
    %c12_244 = arith.constant 12 : index
    %c20_245 = arith.constant 20 : index
    %122 = vector.load %arg11[%c12_244, %c20_245] : memref<64x36xf32, #tpu.memory_space<vmem>>, vector<4x4xf32>
    tpu.vector_store %arg11[%c12_244, %c20_245], %121 {strides = array<i32>} : memref<64x36xf32, #tpu.memory_space<vmem>>, vector<4x4xf32>,
    %c0_246 = arith.constant 0 : index
    %c0_247 = arith.constant 0 : index
    %c8_248 = arith.constant 8 : index
    %c0_249 = arith.constant 0 : index
    %c0_250 = arith.constant 0 : index
    %123 = vector.load %arg1[%c0_246, %c0_247, %c8_248, %c0_249, %c0_250] : memref<1x4x18x5x4xf32, #tpu.memory_space<vmem>>, vector<1x1x1x4x4xf32>
    %124 = vector.shape_cast %123 : vector<1x1x1x4x4xf32> to vector<4x4xf32>
    %c12_251 = arith.constant 12 : index
    %c24_252 = arith.constant 24 : index
    %125 = vector.load %arg11[%c12_251, %c24_252] : memref<64x36xf32, #tpu.memory_space<vmem>>, vector<4x4xf32>
    tpu.vector_store %arg11[%c12_251, %c24_252], %124 {strides = array<i32>} : memref<64x36xf32, #tpu.memory_space<vmem>>, vector<4x4xf32>,
    %c0_253 = arith.constant 0 : index
    %c1_254 = arith.constant 1 : index
    %c8_255 = arith.constant 8 : index
    %c0_256 = arith.constant 0 : index
    %c0_257 = arith.constant 0 : index
    %126 = vector.load %arg1[%c0_253, %c1_254, %c8_255, %c0_256, %c0_257] : memref<1x4x18x5x4xf32, #tpu.memory_space<vmem>>, vector<1x1x1x4x4xf32>
    %127 = vector.shape_cast %126 : vector<1x1x1x4x4xf32> to vector<4x4xf32>
    %c12_258 = arith.constant 12 : index
    %c28_259 = arith.constant 28 : index
    %128 = vector.load %arg11[%c12_258, %c28_259] : memref<64x36xf32, #tpu.memory_space<vmem>>, vector<4x4xf32>
    tpu.vector_store %arg11[%c12_258, %c28_259], %127 {strides = array<i32>} : memref<64x36xf32, #tpu.memory_space<vmem>>, vector<4x4xf32>,
    %c0_260 = arith.constant 0 : index
    %c2_261 = arith.constant 2 : index
    %c8_262 = arith.constant 8 : index
    %c0_263 = arith.constant 0 : index
    %c0_264 = arith.constant 0 : index
    %129 = vector.load %arg1[%c0_260, %c2_261, %c8_262, %c0_263, %c0_264] : memref<1x4x18x5x4xf32, #tpu.memory_space<vmem>>, vector<1x1x1x4x4xf32>
    %130 = vector.shape_cast %129 : vector<1x1x1x4x4xf32> to vector<4x4xf32>
    %c12_265 = arith.constant 12 : index
    %c32_266 = arith.constant 32 : index
    %131 = vector.load %arg11[%c12_265, %c32_266] : memref<64x36xf32, #tpu.memory_space<vmem>>, vector<4x4xf32>
    tpu.vector_store %arg11[%c12_265, %c32_266], %130 {strides = array<i32>} : memref<64x36xf32, #tpu.memory_space<vmem>>, vector<4x4xf32>,
    %c0_267 = arith.constant 0 : index
    %c0_268 = arith.constant 0 : index
    %c8_269 = arith.constant 8 : index
    %c0_270 = arith.constant 0 : index
    %c0_271 = arith.constant 0 : index
    %132 = vector.load %arg1[%c0_267, %c0_268, %c8_269, %c0_270, %c0_271] : memref<1x4x18x5x4xf32, #tpu.memory_space<vmem>>, vector<1x1x1x4x4xf32>
    %133 = vector.shape_cast %132 : vector<1x1x1x4x4xf32> to vector<4x4xf32>
    %c16_272 = arith.constant 16 : index
    %c0_273 = arith.constant 0 : index
    %134 = vector.load %arg11[%c16_272, %c0_273] : memref<64x36xf32, #tpu.memory_space<vmem>>, vector<4x4xf32>
    tpu.vector_store %arg11[%c16_272, %c0_273], %133 {strides = array<i32>} : memref<64x36xf32, #tpu.memory_space<vmem>>, vector<4x4xf32>,
    %c0_274 = arith.constant 0 : index
    %c1_275 = arith.constant 1 : index
    %c8_276 = arith.constant 8 : index
    %c0_277 = arith.constant 0 : index
    %c0_278 = arith.constant 0 : index
    %135 = vector.load %arg1[%c0_274, %c1_275, %c8_276, %c0_277, %c0_278] : memref<1x4x18x5x4xf32, #tpu.memory_space<vmem>>, vector<1x1x1x4x4xf32>
    %136 = vector.shape_cast %135 : vector<1x1x1x4x4xf32> to vector<4x4xf32>
    %c16_279 = arith.constant 16 : index
    %c4_280 = arith.constant 4 : index
    %137 = vector.load %arg11[%c16_279, %c4_280] : memref<64x36xf32, #tpu.memory_space<vmem>>, vector<4x4xf32>
    tpu.vector_store %arg11[%c16_279, %c4_280], %136 {strides = array<i32>} : memref<64x36xf32, #tpu.memory_space<vmem>>, vector<4x4xf32>,
    %c0_281 = arith.constant 0 : index
    %c2_282 = arith.constant 2 : index
    %c8_283 = arith.constant 8 : index
    %c0_284 = arith.constant 0 : index
    %c0_285 = arith.constant 0 : index
    %138 = vector.load %arg1[%c0_281, %c2_282, %c8_283, %c0_284, %c0_285] : memref<1x4x18x5x4xf32, #tpu.memory_space<vmem>>, vector<1x1x1x4x4xf32>
    %139 = vector.shape_cast %138 : vector<1x1x1x4x4xf32> to vector<4x4xf32>
    %c16_286 = arith.constant 16 : index
    %c8_287 = arith.constant 8 : index
    %140 = vector.load %arg11[%c16_286, %c8_287] : memref<64x36xf32, #tpu.memory_space<vmem>>, vector<4x4xf32>
    tpu.vector_store %arg11[%c16_286, %c8_287], %139 {strides = array<i32>} : memref<64x36xf32, #tpu.memory_space<vmem>>, vector<4x4xf32>,
    %c0_288 = arith.constant 0 : index
    %c0_289 = arith.constant 0 : index
    %c9 = arith.constant 9 : index
    %c0_290 = arith.constant 0 : index
    %c0_291 = arith.constant 0 : index
    %141 = vector.load %arg1[%c0_288, %c0_289, %c9, %c0_290, %c0_291] : memref<1x4x18x5x4xf32, #tpu.memory_space<vmem>>, vector<1x1x1x4x4xf32>
    %142 = vector.shape_cast %141 : vector<1x1x1x4x4xf32> to vector<4x4xf32>
    %c16_292 = arith.constant 16 : index
    %c12_293 = arith.constant 12 : index
    %143 = vector.load %arg11[%c16_292, %c12_293] : memref<64x36xf32, #tpu.memory_space<vmem>>, vector<4x4xf32>
    tpu.vector_store %arg11[%c16_292, %c12_293], %142 {strides = array<i32>} : memref<64x36xf32, #tpu.memory_space<vmem>>, vector<4x4xf32>,
    %c0_294 = arith.constant 0 : index
    %c1_295 = arith.constant 1 : index
    %c9_296 = arith.constant 9 : index
    %c0_297 = arith.constant 0 : index
    %c0_298 = arith.constant 0 : index
    %144 = vector.load %arg1[%c0_294, %c1_295, %c9_296, %c0_297, %c0_298] : memref<1x4x18x5x4xf32, #tpu.memory_space<vmem>>, vector<1x1x1x4x4xf32>
    %145 = vector.shape_cast %144 : vector<1x1x1x4x4xf32> to vector<4x4xf32>
    %c16_299 = arith.constant 16 : index
    %c16_300 = arith.constant 16 : index
    %146 = vector.load %arg11[%c16_299, %c16_300] : memref<64x36xf32, #tpu.memory_space<vmem>>, vector<4x4xf32>
    tpu.vector_store %arg11[%c16_299, %c16_300], %145 {strides = array<i32>} : memref<64x36xf32, #tpu.memory_space<vmem>>, vector<4x4xf32>,
    %c0_301 = arith.constant 0 : index
    %c2_302 = arith.constant 2 : index
    %c9_303 = arith.constant 9 : index
    %c0_304 = arith.constant 0 : index
    %c0_305 = arith.constant 0 : index
    %147 = vector.load %arg1[%c0_301, %c2_302, %c9_303, %c0_304, %c0_305] : memref<1x4x18x5x4xf32, #tpu.memory_space<vmem>>, vector<1x1x1x4x4xf32>
    %148 = vector.shape_cast %147 : vector<1x1x1x4x4xf32> to vector<4x4xf32>
    %c16_306 = arith.constant 16 : index
    %c20_307 = arith.constant 20 : index
    %149 = vector.load %arg11[%c16_306, %c20_307] : memref<64x36xf32, #tpu.memory_space<vmem>>, vector<4x4xf32>
    tpu.vector_store %arg11[%c16_306, %c20_307], %148 {strides = array<i32>} : memref<64x36xf32, #tpu.memory_space<vmem>>, vector<4x4xf32>,
    %c0_308 = arith.constant 0 : index
    %c0_309 = arith.constant 0 : index
    %c10 = arith.constant 10 : index
    %c0_310 = arith.constant 0 : index
    %c0_311 = arith.constant 0 : index
    %150 = vector.load %arg1[%c0_308, %c0_309, %c10, %c0_310, %c0_311] : memref<1x4x18x5x4xf32, #tpu.memory_space<vmem>>, vector<1x1x1x4x4xf32>
    %151 = vector.shape_cast %150 : vector<1x1x1x4x4xf32> to vector<4x4xf32>
    %c16_312 = arith.constant 16 : index
    %c24_313 = arith.constant 24 : index
    %152 = vector.load %arg11[%c16_312, %c24_313] : memref<64x36xf32, #tpu.memory_space<vmem>>, vector<4x4xf32>
    tpu.vector_store %arg11[%c16_312, %c24_313], %151 {strides = array<i32>} : memref<64x36xf32, #tpu.memory_space<vmem>>, vector<4x4xf32>,
    %c0_314 = arith.constant 0 : index
    %c1_315 = arith.constant 1 : index
    %c10_316 = arith.constant 10 : index
    %c0_317 = arith.constant 0 : index
    %c0_318 = arith.constant 0 : index
    %153 = vector.load %arg1[%c0_314, %c1_315, %c10_316, %c0_317, %c0_318] : memref<1x4x18x5x4xf32, #tpu.memory_space<vmem>>, vector<1x1x1x4x4xf32>
    %154 = vector.shape_cast %153 : vector<1x1x1x4x4xf32> to vector<4x4xf32>
    %c16_319 = arith.constant 16 : index
    %c28_320 = arith.constant 28 : index
    %155 = vector.load %arg11[%c16_319, %c28_320] : memref<64x36xf32, #tpu.memory_space<vmem>>, vector<4x4xf32>
    tpu.vector_store %arg11[%c16_319, %c28_320], %154 {strides = array<i32>} : memref<64x36xf32, #tpu.memory_space<vmem>>, vector<4x4xf32>,
    %c0_321 = arith.constant 0 : index
    %c2_322 = arith.constant 2 : index
    %c10_323 = arith.constant 10 : index
    %c0_324 = arith.constant 0 : index
    %c0_325 = arith.constant 0 : index
    %156 = vector.load %arg1[%c0_321, %c2_322, %c10_323, %c0_324, %c0_325] : memref<1x4x18x5x4xf32, #tpu.memory_space<vmem>>, vector<1x1x1x4x4xf32>
    %157 = vector.shape_cast %156 : vector<1x1x1x4x4xf32> to vector<4x4xf32>
    %c16_326 = arith.constant 16 : index
    %c32_327 = arith.constant 32 : index
    %158 = vector.load %arg11[%c16_326, %c32_327] : memref<64x36xf32, #tpu.memory_space<vmem>>, vector<4x4xf32>
    tpu.vector_store %arg11[%c16_326, %c32_327], %157 {strides = array<i32>} : memref<64x36xf32, #tpu.memory_space<vmem>>, vector<4x4xf32>,
    %c0_328 = arith.constant 0 : index
    %c0_329 = arith.constant 0 : index
    %c10_330 = arith.constant 10 : index
    %c0_331 = arith.constant 0 : index
    %c0_332 = arith.constant 0 : index
    %159 = vector.load %arg1[%c0_328, %c0_329, %c10_330, %c0_331, %c0_332] : memref<1x4x18x5x4xf32, #tpu.memory_space<vmem>>, vector<1x1x1x4x4xf32>
    %160 = vector.shape_cast %159 : vector<1x1x1x4x4xf32> to vector<4x4xf32>
    %c20_333 = arith.constant 20 : index
    %c0_334 = arith.constant 0 : index
    %161 = vector.load %arg11[%c20_333, %c0_334] : memref<64x36xf32, #tpu.memory_space<vmem>>, vector<4x4xf32>
    tpu.vector_store %arg11[%c20_333, %c0_334], %160 {strides = array<i32>} : memref<64x36xf32, #tpu.memory_space<vmem>>, vector<4x4xf32>,
    %c0_335 = arith.constant 0 : index
    %c1_336 = arith.constant 1 : index
    %c10_337 = arith.constant 10 : index
    %c0_338 = arith.constant 0 : index
    %c0_339 = arith.constant 0 : index
    %162 = vector.load %arg1[%c0_335, %c1_336, %c10_337, %c0_338, %c0_339] : memref<1x4x18x5x4xf32, #tpu.memory_space<vmem>>, vector<1x1x1x4x4xf32>
    %163 = vector.shape_cast %162 : vector<1x1x1x4x4xf32> to vector<4x4xf32>
    %c20_340 = arith.constant 20 : index
    %c4_341 = arith.constant 4 : index
    %164 = vector.load %arg11[%c20_340, %c4_341] : memref<64x36xf32, #tpu.memory_space<vmem>>, vector<4x4xf32>
    tpu.vector_store %arg11[%c20_340, %c4_341], %163 {strides = array<i32>} : memref<64x36xf32, #tpu.memory_space<vmem>>, vector<4x4xf32>,
    %c0_342 = arith.constant 0 : index
    %c2_343 = arith.constant 2 : index
    %c10_344 = arith.constant 10 : index
    %c0_345 = arith.constant 0 : index
    %c0_346 = arith.constant 0 : index
    %165 = vector.load %arg1[%c0_342, %c2_343, %c10_344, %c0_345, %c0_346] : memref<1x4x18x5x4xf32, #tpu.memory_space<vmem>>, vector<1x1x1x4x4xf32>
    %166 = vector.shape_cast %165 : vector<1x1x1x4x4xf32> to vector<4x4xf32>
    %c20_347 = arith.constant 20 : index
    %c8_348 = arith.constant 8 : index
    %167 = vector.load %arg11[%c20_347, %c8_348] : memref<64x36xf32, #tpu.memory_space<vmem>>, vector<4x4xf32>
    tpu.vector_store %arg11[%c20_347, %c8_348], %166 {strides = array<i32>} : memref<64x36xf32, #tpu.memory_space<vmem>>, vector<4x4xf32>,
    %c0_349 = arith.constant 0 : index
    %c0_350 = arith.constant 0 : index
    %c11 = arith.constant 11 : index
    %c0_351 = arith.constant 0 : index
    %c0_352 = arith.constant 0 : index
    %168 = vector.load %arg1[%c0_349, %c0_350, %c11, %c0_351, %c0_352] : memref<1x4x18x5x4xf32, #tpu.memory_space<vmem>>, vector<1x1x1x4x4xf32>
    %169 = vector.shape_cast %168 : vector<1x1x1x4x4xf32> to vector<4x4xf32>
    %c20_353 = arith.constant 20 : index
    %c12_354 = arith.constant 12 : index
    %170 = vector.load %arg11[%c20_353, %c12_354] : memref<64x36xf32, #tpu.memory_space<vmem>>, vector<4x4xf32>
    tpu.vector_store %arg11[%c20_353, %c12_354], %169 {strides = array<i32>} : memref<64x36xf32, #tpu.memory_space<vmem>>, vector<4x4xf32>,
    %c0_355 = arith.constant 0 : index
    %c1_356 = arith.constant 1 : index
    %c11_357 = arith.constant 11 : index
    %c0_358 = arith.constant 0 : index
    %c0_359 = arith.constant 0 : index
    %171 = vector.load %arg1[%c0_355, %c1_356, %c11_357, %c0_358, %c0_359] : memref<1x4x18x5x4xf32, #tpu.memory_space<vmem>>, vector<1x1x1x4x4xf32>
    %172 = vector.shape_cast %171 : vector<1x1x1x4x4xf32> to vector<4x4xf32>
    %c20_360 = arith.constant 20 : index
    %c16_361 = arith.constant 16 : index
    %173 = vector.load %arg11[%c20_360, %c16_361] : memref<64x36xf32, #tpu.memory_space<vmem>>, vector<4x4xf32>
    tpu.vector_store %arg11[%c20_360, %c16_361], %172 {strides = array<i32>} : memref<64x36xf32, #tpu.memory_space<vmem>>, vector<4x4xf32>,
    %c0_362 = arith.constant 0 : index
    %c2_363 = arith.constant 2 : index
    %c11_364 = arith.constant 11 : index
    %c0_365 = arith.constant 0 : index
    %c0_366 = arith.constant 0 : index
    %174 = vector.load %arg1[%c0_362, %c2_363, %c11_364, %c0_365, %c0_366] : memref<1x4x18x5x4xf32, #tpu.memory_space<vmem>>, vector<1x1x1x4x4xf32>
    %175 = vector.shape_cast %174 : vector<1x1x1x4x4xf32> to vector<4x4xf32>
    %c20_367 = arith.constant 20 : index
    %c20_368 = arith.constant 20 : index
    %176 = vector.load %arg11[%c20_367, %c20_368] : memref<64x36xf32, #tpu.memory_space<vmem>>, vector<4x4xf32>
    tpu.vector_store %arg11[%c20_367, %c20_368], %175 {strides = array<i32>} : memref<64x36xf32, #tpu.memory_space<vmem>>, vector<4x4xf32>,
    %c0_369 = arith.constant 0 : index
    %c0_370 = arith.constant 0 : index
    %c12_371 = arith.constant 12 : index
    %c0_372 = arith.constant 0 : index
    %c0_373 = arith.constant 0 : index
    %177 = vector.load %arg1[%c0_369, %c0_370, %c12_371, %c0_372, %c0_373] : memref<1x4x18x5x4xf32, #tpu.memory_space<vmem>>, vector<1x1x1x4x4xf32>
    %178 = vector.shape_cast %177 : vector<1x1x1x4x4xf32> to vector<4x4xf32>
    %c20_374 = arith.constant 20 : index
    %c24_375 = arith.constant 24 : index
    %179 = vector.load %arg11[%c20_374, %c24_375] : memref<64x36xf32, #tpu.memory_space<vmem>>, vector<4x4xf32>
    tpu.vector_store %arg11[%c20_374, %c24_375], %178 {strides = array<i32>} : memref<64x36xf32, #tpu.memory_space<vmem>>, vector<4x4xf32>,
    %c0_376 = arith.constant 0 : index
    %c1_377 = arith.constant 1 : index
    %c12_378 = arith.constant 12 : index
    %c0_379 = arith.constant 0 : index
    %c0_380 = arith.constant 0 : index
    %180 = vector.load %arg1[%c0_376, %c1_377, %c12_378, %c0_379, %c0_380] : memref<1x4x18x5x4xf32, #tpu.memory_space<vmem>>, vector<1x1x1x4x4xf32>
    %181 = vector.shape_cast %180 : vector<1x1x1x4x4xf32> to vector<4x4xf32>
    %c20_381 = arith.constant 20 : index
    %c28_382 = arith.constant 28 : index
    %182 = vector.load %arg11[%c20_381, %c28_382] : memref<64x36xf32, #tpu.memory_space<vmem>>, vector<4x4xf32>
    tpu.vector_store %arg11[%c20_381, %c28_382], %181 {strides = array<i32>} : memref<64x36xf32, #tpu.memory_space<vmem>>, vector<4x4xf32>,
    %c0_383 = arith.constant 0 : index
    %c2_384 = arith.constant 2 : index
    %c12_385 = arith.constant 12 : index
    %c0_386 = arith.constant 0 : index
    %c0_387 = arith.constant 0 : index
    %183 = vector.load %arg1[%c0_383, %c2_384, %c12_385, %c0_386, %c0_387] : memref<1x4x18x5x4xf32, #tpu.memory_space<vmem>>, vector<1x1x1x4x4xf32>
    %184 = vector.shape_cast %183 : vector<1x1x1x4x4xf32> to vector<4x4xf32>
    %c20_388 = arith.constant 20 : index
    %c32_389 = arith.constant 32 : index
    %185 = vector.load %arg11[%c20_388, %c32_389] : memref<64x36xf32, #tpu.memory_space<vmem>>, vector<4x4xf32>
    tpu.vector_store %arg11[%c20_388, %c32_389], %184 {strides = array<i32>} : memref<64x36xf32, #tpu.memory_space<vmem>>, vector<4x4xf32>,
    %c0_390 = arith.constant 0 : index
    %c0_391 = arith.constant 0 : index
    %c12_392 = arith.constant 12 : index
    %c0_393 = arith.constant 0 : index
    %c0_394 = arith.constant 0 : index
    %186 = vector.load %arg1[%c0_390, %c0_391, %c12_392, %c0_393, %c0_394] : memref<1x4x18x5x4xf32, #tpu.memory_space<vmem>>, vector<1x1x1x4x4xf32>
    %187 = vector.shape_cast %186 : vector<1x1x1x4x4xf32> to vector<4x4xf32>
    %c24_395 = arith.constant 24 : index
    %c0_396 = arith.constant 0 : index
    %188 = vector.load %arg11[%c24_395, %c0_396] : memref<64x36xf32, #tpu.memory_space<vmem>>, vector<4x4xf32>
    tpu.vector_store %arg11[%c24_395, %c0_396], %187 {strides = array<i32>} : memref<64x36xf32, #tpu.memory_space<vmem>>, vector<4x4xf32>,
    %c0_397 = arith.constant 0 : index
    %c1_398 = arith.constant 1 : index
    %c12_399 = arith.constant 12 : index
    %c0_400 = arith.constant 0 : index
    %c0_401 = arith.constant 0 : index
    %189 = vector.load %arg1[%c0_397, %c1_398, %c12_399, %c0_400, %c0_401] : memref<1x4x18x5x4xf32, #tpu.memory_space<vmem>>, vector<1x1x1x4x4xf32>
    %190 = vector.shape_cast %189 : vector<1x1x1x4x4xf32> to vector<4x4xf32>
    %c24_402 = arith.constant 24 : index
    %c4_403 = arith.constant 4 : index
    %191 = vector.load %arg11[%c24_402, %c4_403] : memref<64x36xf32, #tpu.memory_space<vmem>>, vector<4x4xf32>
    tpu.vector_store %arg11[%c24_402, %c4_403], %190 {strides = array<i32>} : memref<64x36xf32, #tpu.memory_space<vmem>>, vector<4x4xf32>,
    %c0_404 = arith.constant 0 : index
    %c2_405 = arith.constant 2 : index
    %c12_406 = arith.constant 12 : index
    %c0_407 = arith.constant 0 : index
    %c0_408 = arith.constant 0 : index
    %192 = vector.load %arg1[%c0_404, %c2_405, %c12_406, %c0_407, %c0_408] : memref<1x4x18x5x4xf32, #tpu.memory_space<vmem>>, vector<1x1x1x4x4xf32>
    %193 = vector.shape_cast %192 : vector<1x1x1x4x4xf32> to vector<4x4xf32>
    %c24_409 = arith.constant 24 : index
    %c8_410 = arith.constant 8 : index
    %194 = vector.load %arg11[%c24_409, %c8_410] : memref<64x36xf32, #tpu.memory_space<vmem>>, vector<4x4xf32>
    tpu.vector_store %arg11[%c24_409, %c8_410], %193 {strides = array<i32>} : memref<64x36xf32, #tpu.memory_space<vmem>>, vector<4x4xf32>,
    %c0_411 = arith.constant 0 : index
    %c0_412 = arith.constant 0 : index
    %c13 = arith.constant 13 : index
    %c0_413 = arith.constant 0 : index
    %c0_414 = arith.constant 0 : index
    %195 = vector.load %arg1[%c0_411, %c0_412, %c13, %c0_413, %c0_414] : memref<1x4x18x5x4xf32, #tpu.memory_space<vmem>>, vector<1x1x1x4x4xf32>
    %196 = vector.shape_cast %195 : vector<1x1x1x4x4xf32> to vector<4x4xf32>
    %c24_415 = arith.constant 24 : index
    %c12_416 = arith.constant 12 : index
    %197 = vector.load %arg11[%c24_415, %c12_416] : memref<64x36xf32, #tpu.memory_space<vmem>>, vector<4x4xf32>
    tpu.vector_store %arg11[%c24_415, %c12_416], %196 {strides = array<i32>} : memref<64x36xf32, #tpu.memory_space<vmem>>, vector<4x4xf32>,
    %c0_417 = arith.constant 0 : index
    %c1_418 = arith.constant 1 : index
    %c13_419 = arith.constant 13 : index
    %c0_420 = arith.constant 0 : index
    %c0_421 = arith.constant 0 : index
    %198 = vector.load %arg1[%c0_417, %c1_418, %c13_419, %c0_420, %c0_421] : memref<1x4x18x5x4xf32, #tpu.memory_space<vmem>>, vector<1x1x1x4x4xf32>
    %199 = vector.shape_cast %198 : vector<1x1x1x4x4xf32> to vector<4x4xf32>
    %c24_422 = arith.constant 24 : index
    %c16_423 = arith.constant 16 : index
    %200 = vector.load %arg11[%c24_422, %c16_423] : memref<64x36xf32, #tpu.memory_space<vmem>>, vector<4x4xf32>
    tpu.vector_store %arg11[%c24_422, %c16_423], %199 {strides = array<i32>} : memref<64x36xf32, #tpu.memory_space<vmem>>, vector<4x4xf32>,
    %c0_424 = arith.constant 0 : index
    %c2_425 = arith.constant 2 : index
    %c13_426 = arith.constant 13 : index
    %c0_427 = arith.constant 0 : index
    %c0_428 = arith.constant 0 : index
    %201 = vector.load %arg1[%c0_424, %c2_425, %c13_426, %c0_427, %c0_428] : memref<1x4x18x5x4xf32, #tpu.memory_space<vmem>>, vector<1x1x1x4x4xf32>
    %202 = vector.shape_cast %201 : vector<1x1x1x4x4xf32> to vector<4x4xf32>
    %c24_429 = arith.constant 24 : index
    %c20_430 = arith.constant 20 : index
    %203 = vector.load %arg11[%c24_429, %c20_430] : memref<64x36xf32, #tpu.memory_space<vmem>>, vector<4x4xf32>
    tpu.vector_store %arg11[%c24_429, %c20_430], %202 {strides = array<i32>} : memref<64x36xf32, #tpu.memory_space<vmem>>, vector<4x4xf32>,
    %c0_431 = arith.constant 0 : index
    %c0_432 = arith.constant 0 : index
    %c14 = arith.constant 14 : index
    %c0_433 = arith.constant 0 : index
    %c0_434 = arith.constant 0 : index
    %204 = vector.load %arg1[%c0_431, %c0_432, %c14, %c0_433, %c0_434] : memref<1x4x18x5x4xf32, #tpu.memory_space<vmem>>, vector<1x1x1x4x4xf32>
    %205 = vector.shape_cast %204 : vector<1x1x1x4x4xf32> to vector<4x4xf32>
    %c24_435 = arith.constant 24 : index
    %c24_436 = arith.constant 24 : index
    %206 = vector.load %arg11[%c24_435, %c24_436] : memref<64x36xf32, #tpu.memory_space<vmem>>, vector<4x4xf32>
    tpu.vector_store %arg11[%c24_435, %c24_436], %205 {strides = array<i32>} : memref<64x36xf32, #tpu.memory_space<vmem>>, vector<4x4xf32>,
    %c0_437 = arith.constant 0 : index
    %c1_438 = arith.constant 1 : index
    %c14_439 = arith.constant 14 : index
    %c0_440 = arith.constant 0 : index
    %c0_441 = arith.constant 0 : index
    %207 = vector.load %arg1[%c0_437, %c1_438, %c14_439, %c0_440, %c0_441] : memref<1x4x18x5x4xf32, #tpu.memory_space<vmem>>, vector<1x1x1x4x4xf32>
    %208 = vector.shape_cast %207 : vector<1x1x1x4x4xf32> to vector<4x4xf32>
    %c24_442 = arith.constant 24 : index
    %c28_443 = arith.constant 28 : index
    %209 = vector.load %arg11[%c24_442, %c28_443] : memref<64x36xf32, #tpu.memory_space<vmem>>, vector<4x4xf32>
    tpu.vector_store %arg11[%c24_442, %c28_443], %208 {strides = array<i32>} : memref<64x36xf32, #tpu.memory_space<vmem>>, vector<4x4xf32>,
    %c0_444 = arith.constant 0 : index
    %c2_445 = arith.constant 2 : index
    %c14_446 = arith.constant 14 : index
    %c0_447 = arith.constant 0 : index
    %c0_448 = arith.constant 0 : index
    %210 = vector.load %arg1[%c0_444, %c2_445, %c14_446, %c0_447, %c0_448] : memref<1x4x18x5x4xf32, #tpu.memory_space<vmem>>, vector<1x1x1x4x4xf32>
    %211 = vector.shape_cast %210 : vector<1x1x1x4x4xf32> to vector<4x4xf32>
    %c24_449 = arith.constant 24 : index
    %c32_450 = arith.constant 32 : index
    %212 = vector.load %arg11[%c24_449, %c32_450] : memref<64x36xf32, #tpu.memory_space<vmem>>, vector<4x4xf32>
    tpu.vector_store %arg11[%c24_449, %c32_450], %211 {strides = array<i32>} : memref<64x36xf32, #tpu.memory_space<vmem>>, vector<4x4xf32>,
    %c0_451 = arith.constant 0 : index
    %c0_452 = arith.constant 0 : index
    %c14_453 = arith.constant 14 : index
    %c0_454 = arith.constant 0 : index
    %c0_455 = arith.constant 0 : index
    %213 = vector.load %arg1[%c0_451, %c0_452, %c14_453, %c0_454, %c0_455] : memref<1x4x18x5x4xf32, #tpu.memory_space<vmem>>, vector<1x1x1x4x4xf32>
    %214 = vector.shape_cast %213 : vector<1x1x1x4x4xf32> to vector<4x4xf32>
    %c28_456 = arith.constant 28 : index
    %c0_457 = arith.constant 0 : index
    %215 = vector.load %arg11[%c28_456, %c0_457] : memref<64x36xf32, #tpu.memory_space<vmem>>, vector<4x4xf32>
    tpu.vector_store %arg11[%c28_456, %c0_457], %214 {strides = array<i32>} : memref<64x36xf32, #tpu.memory_space<vmem>>, vector<4x4xf32>,
    %c0_458 = arith.constant 0 : index
    %c1_459 = arith.constant 1 : index
    %c14_460 = arith.constant 14 : index
    %c0_461 = arith.constant 0 : index
    %c0_462 = arith.constant 0 : index
    %216 = vector.load %arg1[%c0_458, %c1_459, %c14_460, %c0_461, %c0_462] : memref<1x4x18x5x4xf32, #tpu.memory_space<vmem>>, vector<1x1x1x4x4xf32>
    %217 = vector.shape_cast %216 : vector<1x1x1x4x4xf32> to vector<4x4xf32>
    %c28_463 = arith.constant 28 : index
    %c4_464 = arith.constant 4 : index
    %218 = vector.load %arg11[%c28_463, %c4_464] : memref<64x36xf32, #tpu.memory_space<vmem>>, vector<4x4xf32>
    tpu.vector_store %arg11[%c28_463, %c4_464], %217 {strides = array<i32>} : memref<64x36xf32, #tpu.memory_space<vmem>>, vector<4x4xf32>,
    %c0_465 = arith.constant 0 : index
    %c2_466 = arith.constant 2 : index
    %c14_467 = arith.constant 14 : index
    %c0_468 = arith.constant 0 : index
    %c0_469 = arith.constant 0 : index
    %219 = vector.load %arg1[%c0_465, %c2_466, %c14_467, %c0_468, %c0_469] : memref<1x4x18x5x4xf32, #tpu.memory_space<vmem>>, vector<1x1x1x4x4xf32>
    %220 = vector.shape_cast %219 : vector<1x1x1x4x4xf32> to vector<4x4xf32>
    %c28_470 = arith.constant 28 : index
    %c8_471 = arith.constant 8 : index
    %221 = vector.load %arg11[%c28_470, %c8_471] : memref<64x36xf32, #tpu.memory_space<vmem>>, vector<4x4xf32>
    tpu.vector_store %arg11[%c28_470, %c8_471], %220 {strides = array<i32>} : memref<64x36xf32, #tpu.memory_space<vmem>>, vector<4x4xf32>,
    %c0_472 = arith.constant 0 : index
    %c0_473 = arith.constant 0 : index
    %c15 = arith.constant 15 : index
    %c0_474 = arith.constant 0 : index
    %c0_475 = arith.constant 0 : index
    %222 = vector.load %arg1[%c0_472, %c0_473, %c15, %c0_474, %c0_475] : memref<1x4x18x5x4xf32, #tpu.memory_space<vmem>>, vector<1x1x1x4x4xf32>
    %223 = vector.shape_cast %222 : vector<1x1x1x4x4xf32> to vector<4x4xf32>
    %c28_476 = arith.constant 28 : index
    %c12_477 = arith.constant 12 : index
    %224 = vector.load %arg11[%c28_476, %c12_477] : memref<64x36xf32, #tpu.memory_space<vmem>>, vector<4x4xf32>
    tpu.vector_store %arg11[%c28_476, %c12_477], %223 {strides = array<i32>} : memref<64x36xf32, #tpu.memory_space<vmem>>, vector<4x4xf32>,
    %c0_478 = arith.constant 0 : index
    %c1_479 = arith.constant 1 : index
    %c15_480 = arith.constant 15 : index
    %c0_481 = arith.constant 0 : index
    %c0_482 = arith.constant 0 : index
    %225 = vector.load %arg1[%c0_478, %c1_479, %c15_480, %c0_481, %c0_482] : memref<1x4x18x5x4xf32, #tpu.memory_space<vmem>>, vector<1x1x1x4x4xf32>
    %226 = vector.shape_cast %225 : vector<1x1x1x4x4xf32> to vector<4x4xf32>
    %c28_483 = arith.constant 28 : index
    %c16_484 = arith.constant 16 : index
    %227 = vector.load %arg11[%c28_483, %c16_484] : memref<64x36xf32, #tpu.memory_space<vmem>>, vector<4x4xf32>
    tpu.vector_store %arg11[%c28_483, %c16_484], %226 {strides = array<i32>} : memref<64x36xf32, #tpu.memory_space<vmem>>, vector<4x4xf32>,
    %c0_485 = arith.constant 0 : index
    %c2_486 = arith.constant 2 : index
    %c15_487 = arith.constant 15 : index
    %c0_488 = arith.constant 0 : index
    %c0_489 = arith.constant 0 : index
    %228 = vector.load %arg1[%c0_485, %c2_486, %c15_487, %c0_488, %c0_489] : memref<1x4x18x5x4xf32, #tpu.memory_space<vmem>>, vector<1x1x1x4x4xf32>
    %229 = vector.shape_cast %228 : vector<1x1x1x4x4xf32> to vector<4x4xf32>
    %c28_490 = arith.constant 28 : index
    %c20_491 = arith.constant 20 : index
    %230 = vector.load %arg11[%c28_490, %c20_491] : memref<64x36xf32, #tpu.memory_space<vmem>>, vector<4x4xf32>
    tpu.vector_store %arg11[%c28_490, %c20_491], %229 {strides = array<i32>} : memref<64x36xf32, #tpu.memory_space<vmem>>, vector<4x4xf32>,
    %c0_492 = arith.constant 0 : index
    %c0_493 = arith.constant 0 : index
    %c16_494 = arith.constant 16 : index
    %c0_495 = arith.constant 0 : index
    %c0_496 = arith.constant 0 : index
    %231 = vector.load %arg1[%c0_492, %c0_493, %c16_494, %c0_495, %c0_496] : memref<1x4x18x5x4xf32, #tpu.memory_space<vmem>>, vector<1x1x1x4x4xf32>
    %232 = vector.shape_cast %231 : vector<1x1x1x4x4xf32> to vector<4x4xf32>
    %c28_497 = arith.constant 28 : index
    %c24_498 = arith.constant 24 : index
    %233 = vector.load %arg11[%c28_497, %c24_498] : memref<64x36xf32, #tpu.memory_space<vmem>>, vector<4x4xf32>
    tpu.vector_store %arg11[%c28_497, %c24_498], %232 {strides = array<i32>} : memref<64x36xf32, #tpu.memory_space<vmem>>, vector<4x4xf32>,
    %c0_499 = arith.constant 0 : index
    %c1_500 = arith.constant 1 : index
    %c16_501 = arith.constant 16 : index
    %c0_502 = arith.constant 0 : index
    %c0_503 = arith.constant 0 : index
    %234 = vector.load %arg1[%c0_499, %c1_500, %c16_501, %c0_502, %c0_503] : memref<1x4x18x5x4xf32, #tpu.memory_space<vmem>>, vector<1x1x1x4x4xf32>
    %235 = vector.shape_cast %234 : vector<1x1x1x4x4xf32> to vector<4x4xf32>
    %c28_504 = arith.constant 28 : index
    %c28_505 = arith.constant 28 : index
    %236 = vector.load %arg11[%c28_504, %c28_505] : memref<64x36xf32, #tpu.memory_space<vmem>>, vector<4x4xf32>
    tpu.vector_store %arg11[%c28_504, %c28_505], %235 {strides = array<i32>} : memref<64x36xf32, #tpu.memory_space<vmem>>, vector<4x4xf32>,
    %c0_506 = arith.constant 0 : index
    %c2_507 = arith.constant 2 : index
    %c16_508 = arith.constant 16 : index
    %c0_509 = arith.constant 0 : index
    %c0_510 = arith.constant 0 : index
    %237 = vector.load %arg1[%c0_506, %c2_507, %c16_508, %c0_509, %c0_510] : memref<1x4x18x5x4xf32, #tpu.memory_space<vmem>>, vector<1x1x1x4x4xf32>
    %238 = vector.shape_cast %237 : vector<1x1x1x4x4xf32> to vector<4x4xf32>
    %c28_511 = arith.constant 28 : index
    %c32_512 = arith.constant 32 : index
    %239 = vector.load %arg11[%c28_511, %c32_512] : memref<64x36xf32, #tpu.memory_space<vmem>>, vector<4x4xf32>
    tpu.vector_store %arg11[%c28_511, %c32_512], %238 {strides = array<i32>} : memref<64x36xf32, #tpu.memory_space<vmem>>, vector<4x4xf32>,
    %c0_513 = arith.constant 0 : index
    %c2_514 = arith.constant 2 : index
    %c0_515 = arith.constant 0 : index
    %c0_516 = arith.constant 0 : index
    %c0_517 = arith.constant 0 : index
    %240 = vector.load %arg1[%c0_513, %c2_514, %c0_515, %c0_516, %c0_517] : memref<1x4x18x5x4xf32, #tpu.memory_space<vmem>>, vector<1x1x1x4x4xf32>
    %241 = vector.shape_cast %240 : vector<1x1x1x4x4xf32> to vector<4x4xf32>
    %c32_518 = arith.constant 32 : index
    %c0_519 = arith.constant 0 : index
    %242 = vector.load %arg11[%c32_518, %c0_519] : memref<64x36xf32, #tpu.memory_space<vmem>>, vector<4x4xf32>
    tpu.vector_store %arg11[%c32_518, %c0_519], %241 {strides = array<i32>} : memref<64x36xf32, #tpu.memory_space<vmem>>, vector<4x4xf32>,
    %c0_520 = arith.constant 0 : index
    %c3_521 = arith.constant 3 : index
    %c0_522 = arith.constant 0 : index
    %c0_523 = arith.constant 0 : index
    %c0_524 = arith.constant 0 : index
    %243 = vector.load %arg1[%c0_520, %c3_521, %c0_522, %c0_523, %c0_524] : memref<1x4x18x5x4xf32, #tpu.memory_space<vmem>>, vector<1x1x1x4x4xf32>
    %244 = vector.shape_cast %243 : vector<1x1x1x4x4xf32> to vector<4x4xf32>
    %c32_525 = arith.constant 32 : index
    %c4_526 = arith.constant 4 : index
    %245 = vector.load %arg11[%c32_525, %c4_526] : memref<64x36xf32, #tpu.memory_space<vmem>>, vector<4x4xf32>
    tpu.vector_store %arg11[%c32_525, %c4_526], %244 {strides = array<i32>} : memref<64x36xf32, #tpu.memory_space<vmem>>, vector<4x4xf32>,
    %c0_527 = arith.constant 0 : index
    %c0_528 = arith.constant 0 : index
    %c0_529 = arith.constant 0 : index
    %c1_530 = arith.constant 1 : index
    %c0_531 = arith.constant 0 : index
    %246 = vector.load %arg1[%c0_527, %c0_528, %c0_529, %c1_530, %c0_531] : memref<1x4x18x5x4xf32, #tpu.memory_space<vmem>>, vector<1x1x1x4x4xf32>
    %247 = vector.shape_cast %246 : vector<1x1x1x4x4xf32> to vector<4x4xf32>
    %c32_532 = arith.constant 32 : index
    %c8_533 = arith.constant 8 : index
    %248 = vector.load %arg11[%c32_532, %c8_533] : memref<64x36xf32, #tpu.memory_space<vmem>>, vector<4x4xf32>
    tpu.vector_store %arg11[%c32_532, %c8_533], %247 {strides = array<i32>} : memref<64x36xf32, #tpu.memory_space<vmem>>, vector<4x4xf32>,
    %c0_534 = arith.constant 0 : index
    %c2_535 = arith.constant 2 : index
    %c1_536 = arith.constant 1 : index
    %c0_537 = arith.constant 0 : index
    %c0_538 = arith.constant 0 : index
    %249 = vector.load %arg1[%c0_534, %c2_535, %c1_536, %c0_537, %c0_538] : memref<1x4x18x5x4xf32, #tpu.memory_space<vmem>>, vector<1x1x1x4x4xf32>
    %250 = vector.shape_cast %249 : vector<1x1x1x4x4xf32> to vector<4x4xf32>
    %c32_539 = arith.constant 32 : index
    %c12_540 = arith.constant 12 : index
    %251 = vector.load %arg11[%c32_539, %c12_540] : memref<64x36xf32, #tpu.memory_space<vmem>>, vector<4x4xf32>
    tpu.vector_store %arg11[%c32_539, %c12_540], %250 {strides = array<i32>} : memref<64x36xf32, #tpu.memory_space<vmem>>, vector<4x4xf32>,
    %c0_541 = arith.constant 0 : index
    %c3_542 = arith.constant 3 : index
    %c1_543 = arith.constant 1 : index
    %c0_544 = arith.constant 0 : index
    %c0_545 = arith.constant 0 : index
    %252 = vector.load %arg1[%c0_541, %c3_542, %c1_543, %c0_544, %c0_545] : memref<1x4x18x5x4xf32, #tpu.memory_space<vmem>>, vector<1x1x1x4x4xf32>
    %253 = vector.shape_cast %252 : vector<1x1x1x4x4xf32> to vector<4x4xf32>
    %c32_546 = arith.constant 32 : index
    %c16_547 = arith.constant 16 : index
    %254 = vector.load %arg11[%c32_546, %c16_547] : memref<64x36xf32, #tpu.memory_space<vmem>>, vector<4x4xf32>
    tpu.vector_store %arg11[%c32_546, %c16_547], %253 {strides = array<i32>} : memref<64x36xf32, #tpu.memory_space<vmem>>, vector<4x4xf32>,
    %c0_548 = arith.constant 0 : index
    %c0_549 = arith.constant 0 : index
    %c1_550 = arith.constant 1 : index
    %c1_551 = arith.constant 1 : index
    %c0_552 = arith.constant 0 : index
    %255 = vector.load %arg1[%c0_548, %c0_549, %c1_550, %c1_551, %c0_552] : memref<1x4x18x5x4xf32, #tpu.memory_space<vmem>>, vector<1x1x1x4x4xf32>
    %256 = vector.shape_cast %255 : vector<1x1x1x4x4xf32> to vector<4x4xf32>
    %c32_553 = arith.constant 32 : index
    %c20_554 = arith.constant 20 : index
    %257 = vector.load %arg11[%c32_553, %c20_554] : memref<64x36xf32, #tpu.memory_space<vmem>>, vector<4x4xf32>
    tpu.vector_store %arg11[%c32_553, %c20_554], %256 {strides = array<i32>} : memref<64x36xf32, #tpu.memory_space<vmem>>, vector<4x4xf32>,
    %c0_555 = arith.constant 0 : index
    %c2_556 = arith.constant 2 : index
    %c2_557 = arith.constant 2 : index
    %c0_558 = arith.constant 0 : index
    %c0_559 = arith.constant 0 : index
    %258 = vector.load %arg1[%c0_555, %c2_556, %c2_557, %c0_558, %c0_559] : memref<1x4x18x5x4xf32, #tpu.memory_space<vmem>>, vector<1x1x1x4x4xf32>
    %259 = vector.shape_cast %258 : vector<1x1x1x4x4xf32> to vector<4x4xf32>
    %c32_560 = arith.constant 32 : index
    %c24_561 = arith.constant 24 : index
    %260 = vector.load %arg11[%c32_560, %c24_561] : memref<64x36xf32, #tpu.memory_space<vmem>>, vector<4x4xf32>
    tpu.vector_store %arg11[%c32_560, %c24_561], %259 {strides = array<i32>} : memref<64x36xf32, #tpu.memory_space<vmem>>, vector<4x4xf32>,
    %c0_562 = arith.constant 0 : index
    %c3_563 = arith.constant 3 : index
    %c2_564 = arith.constant 2 : index
    %c0_565 = arith.constant 0 : index
    %c0_566 = arith.constant 0 : index
    %261 = vector.load %arg1[%c0_562, %c3_563, %c2_564, %c0_565, %c0_566] : memref<1x4x18x5x4xf32, #tpu.memory_space<vmem>>, vector<1x1x1x4x4xf32>
    %262 = vector.shape_cast %261 : vector<1x1x1x4x4xf32> to vector<4x4xf32>
    %c32_567 = arith.constant 32 : index
    %c28_568 = arith.constant 28 : index
    %263 = vector.load %arg11[%c32_567, %c28_568] : memref<64x36xf32, #tpu.memory_space<vmem>>, vector<4x4xf32>
    tpu.vector_store %arg11[%c32_567, %c28_568], %262 {strides = array<i32>} : memref<64x36xf32, #tpu.memory_space<vmem>>, vector<4x4xf32>,
    %c0_569 = arith.constant 0 : index
    %c0_570 = arith.constant 0 : index
    %c2_571 = arith.constant 2 : index
    %c1_572 = arith.constant 1 : index
    %c0_573 = arith.constant 0 : index
    %264 = vector.load %arg1[%c0_569, %c0_570, %c2_571, %c1_572, %c0_573] : memref<1x4x18x5x4xf32, #tpu.memory_space<vmem>>, vector<1x1x1x4x4xf32>
    %265 = vector.shape_cast %264 : vector<1x1x1x4x4xf32> to vector<4x4xf32>
    %c32_574 = arith.constant 32 : index
    %c32_575 = arith.constant 32 : index
    %266 = vector.load %arg11[%c32_574, %c32_575] : memref<64x36xf32, #tpu.memory_space<vmem>>, vector<4x4xf32>
    tpu.vector_store %arg11[%c32_574, %c32_575], %265 {strides = array<i32>} : memref<64x36xf32, #tpu.memory_space<vmem>>, vector<4x4xf32>,
    %c0_576 = arith.constant 0 : index
    %c2_577 = arith.constant 2 : index
    %c2_578 = arith.constant 2 : index
    %c0_579 = arith.constant 0 : index
    %c0_580 = arith.constant 0 : index
    %267 = vector.load %arg1[%c0_576, %c2_577, %c2_578, %c0_579, %c0_580] : memref<1x4x18x5x4xf32, #tpu.memory_space<vmem>>, vector<1x1x1x4x4xf32>
    %268 = vector.shape_cast %267 : vector<1x1x1x4x4xf32> to vector<4x4xf32>
    %c36 = arith.constant 36 : index
    %c0_581 = arith.constant 0 : index
    %269 = vector.load %arg11[%c36, %c0_581] : memref<64x36xf32, #tpu.memory_space<vmem>>, vector<4x4xf32>
    tpu.vector_store %arg11[%c36, %c0_581], %268 {strides = array<i32>} : memref<64x36xf32, #tpu.memory_space<vmem>>, vector<4x4xf32>,
    %c0_582 = arith.constant 0 : index
    %c3_583 = arith.constant 3 : index
    %c2_584 = arith.constant 2 : index
    %c0_585 = arith.constant 0 : index
    %c0_586 = arith.constant 0 : index
    %270 = vector.load %arg1[%c0_582, %c3_583, %c2_584, %c0_585, %c0_586] : memref<1x4x18x5x4xf32, #tpu.memory_space<vmem>>, vector<1x1x1x4x4xf32>
    %271 = vector.shape_cast %270 : vector<1x1x1x4x4xf32> to vector<4x4xf32>
    %c36_587 = arith.constant 36 : index
    %c4_588 = arith.constant 4 : index
    %272 = vector.load %arg11[%c36_587, %c4_588] : memref<64x36xf32, #tpu.memory_space<vmem>>, vector<4x4xf32>
    tpu.vector_store %arg11[%c36_587, %c4_588], %271 {strides = array<i32>} : memref<64x36xf32, #tpu.memory_space<vmem>>, vector<4x4xf32>,
    %c0_589 = arith.constant 0 : index
    %c0_590 = arith.constant 0 : index
    %c2_591 = arith.constant 2 : index
    %c1_592 = arith.constant 1 : index
    %c0_593 = arith.constant 0 : index
    %273 = vector.load %arg1[%c0_589, %c0_590, %c2_591, %c1_592, %c0_593] : memref<1x4x18x5x4xf32, #tpu.memory_space<vmem>>, vector<1x1x1x4x4xf32>
    %274 = vector.shape_cast %273 : vector<1x1x1x4x4xf32> to vector<4x4xf32>
    %c36_594 = arith.constant 36 : index
    %c8_595 = arith.constant 8 : index
    %275 = vector.load %arg11[%c36_594, %c8_595] : memref<64x36xf32, #tpu.memory_space<vmem>>, vector<4x4xf32>
    tpu.vector_store %arg11[%c36_594, %c8_595], %274 {strides = array<i32>} : memref<64x36xf32, #tpu.memory_space<vmem>>, vector<4x4xf32>,
    %c0_596 = arith.constant 0 : index
    %c2_597 = arith.constant 2 : index
    %c3_598 = arith.constant 3 : index
    %c0_599 = arith.constant 0 : index
    %c0_600 = arith.constant 0 : index
    %276 = vector.load %arg1[%c0_596, %c2_597, %c3_598, %c0_599, %c0_600] : memref<1x4x18x5x4xf32, #tpu.memory_space<vmem>>, vector<1x1x1x4x4xf32>
    %277 = vector.shape_cast %276 : vector<1x1x1x4x4xf32> to vector<4x4xf32>
    %c36_601 = arith.constant 36 : index
    %c12_602 = arith.constant 12 : index
    %278 = vector.load %arg11[%c36_601, %c12_602] : memref<64x36xf32, #tpu.memory_space<vmem>>, vector<4x4xf32>
    tpu.vector_store %arg11[%c36_601, %c12_602], %277 {strides = array<i32>} : memref<64x36xf32, #tpu.memory_space<vmem>>, vector<4x4xf32>,
    %c0_603 = arith.constant 0 : index
    %c3_604 = arith.constant 3 : index
    %c3_605 = arith.constant 3 : index
    %c0_606 = arith.constant 0 : index
    %c0_607 = arith.constant 0 : index
    %279 = vector.load %arg1[%c0_603, %c3_604, %c3_605, %c0_606, %c0_607] : memref<1x4x18x5x4xf32, #tpu.memory_space<vmem>>, vector<1x1x1x4x4xf32>
    %280 = vector.shape_cast %279 : vector<1x1x1x4x4xf32> to vector<4x4xf32>
    %c36_608 = arith.constant 36 : index
    %c16_609 = arith.constant 16 : index
    %281 = vector.load %arg11[%c36_608, %c16_609] : memref<64x36xf32, #tpu.memory_space<vmem>>, vector<4x4xf32>
    tpu.vector_store %arg11[%c36_608, %c16_609], %280 {strides = array<i32>} : memref<64x36xf32, #tpu.memory_space<vmem>>, vector<4x4xf32>,
    %c0_610 = arith.constant 0 : index
    %c0_611 = arith.constant 0 : index
    %c3_612 = arith.constant 3 : index
    %c1_613 = arith.constant 1 : index
    %c0_614 = arith.constant 0 : index
    %282 = vector.load %arg1[%c0_610, %c0_611, %c3_612, %c1_613, %c0_614] : memref<1x4x18x5x4xf32, #tpu.memory_space<vmem>>, vector<1x1x1x4x4xf32>
    %283 = vector.shape_cast %282 : vector<1x1x1x4x4xf32> to vector<4x4xf32>
    %c36_615 = arith.constant 36 : index
    %c20_616 = arith.constant 20 : index
    %284 = vector.load %arg11[%c36_615, %c20_616] : memref<64x36xf32, #tpu.memory_space<vmem>>, vector<4x4xf32>
    tpu.vector_store %arg11[%c36_615, %c20_616], %283 {strides = array<i32>} : memref<64x36xf32, #tpu.memory_space<vmem>>, vector<4x4xf32>,
    %c0_617 = arith.constant 0 : index
    %c2_618 = arith.constant 2 : index
    %c4_619 = arith.constant 4 : index
    %c0_620 = arith.constant 0 : index
    %c0_621 = arith.constant 0 : index
    %285 = vector.load %arg1[%c0_617, %c2_618, %c4_619, %c0_620, %c0_621] : memref<1x4x18x5x4xf32, #tpu.memory_space<vmem>>, vector<1x1x1x4x4xf32>
    %286 = vector.shape_cast %285 : vector<1x1x1x4x4xf32> to vector<4x4xf32>
    %c36_622 = arith.constant 36 : index
    %c24_623 = arith.constant 24 : index
    %287 = vector.load %arg11[%c36_622, %c24_623] : memref<64x36xf32, #tpu.memory_space<vmem>>, vector<4x4xf32>
    tpu.vector_store %arg11[%c36_622, %c24_623], %286 {strides = array<i32>} : memref<64x36xf32, #tpu.memory_space<vmem>>, vector<4x4xf32>,
    %c0_624 = arith.constant 0 : index
    %c3_625 = arith.constant 3 : index
    %c4_626 = arith.constant 4 : index
    %c0_627 = arith.constant 0 : index
    %c0_628 = arith.constant 0 : index
    %288 = vector.load %arg1[%c0_624, %c3_625, %c4_626, %c0_627, %c0_628] : memref<1x4x18x5x4xf32, #tpu.memory_space<vmem>>, vector<1x1x1x4x4xf32>
    %289 = vector.shape_cast %288 : vector<1x1x1x4x4xf32> to vector<4x4xf32>
    %c36_629 = arith.constant 36 : index
    %c28_630 = arith.constant 28 : index
    %290 = vector.load %arg11[%c36_629, %c28_630] : memref<64x36xf32, #tpu.memory_space<vmem>>, vector<4x4xf32>
    tpu.vector_store %arg11[%c36_629, %c28_630], %289 {strides = array<i32>} : memref<64x36xf32, #tpu.memory_space<vmem>>, vector<4x4xf32>,
    %c0_631 = arith.constant 0 : index
    %c0_632 = arith.constant 0 : index
    %c4_633 = arith.constant 4 : index
    %c1_634 = arith.constant 1 : index
    %c0_635 = arith.constant 0 : index
    %291 = vector.load %arg1[%c0_631, %c0_632, %c4_633, %c1_634, %c0_635] : memref<1x4x18x5x4xf32, #tpu.memory_space<vmem>>, vector<1x1x1x4x4xf32>
    %292 = vector.shape_cast %291 : vector<1x1x1x4x4xf32> to vector<4x4xf32>
    %c36_636 = arith.constant 36 : index
    %c32_637 = arith.constant 32 : index
    %293 = vector.load %arg11[%c36_636, %c32_637] : memref<64x36xf32, #tpu.memory_space<vmem>>, vector<4x4xf32>
    tpu.vector_store %arg11[%c36_636, %c32_637], %292 {strides = array<i32>} : memref<64x36xf32, #tpu.memory_space<vmem>>, vector<4x4xf32>,
    %c0_638 = arith.constant 0 : index
    %c2_639 = arith.constant 2 : index
    %c4_640 = arith.constant 4 : index
    %c0_641 = arith.constant 0 : index
    %c0_642 = arith.constant 0 : index
    %294 = vector.load %arg1[%c0_638, %c2_639, %c4_640, %c0_641, %c0_642] : memref<1x4x18x5x4xf32, #tpu.memory_space<vmem>>, vector<1x1x1x4x4xf32>
    %295 = vector.shape_cast %294 : vector<1x1x1x4x4xf32> to vector<4x4xf32>
    %c40 = arith.constant 40 : index
    %c0_643 = arith.constant 0 : index
    %296 = vector.load %arg11[%c40, %c0_643] : memref<64x36xf32, #tpu.memory_space<vmem>>, vector<4x4xf32>
    tpu.vector_store %arg11[%c40, %c0_643], %295 {strides = array<i32>} : memref<64x36xf32, #tpu.memory_space<vmem>>, vector<4x4xf32>,
    %c0_644 = arith.constant 0 : index
    %c3_645 = arith.constant 3 : index
    %c4_646 = arith.constant 4 : index
    %c0_647 = arith.constant 0 : index
    %c0_648 = arith.constant 0 : index
    %297 = vector.load %arg1[%c0_644, %c3_645, %c4_646, %c0_647, %c0_648] : memref<1x4x18x5x4xf32, #tpu.memory_space<vmem>>, vector<1x1x1x4x4xf32>
    %298 = vector.shape_cast %297 : vector<1x1x1x4x4xf32> to vector<4x4xf32>
    %c40_649 = arith.constant 40 : index
    %c4_650 = arith.constant 4 : index
    %299 = vector.load %arg11[%c40_649, %c4_650] : memref<64x36xf32, #tpu.memory_space<vmem>>, vector<4x4xf32>
    tpu.vector_store %arg11[%c40_649, %c4_650], %298 {strides = array<i32>} : memref<64x36xf32, #tpu.memory_space<vmem>>, vector<4x4xf32>,
    %c0_651 = arith.constant 0 : index
    %c0_652 = arith.constant 0 : index
    %c4_653 = arith.constant 4 : index
    %c1_654 = arith.constant 1 : index
    %c0_655 = arith.constant 0 : index
    %300 = vector.load %arg1[%c0_651, %c0_652, %c4_653, %c1_654, %c0_655] : memref<1x4x18x5x4xf32, #tpu.memory_space<vmem>>, vector<1x1x1x4x4xf32>
    %301 = vector.shape_cast %300 : vector<1x1x1x4x4xf32> to vector<4x4xf32>
    %c40_656 = arith.constant 40 : index
    %c8_657 = arith.constant 8 : index
    %302 = vector.load %arg11[%c40_656, %c8_657] : memref<64x36xf32, #tpu.memory_space<vmem>>, vector<4x4xf32>
    tpu.vector_store %arg11[%c40_656, %c8_657], %301 {strides = array<i32>} : memref<64x36xf32, #tpu.memory_space<vmem>>, vector<4x4xf32>,
    %c0_658 = arith.constant 0 : index
    %c2_659 = arith.constant 2 : index
    %c5_660 = arith.constant 5 : index
    %c0_661 = arith.constant 0 : index
    %c0_662 = arith.constant 0 : index
    %303 = vector.load %arg1[%c0_658, %c2_659, %c5_660, %c0_661, %c0_662] : memref<1x4x18x5x4xf32, #tpu.memory_space<vmem>>, vector<1x1x1x4x4xf32>
    %304 = vector.shape_cast %303 : vector<1x1x1x4x4xf32> to vector<4x4xf32>
    %c40_663 = arith.constant 40 : index
    %c12_664 = arith.constant 12 : index
    %305 = vector.load %arg11[%c40_663, %c12_664] : memref<64x36xf32, #tpu.memory_space<vmem>>, vector<4x4xf32>
    tpu.vector_store %arg11[%c40_663, %c12_664], %304 {strides = array<i32>} : memref<64x36xf32, #tpu.memory_space<vmem>>, vector<4x4xf32>,
    %c0_665 = arith.constant 0 : index
    %c3_666 = arith.constant 3 : index
    %c5_667 = arith.constant 5 : index
    %c0_668 = arith.constant 0 : index
    %c0_669 = arith.constant 0 : index
    %306 = vector.load %arg1[%c0_665, %c3_666, %c5_667, %c0_668, %c0_669] : memref<1x4x18x5x4xf32, #tpu.memory_space<vmem>>, vector<1x1x1x4x4xf32>
    %307 = vector.shape_cast %306 : vector<1x1x1x4x4xf32> to vector<4x4xf32>
    %c40_670 = arith.constant 40 : index
    %c16_671 = arith.constant 16 : index
    %308 = vector.load %arg11[%c40_670, %c16_671] : memref<64x36xf32, #tpu.memory_space<vmem>>, vector<4x4xf32>
    tpu.vector_store %arg11[%c40_670, %c16_671], %307 {strides = array<i32>} : memref<64x36xf32, #tpu.memory_space<vmem>>, vector<4x4xf32>,
    %c0_672 = arith.constant 0 : index
    %c0_673 = arith.constant 0 : index
    %c5_674 = arith.constant 5 : index
    %c1_675 = arith.constant 1 : index
    %c0_676 = arith.constant 0 : index
    %309 = vector.load %arg1[%c0_672, %c0_673, %c5_674, %c1_675, %c0_676] : memref<1x4x18x5x4xf32, #tpu.memory_space<vmem>>, vector<1x1x1x4x4xf32>
    %310 = vector.shape_cast %309 : vector<1x1x1x4x4xf32> to vector<4x4xf32>
    %c40_677 = arith.constant 40 : index
    %c20_678 = arith.constant 20 : index
    %311 = vector.load %arg11[%c40_677, %c20_678] : memref<64x36xf32, #tpu.memory_space<vmem>>, vector<4x4xf32>
    tpu.vector_store %arg11[%c40_677, %c20_678], %310 {strides = array<i32>} : memref<64x36xf32, #tpu.memory_space<vmem>>, vector<4x4xf32>,
    %c0_679 = arith.constant 0 : index
    %c2_680 = arith.constant 2 : index
    %c6_681 = arith.constant 6 : index
    %c0_682 = arith.constant 0 : index
    %c0_683 = arith.constant 0 : index
    %312 = vector.load %arg1[%c0_679, %c2_680, %c6_681, %c0_682, %c0_683] : memref<1x4x18x5x4xf32, #tpu.memory_space<vmem>>, vector<1x1x1x4x4xf32>
    %313 = vector.shape_cast %312 : vector<1x1x1x4x4xf32> to vector<4x4xf32>
    %c40_684 = arith.constant 40 : index
    %c24_685 = arith.constant 24 : index
    %314 = vector.load %arg11[%c40_684, %c24_685] : memref<64x36xf32, #tpu.memory_space<vmem>>, vector<4x4xf32>
    tpu.vector_store %arg11[%c40_684, %c24_685], %313 {strides = array<i32>} : memref<64x36xf32, #tpu.memory_space<vmem>>, vector<4x4xf32>,
    %c0_686 = arith.constant 0 : index
    %c3_687 = arith.constant 3 : index
    %c6_688 = arith.constant 6 : index
    %c0_689 = arith.constant 0 : index
    %c0_690 = arith.constant 0 : index
    %315 = vector.load %arg1[%c0_686, %c3_687, %c6_688, %c0_689, %c0_690] : memref<1x4x18x5x4xf32, #tpu.memory_space<vmem>>, vector<1x1x1x4x4xf32>
    %316 = vector.shape_cast %315 : vector<1x1x1x4x4xf32> to vector<4x4xf32>
    %c40_691 = arith.constant 40 : index
    %c28_692 = arith.constant 28 : index
    %317 = vector.load %arg11[%c40_691, %c28_692] : memref<64x36xf32, #tpu.memory_space<vmem>>, vector<4x4xf32>
    tpu.vector_store %arg11[%c40_691, %c28_692], %316 {strides = array<i32>} : memref<64x36xf32, #tpu.memory_space<vmem>>, vector<4x4xf32>,
    %c0_693 = arith.constant 0 : index
    %c0_694 = arith.constant 0 : index
    %c6_695 = arith.constant 6 : index
    %c1_696 = arith.constant 1 : index
    %c0_697 = arith.constant 0 : index
    %318 = vector.load %arg1[%c0_693, %c0_694, %c6_695, %c1_696, %c0_697] : memref<1x4x18x5x4xf32, #tpu.memory_space<vmem>>, vector<1x1x1x4x4xf32>
    %319 = vector.shape_cast %318 : vector<1x1x1x4x4xf32> to vector<4x4xf32>
    %c40_698 = arith.constant 40 : index
    %c32_699 = arith.constant 32 : index
    %320 = vector.load %arg11[%c40_698, %c32_699] : memref<64x36xf32, #tpu.memory_space<vmem>>, vector<4x4xf32>
    tpu.vector_store %arg11[%c40_698, %c32_699], %319 {strides = array<i32>} : memref<64x36xf32, #tpu.memory_space<vmem>>, vector<4x4xf32>,
    %c0_700 = arith.constant 0 : index
    %c2_701 = arith.constant 2 : index
    %c6_702 = arith.constant 6 : index
    %c0_703 = arith.constant 0 : index
    %c0_704 = arith.constant 0 : index
    %321 = vector.load %arg1[%c0_700, %c2_701, %c6_702, %c0_703, %c0_704] : memref<1x4x18x5x4xf32, #tpu.memory_space<vmem>>, vector<1x1x1x4x4xf32>
    %322 = vector.shape_cast %321 : vector<1x1x1x4x4xf32> to vector<4x4xf32>
    %c44 = arith.constant 44 : index
    %c0_705 = arith.constant 0 : index
    %323 = vector.load %arg11[%c44, %c0_705] : memref<64x36xf32, #tpu.memory_space<vmem>>, vector<4x4xf32>
    tpu.vector_store %arg11[%c44, %c0_705], %322 {strides = array<i32>} : memref<64x36xf32, #tpu.memory_space<vmem>>, vector<4x4xf32>,
    %c0_706 = arith.constant 0 : index
    %c3_707 = arith.constant 3 : index
    %c6_708 = arith.constant 6 : index
    %c0_709 = arith.constant 0 : index
    %c0_710 = arith.constant 0 : index
    %324 = vector.load %arg1[%c0_706, %c3_707, %c6_708, %c0_709, %c0_710] : memref<1x4x18x5x4xf32, #tpu.memory_space<vmem>>, vector<1x1x1x4x4xf32>
    %325 = vector.shape_cast %324 : vector<1x1x1x4x4xf32> to vector<4x4xf32>
    %c44_711 = arith.constant 44 : index
    %c4_712 = arith.constant 4 : index
    %326 = vector.load %arg11[%c44_711, %c4_712] : memref<64x36xf32, #tpu.memory_space<vmem>>, vector<4x4xf32>
    tpu.vector_store %arg11[%c44_711, %c4_712], %325 {strides = array<i32>} : memref<64x36xf32, #tpu.memory_space<vmem>>, vector<4x4xf32>,
    %c0_713 = arith.constant 0 : index
    %c0_714 = arith.constant 0 : index
    %c6_715 = arith.constant 6 : index
    %c1_716 = arith.constant 1 : index
    %c0_717 = arith.constant 0 : index
    %327 = vector.load %arg1[%c0_713, %c0_714, %c6_715, %c1_716, %c0_717] : memref<1x4x18x5x4xf32, #tpu.memory_space<vmem>>, vector<1x1x1x4x4xf32>
    %328 = vector.shape_cast %327 : vector<1x1x1x4x4xf32> to vector<4x4xf32>
    %c44_718 = arith.constant 44 : index
    %c8_719 = arith.constant 8 : index
    %329 = vector.load %arg11[%c44_718, %c8_719] : memref<64x36xf32, #tpu.memory_space<vmem>>, vector<4x4xf32>
    tpu.vector_store %arg11[%c44_718, %c8_719], %328 {strides = array<i32>} : memref<64x36xf32, #tpu.memory_space<vmem>>, vector<4x4xf32>,
    %c0_720 = arith.constant 0 : index
    %c2_721 = arith.constant 2 : index
    %c7_722 = arith.constant 7 : index
    %c0_723 = arith.constant 0 : index
    %c0_724 = arith.constant 0 : index
    %330 = vector.load %arg1[%c0_720, %c2_721, %c7_722, %c0_723, %c0_724] : memref<1x4x18x5x4xf32, #tpu.memory_space<vmem>>, vector<1x1x1x4x4xf32>
    %331 = vector.shape_cast %330 : vector<1x1x1x4x4xf32> to vector<4x4xf32>
    %c44_725 = arith.constant 44 : index
    %c12_726 = arith.constant 12 : index
    %332 = vector.load %arg11[%c44_725, %c12_726] : memref<64x36xf32, #tpu.memory_space<vmem>>, vector<4x4xf32>
    tpu.vector_store %arg11[%c44_725, %c12_726], %331 {strides = array<i32>} : memref<64x36xf32, #tpu.memory_space<vmem>>, vector<4x4xf32>,
    %c0_727 = arith.constant 0 : index
    %c3_728 = arith.constant 3 : index
    %c7_729 = arith.constant 7 : index
    %c0_730 = arith.constant 0 : index
    %c0_731 = arith.constant 0 : index
    %333 = vector.load %arg1[%c0_727, %c3_728, %c7_729, %c0_730, %c0_731] : memref<1x4x18x5x4xf32, #tpu.memory_space<vmem>>, vector<1x1x1x4x4xf32>
    %334 = vector.shape_cast %333 : vector<1x1x1x4x4xf32> to vector<4x4xf32>
    %c44_732 = arith.constant 44 : index
    %c16_733 = arith.constant 16 : index
    %335 = vector.load %arg11[%c44_732, %c16_733] : memref<64x36xf32, #tpu.memory_space<vmem>>, vector<4x4xf32>
    tpu.vector_store %arg11[%c44_732, %c16_733], %334 {strides = array<i32>} : memref<64x36xf32, #tpu.memory_space<vmem>>, vector<4x4xf32>,
    %c0_734 = arith.constant 0 : index
    %c0_735 = arith.constant 0 : index
    %c7_736 = arith.constant 7 : index
    %c1_737 = arith.constant 1 : index
    %c0_738 = arith.constant 0 : index
    %336 = vector.load %arg1[%c0_734, %c0_735, %c7_736, %c1_737, %c0_738] : memref<1x4x18x5x4xf32, #tpu.memory_space<vmem>>, vector<1x1x1x4x4xf32>
    %337 = vector.shape_cast %336 : vector<1x1x1x4x4xf32> to vector<4x4xf32>
    %c44_739 = arith.constant 44 : index
    %c20_740 = arith.constant 20 : index
    %338 = vector.load %arg11[%c44_739, %c20_740] : memref<64x36xf32, #tpu.memory_space<vmem>>, vector<4x4xf32>
    tpu.vector_store %arg11[%c44_739, %c20_740], %337 {strides = array<i32>} : memref<64x36xf32, #tpu.memory_space<vmem>>, vector<4x4xf32>,
    %c0_741 = arith.constant 0 : index
    %c2_742 = arith.constant 2 : index
    %c8_743 = arith.constant 8 : index
    %c0_744 = arith.constant 0 : index
    %c0_745 = arith.constant 0 : index
    %339 = vector.load %arg1[%c0_741, %c2_742, %c8_743, %c0_744, %c0_745] : memref<1x4x18x5x4xf32, #tpu.memory_space<vmem>>, vector<1x1x1x4x4xf32>
    %340 = vector.shape_cast %339 : vector<1x1x1x4x4xf32> to vector<4x4xf32>
    %c44_746 = arith.constant 44 : index
    %c24_747 = arith.constant 24 : index
    %341 = vector.load %arg11[%c44_746, %c24_747] : memref<64x36xf32, #tpu.memory_space<vmem>>, vector<4x4xf32>
    tpu.vector_store %arg11[%c44_746, %c24_747], %340 {strides = array<i32>} : memref<64x36xf32, #tpu.memory_space<vmem>>, vector<4x4xf32>,
    %c0_748 = arith.constant 0 : index
    %c3_749 = arith.constant 3 : index
    %c8_750 = arith.constant 8 : index
    %c0_751 = arith.constant 0 : index
    %c0_752 = arith.constant 0 : index
    %342 = vector.load %arg1[%c0_748, %c3_749, %c8_750, %c0_751, %c0_752] : memref<1x4x18x5x4xf32, #tpu.memory_space<vmem>>, vector<1x1x1x4x4xf32>
    %343 = vector.shape_cast %342 : vector<1x1x1x4x4xf32> to vector<4x4xf32>
    %c44_753 = arith.constant 44 : index
    %c28_754 = arith.constant 28 : index
    %344 = vector.load %arg11[%c44_753, %c28_754] : memref<64x36xf32, #tpu.memory_space<vmem>>, vector<4x4xf32>
    tpu.vector_store %arg11[%c44_753, %c28_754], %343 {strides = array<i32>} : memref<64x36xf32, #tpu.memory_space<vmem>>, vector<4x4xf32>,
    %c0_755 = arith.constant 0 : index
    %c0_756 = arith.constant 0 : index
    %c8_757 = arith.constant 8 : index
    %c1_758 = arith.constant 1 : index
    %c0_759 = arith.constant 0 : index
    %345 = vector.load %arg1[%c0_755, %c0_756, %c8_757, %c1_758, %c0_759] : memref<1x4x18x5x4xf32, #tpu.memory_space<vmem>>, vector<1x1x1x4x4xf32>
    %346 = vector.shape_cast %345 : vector<1x1x1x4x4xf32> to vector<4x4xf32>
    %c44_760 = arith.constant 44 : index
    %c32_761 = arith.constant 32 : index
    %347 = vector.load %arg11[%c44_760, %c32_761] : memref<64x36xf32, #tpu.memory_space<vmem>>, vector<4x4xf32>
    tpu.vector_store %arg11[%c44_760, %c32_761], %346 {strides = array<i32>} : memref<64x36xf32, #tpu.memory_space<vmem>>, vector<4x4xf32>,
    %c0_762 = arith.constant 0 : index
    %c2_763 = arith.constant 2 : index
    %c8_764 = arith.constant 8 : index
    %c0_765 = arith.constant 0 : index
    %c0_766 = arith.constant 0 : index
    %348 = vector.load %arg1[%c0_762, %c2_763, %c8_764, %c0_765, %c0_766] : memref<1x4x18x5x4xf32, #tpu.memory_space<vmem>>, vector<1x1x1x4x4xf32>
    %349 = vector.shape_cast %348 : vector<1x1x1x4x4xf32> to vector<4x4xf32>
    %c48 = arith.constant 48 : index
    %c0_767 = arith.constant 0 : index
    %350 = vector.load %arg11[%c48, %c0_767] : memref<64x36xf32, #tpu.memory_space<vmem>>, vector<4x4xf32>
    tpu.vector_store %arg11[%c48, %c0_767], %349 {strides = array<i32>} : memref<64x36xf32, #tpu.memory_space<vmem>>, vector<4x4xf32>,
    %c0_768 = arith.constant 0 : index
    %c3_769 = arith.constant 3 : index
    %c8_770 = arith.constant 8 : index
    %c0_771 = arith.constant 0 : index
    %c0_772 = arith.constant 0 : index
    %351 = vector.load %arg1[%c0_768, %c3_769, %c8_770, %c0_771, %c0_772] : memref<1x4x18x5x4xf32, #tpu.memory_space<vmem>>, vector<1x1x1x4x4xf32>
    %352 = vector.shape_cast %351 : vector<1x1x1x4x4xf32> to vector<4x4xf32>
    %c48_773 = arith.constant 48 : index
    %c4_774 = arith.constant 4 : index
    %353 = vector.load %arg11[%c48_773, %c4_774] : memref<64x36xf32, #tpu.memory_space<vmem>>, vector<4x4xf32>
    tpu.vector_store %arg11[%c48_773, %c4_774], %352 {strides = array<i32>} : memref<64x36xf32, #tpu.memory_space<vmem>>, vector<4x4xf32>,
    %c0_775 = arith.constant 0 : index
    %c0_776 = arith.constant 0 : index
    %c8_777 = arith.constant 8 : index
    %c1_778 = arith.constant 1 : index
    %c0_779 = arith.constant 0 : index
    %354 = vector.load %arg1[%c0_775, %c0_776, %c8_777, %c1_778, %c0_779] : memref<1x4x18x5x4xf32, #tpu.memory_space<vmem>>, vector<1x1x1x4x4xf32>
    %355 = vector.shape_cast %354 : vector<1x1x1x4x4xf32> to vector<4x4xf32>
    %c48_780 = arith.constant 48 : index
    %c8_781 = arith.constant 8 : index
    %356 = vector.load %arg11[%c48_780, %c8_781] : memref<64x36xf32, #tpu.memory_space<vmem>>, vector<4x4xf32>
    tpu.vector_store %arg11[%c48_780, %c8_781], %355 {strides = array<i32>} : memref<64x36xf32, #tpu.memory_space<vmem>>, vector<4x4xf32>,
    %c0_782 = arith.constant 0 : index
    %c2_783 = arith.constant 2 : index
    %c9_784 = arith.constant 9 : index
    %c0_785 = arith.constant 0 : index
    %c0_786 = arith.constant 0 : index
    %357 = vector.load %arg1[%c0_782, %c2_783, %c9_784, %c0_785, %c0_786] : memref<1x4x18x5x4xf32, #tpu.memory_space<vmem>>, vector<1x1x1x4x4xf32>
    %358 = vector.shape_cast %357 : vector<1x1x1x4x4xf32> to vector<4x4xf32>
    %c48_787 = arith.constant 48 : index
    %c12_788 = arith.constant 12 : index
    %359 = vector.load %arg11[%c48_787, %c12_788] : memref<64x36xf32, #tpu.memory_space<vmem>>, vector<4x4xf32>
    tpu.vector_store %arg11[%c48_787, %c12_788], %358 {strides = array<i32>} : memref<64x36xf32, #tpu.memory_space<vmem>>, vector<4x4xf32>,
    %c0_789 = arith.constant 0 : index
    %c3_790 = arith.constant 3 : index
    %c9_791 = arith.constant 9 : index
    %c0_792 = arith.constant 0 : index
    %c0_793 = arith.constant 0 : index
    %360 = vector.load %arg1[%c0_789, %c3_790, %c9_791, %c0_792, %c0_793] : memref<1x4x18x5x4xf32, #tpu.memory_space<vmem>>, vector<1x1x1x4x4xf32>
    %361 = vector.shape_cast %360 : vector<1x1x1x4x4xf32> to vector<4x4xf32>
    %c48_794 = arith.constant 48 : index
    %c16_795 = arith.constant 16 : index
    %362 = vector.load %arg11[%c48_794, %c16_795] : memref<64x36xf32, #tpu.memory_space<vmem>>, vector<4x4xf32>
    tpu.vector_store %arg11[%c48_794, %c16_795], %361 {strides = array<i32>} : memref<64x36xf32, #tpu.memory_space<vmem>>, vector<4x4xf32>,
    %c0_796 = arith.constant 0 : index
    %c0_797 = arith.constant 0 : index
    %c9_798 = arith.constant 9 : index
    %c1_799 = arith.constant 1 : index
    %c0_800 = arith.constant 0 : index
    %363 = vector.load %arg1[%c0_796, %c0_797, %c9_798, %c1_799, %c0_800] : memref<1x4x18x5x4xf32, #tpu.memory_space<vmem>>, vector<1x1x1x4x4xf32>
    %364 = vector.shape_cast %363 : vector<1x1x1x4x4xf32> to vector<4x4xf32>
    %c48_801 = arith.constant 48 : index
    %c20_802 = arith.constant 20 : index
    %365 = vector.load %arg11[%c48_801, %c20_802] : memref<64x36xf32, #tpu.memory_space<vmem>>, vector<4x4xf32>
    tpu.vector_store %arg11[%c48_801, %c20_802], %364 {strides = array<i32>} : memref<64x36xf32, #tpu.memory_space<vmem>>, vector<4x4xf32>,
    %c0_803 = arith.constant 0 : index
    %c2_804 = arith.constant 2 : index
    %c10_805 = arith.constant 10 : index
    %c0_806 = arith.constant 0 : index
    %c0_807 = arith.constant 0 : index
    %366 = vector.load %arg1[%c0_803, %c2_804, %c10_805, %c0_806, %c0_807] : memref<1x4x18x5x4xf32, #tpu.memory_space<vmem>>, vector<1x1x1x4x4xf32>
    %367 = vector.shape_cast %366 : vector<1x1x1x4x4xf32> to vector<4x4xf32>
    %c48_808 = arith.constant 48 : index
    %c24_809 = arith.constant 24 : index
    %368 = vector.load %arg11[%c48_808, %c24_809] : memref<64x36xf32, #tpu.memory_space<vmem>>, vector<4x4xf32>
    tpu.vector_store %arg11[%c48_808, %c24_809], %367 {strides = array<i32>} : memref<64x36xf32, #tpu.memory_space<vmem>>, vector<4x4xf32>,
    %c0_810 = arith.constant 0 : index
    %c3_811 = arith.constant 3 : index
    %c10_812 = arith.constant 10 : index
    %c0_813 = arith.constant 0 : index
    %c0_814 = arith.constant 0 : index
    %369 = vector.load %arg1[%c0_810, %c3_811, %c10_812, %c0_813, %c0_814] : memref<1x4x18x5x4xf32, #tpu.memory_space<vmem>>, vector<1x1x1x4x4xf32>
    %370 = vector.shape_cast %369 : vector<1x1x1x4x4xf32> to vector<4x4xf32>
    %c48_815 = arith.constant 48 : index
    %c28_816 = arith.constant 28 : index
    %371 = vector.load %arg11[%c48_815, %c28_816] : memref<64x36xf32, #tpu.memory_space<vmem>>, vector<4x4xf32>
    tpu.vector_store %arg11[%c48_815, %c28_816], %370 {strides = array<i32>} : memref<64x36xf32, #tpu.memory_space<vmem>>, vector<4x4xf32>,
    %c0_817 = arith.constant 0 : index
    %c0_818 = arith.constant 0 : index
    %c10_819 = arith.constant 10 : index
    %c1_820 = arith.constant 1 : index
    %c0_821 = arith.constant 0 : index
    %372 = vector.load %arg1[%c0_817, %c0_818, %c10_819, %c1_820, %c0_821] : memref<1x4x18x5x4xf32, #tpu.memory_space<vmem>>, vector<1x1x1x4x4xf32>
    %373 = vector.shape_cast %372 : vector<1x1x1x4x4xf32> to vector<4x4xf32>
    %c48_822 = arith.constant 48 : index
    %c32_823 = arith.constant 32 : index
    %374 = vector.load %arg11[%c48_822, %c32_823] : memref<64x36xf32, #tpu.memory_space<vmem>>, vector<4x4xf32>
    tpu.vector_store %arg11[%c48_822, %c32_823], %373 {strides = array<i32>} : memref<64x36xf32, #tpu.memory_space<vmem>>, vector<4x4xf32>,
    %c0_824 = arith.constant 0 : index
    %c2_825 = arith.constant 2 : index
    %c10_826 = arith.constant 10 : index
    %c0_827 = arith.constant 0 : index
    %c0_828 = arith.constant 0 : index
    %375 = vector.load %arg1[%c0_824, %c2_825, %c10_826, %c0_827, %c0_828] : memref<1x4x18x5x4xf32, #tpu.memory_space<vmem>>, vector<1x1x1x4x4xf32>
    %376 = vector.shape_cast %375 : vector<1x1x1x4x4xf32> to vector<4x4xf32>
    %c52 = arith.constant 52 : index
    %c0_829 = arith.constant 0 : index
    %377 = vector.load %arg11[%c52, %c0_829] : memref<64x36xf32, #tpu.memory_space<vmem>>, vector<4x4xf32>
    tpu.vector_store %arg11[%c52, %c0_829], %376 {strides = array<i32>} : memref<64x36xf32, #tpu.memory_space<vmem>>, vector<4x4xf32>,
    %c0_830 = arith.constant 0 : index
    %c3_831 = arith.constant 3 : index
    %c10_832 = arith.constant 10 : index
    %c0_833 = arith.constant 0 : index
    %c0_834 = arith.constant 0 : index
    %378 = vector.load %arg1[%c0_830, %c3_831, %c10_832, %c0_833, %c0_834] : memref<1x4x18x5x4xf32, #tpu.memory_space<vmem>>, vector<1x1x1x4x4xf32>
    %379 = vector.shape_cast %378 : vector<1x1x1x4x4xf32> to vector<4x4xf32>
    %c52_835 = arith.constant 52 : index
    %c4_836 = arith.constant 4 : index
    %380 = vector.load %arg11[%c52_835, %c4_836] : memref<64x36xf32, #tpu.memory_space<vmem>>, vector<4x4xf32>
    tpu.vector_store %arg11[%c52_835, %c4_836], %379 {strides = array<i32>} : memref<64x36xf32, #tpu.memory_space<vmem>>, vector<4x4xf32>,
    %c0_837 = arith.constant 0 : index
    %c0_838 = arith.constant 0 : index
    %c10_839 = arith.constant 10 : index
    %c1_840 = arith.constant 1 : index
    %c0_841 = arith.constant 0 : index
    %381 = vector.load %arg1[%c0_837, %c0_838, %c10_839, %c1_840, %c0_841] : memref<1x4x18x5x4xf32, #tpu.memory_space<vmem>>, vector<1x1x1x4x4xf32>
    %382 = vector.shape_cast %381 : vector<1x1x1x4x4xf32> to vector<4x4xf32>
    %c52_842 = arith.constant 52 : index
    %c8_843 = arith.constant 8 : index
    %383 = vector.load %arg11[%c52_842, %c8_843] : memref<64x36xf32, #tpu.memory_space<vmem>>, vector<4x4xf32>
    tpu.vector_store %arg11[%c52_842, %c8_843], %382 {strides = array<i32>} : memref<64x36xf32, #tpu.memory_space<vmem>>, vector<4x4xf32>,
    %c0_844 = arith.constant 0 : index
    %c2_845 = arith.constant 2 : index
    %c11_846 = arith.constant 11 : index
    %c0_847 = arith.constant 0 : index
    %c0_848 = arith.constant 0 : index
    %384 = vector.load %arg1[%c0_844, %c2_845, %c11_846, %c0_847, %c0_848] : memref<1x4x18x5x4xf32, #tpu.memory_space<vmem>>, vector<1x1x1x4x4xf32>
    %385 = vector.shape_cast %384 : vector<1x1x1x4x4xf32> to vector<4x4xf32>
    %c52_849 = arith.constant 52 : index
    %c12_850 = arith.constant 12 : index
    %386 = vector.load %arg11[%c52_849, %c12_850] : memref<64x36xf32, #tpu.memory_space<vmem>>, vector<4x4xf32>
    tpu.vector_store %arg11[%c52_849, %c12_850], %385 {strides = array<i32>} : memref<64x36xf32, #tpu.memory_space<vmem>>, vector<4x4xf32>,
    %c0_851 = arith.constant 0 : index
    %c3_852 = arith.constant 3 : index
    %c11_853 = arith.constant 11 : index
    %c0_854 = arith.constant 0 : index
    %c0_855 = arith.constant 0 : index
    %387 = vector.load %arg1[%c0_851, %c3_852, %c11_853, %c0_854, %c0_855] : memref<1x4x18x5x4xf32, #tpu.memory_space<vmem>>, vector<1x1x1x4x4xf32>
    %388 = vector.shape_cast %387 : vector<1x1x1x4x4xf32> to vector<4x4xf32>
    %c52_856 = arith.constant 52 : index
    %c16_857 = arith.constant 16 : index
    %389 = vector.load %arg11[%c52_856, %c16_857] : memref<64x36xf32, #tpu.memory_space<vmem>>, vector<4x4xf32>
    tpu.vector_store %arg11[%c52_856, %c16_857], %388 {strides = array<i32>} : memref<64x36xf32, #tpu.memory_space<vmem>>, vector<4x4xf32>,
    %c0_858 = arith.constant 0 : index
    %c0_859 = arith.constant 0 : index
    %c11_860 = arith.constant 11 : index
    %c1_861 = arith.constant 1 : index
    %c0_862 = arith.constant 0 : index
    %390 = vector.load %arg1[%c0_858, %c0_859, %c11_860, %c1_861, %c0_862] : memref<1x4x18x5x4xf32, #tpu.memory_space<vmem>>, vector<1x1x1x4x4xf32>
    %391 = vector.shape_cast %390 : vector<1x1x1x4x4xf32> to vector<4x4xf32>
    %c52_863 = arith.constant 52 : index
    %c20_864 = arith.constant 20 : index
    %392 = vector.load %arg11[%c52_863, %c20_864] : memref<64x36xf32, #tpu.memory_space<vmem>>, vector<4x4xf32>
    tpu.vector_store %arg11[%c52_863, %c20_864], %391 {strides = array<i32>} : memref<64x36xf32, #tpu.memory_space<vmem>>, vector<4x4xf32>,
    %c0_865 = arith.constant 0 : index
    %c2_866 = arith.constant 2 : index
    %c12_867 = arith.constant 12 : index
    %c0_868 = arith.constant 0 : index
    %c0_869 = arith.constant 0 : index
    %393 = vector.load %arg1[%c0_865, %c2_866, %c12_867, %c0_868, %c0_869] : memref<1x4x18x5x4xf32, #tpu.memory_space<vmem>>, vector<1x1x1x4x4xf32>
    %394 = vector.shape_cast %393 : vector<1x1x1x4x4xf32> to vector<4x4xf32>
    %c52_870 = arith.constant 52 : index
    %c24_871 = arith.constant 24 : index
    %395 = vector.load %arg11[%c52_870, %c24_871] : memref<64x36xf32, #tpu.memory_space<vmem>>, vector<4x4xf32>
    tpu.vector_store %arg11[%c52_870, %c24_871], %394 {strides = array<i32>} : memref<64x36xf32, #tpu.memory_space<vmem>>, vector<4x4xf32>,
    %c0_872 = arith.constant 0 : index
    %c3_873 = arith.constant 3 : index
    %c12_874 = arith.constant 12 : index
    %c0_875 = arith.constant 0 : index
    %c0_876 = arith.constant 0 : index
    %396 = vector.load %arg1[%c0_872, %c3_873, %c12_874, %c0_875, %c0_876] : memref<1x4x18x5x4xf32, #tpu.memory_space<vmem>>, vector<1x1x1x4x4xf32>
    %397 = vector.shape_cast %396 : vector<1x1x1x4x4xf32> to vector<4x4xf32>
    %c52_877 = arith.constant 52 : index
    %c28_878 = arith.constant 28 : index
    %398 = vector.load %arg11[%c52_877, %c28_878] : memref<64x36xf32, #tpu.memory_space<vmem>>, vector<4x4xf32>
    tpu.vector_store %arg11[%c52_877, %c28_878], %397 {strides = array<i32>} : memref<64x36xf32, #tpu.memory_space<vmem>>, vector<4x4xf32>,
    %c0_879 = arith.constant 0 : index
    %c0_880 = arith.constant 0 : index
    %c12_881 = arith.constant 12 : index
    %c1_882 = arith.constant 1 : index
    %c0_883 = arith.constant 0 : index
    %399 = vector.load %arg1[%c0_879, %c0_880, %c12_881, %c1_882, %c0_883] : memref<1x4x18x5x4xf32, #tpu.memory_space<vmem>>, vector<1x1x1x4x4xf32>
    %400 = vector.shape_cast %399 : vector<1x1x1x4x4xf32> to vector<4x4xf32>
    %c52_884 = arith.constant 52 : index
    %c32_885 = arith.constant 32 : index
    %401 = vector.load %arg11[%c52_884, %c32_885] : memref<64x36xf32, #tpu.memory_space<vmem>>, vector<4x4xf32>
    tpu.vector_store %arg11[%c52_884, %c32_885], %400 {strides = array<i32>} : memref<64x36xf32, #tpu.memory_space<vmem>>, vector<4x4xf32>,
    %c0_886 = arith.constant 0 : index
    %c2_887 = arith.constant 2 : index
    %c12_888 = arith.constant 12 : index
    %c0_889 = arith.constant 0 : index
    %c0_890 = arith.constant 0 : index
    %402 = vector.load %arg1[%c0_886, %c2_887, %c12_888, %c0_889, %c0_890] : memref<1x4x18x5x4xf32, #tpu.memory_space<vmem>>, vector<1x1x1x4x4xf32>
    %403 = vector.shape_cast %402 : vector<1x1x1x4x4xf32> to vector<4x4xf32>
    %c56 = arith.constant 56 : index
    %c0_891 = arith.constant 0 : index
    %404 = vector.load %arg11[%c56, %c0_891] : memref<64x36xf32, #tpu.memory_space<vmem>>, vector<4x4xf32>
    tpu.vector_store %arg11[%c56, %c0_891], %403 {strides = array<i32>} : memref<64x36xf32, #tpu.memory_space<vmem>>, vector<4x4xf32>,
    %c0_892 = arith.constant 0 : index
    %c3_893 = arith.constant 3 : index
    %c12_894 = arith.constant 12 : index
    %c0_895 = arith.constant 0 : index
    %c0_896 = arith.constant 0 : index
    %405 = vector.load %arg1[%c0_892, %c3_893, %c12_894, %c0_895, %c0_896] : memref<1x4x18x5x4xf32, #tpu.memory_space<vmem>>, vector<1x1x1x4x4xf32>
    %406 = vector.shape_cast %405 : vector<1x1x1x4x4xf32> to vector<4x4xf32>
    %c56_897 = arith.constant 56 : index
    %c4_898 = arith.constant 4 : index
    %407 = vector.load %arg11[%c56_897, %c4_898] : memref<64x36xf32, #tpu.memory_space<vmem>>, vector<4x4xf32>
    tpu.vector_store %arg11[%c56_897, %c4_898], %406 {strides = array<i32>} : memref<64x36xf32, #tpu.memory_space<vmem>>, vector<4x4xf32>,
    %c0_899 = arith.constant 0 : index
    %c0_900 = arith.constant 0 : index
    %c12_901 = arith.constant 12 : index
    %c1_902 = arith.constant 1 : index
    %c0_903 = arith.constant 0 : index
    %408 = vector.load %arg1[%c0_899, %c0_900, %c12_901, %c1_902, %c0_903] : memref<1x4x18x5x4xf32, #tpu.memory_space<vmem>>, vector<1x1x1x4x4xf32>
    %409 = vector.shape_cast %408 : vector<1x1x1x4x4xf32> to vector<4x4xf32>
    %c56_904 = arith.constant 56 : index
    %c8_905 = arith.constant 8 : index
    %410 = vector.load %arg11[%c56_904, %c8_905] : memref<64x36xf32, #tpu.memory_space<vmem>>, vector<4x4xf32>
    tpu.vector_store %arg11[%c56_904, %c8_905], %409 {strides = array<i32>} : memref<64x36xf32, #tpu.memory_space<vmem>>, vector<4x4xf32>,
    %c0_906 = arith.constant 0 : index
    %c2_907 = arith.constant 2 : index
    %c13_908 = arith.constant 13 : index
    %c0_909 = arith.constant 0 : index
    %c0_910 = arith.constant 0 : index
    %411 = vector.load %arg1[%c0_906, %c2_907, %c13_908, %c0_909, %c0_910] : memref<1x4x18x5x4xf32, #tpu.memory_space<vmem>>, vector<1x1x1x4x4xf32>
    %412 = vector.shape_cast %411 : vector<1x1x1x4x4xf32> to vector<4x4xf32>
    %c56_911 = arith.constant 56 : index
    %c12_912 = arith.constant 12 : index
    %413 = vector.load %arg11[%c56_911, %c12_912] : memref<64x36xf32, #tpu.memory_space<vmem>>, vector<4x4xf32>
    tpu.vector_store %arg11[%c56_911, %c12_912], %412 {strides = array<i32>} : memref<64x36xf32, #tpu.memory_space<vmem>>, vector<4x4xf32>,
    %c0_913 = arith.constant 0 : index
    %c3_914 = arith.constant 3 : index
    %c13_915 = arith.constant 13 : index
    %c0_916 = arith.constant 0 : index
    %c0_917 = arith.constant 0 : index
    %414 = vector.load %arg1[%c0_913, %c3_914, %c13_915, %c0_916, %c0_917] : memref<1x4x18x5x4xf32, #tpu.memory_space<vmem>>, vector<1x1x1x4x4xf32>
    %415 = vector.shape_cast %414 : vector<1x1x1x4x4xf32> to vector<4x4xf32>
    %c56_918 = arith.constant 56 : index
    %c16_919 = arith.constant 16 : index
    %416 = vector.load %arg11[%c56_918, %c16_919] : memref<64x36xf32, #tpu.memory_space<vmem>>, vector<4x4xf32>
    tpu.vector_store %arg11[%c56_918, %c16_919], %415 {strides = array<i32>} : memref<64x36xf32, #tpu.memory_space<vmem>>, vector<4x4xf32>,
    %c0_920 = arith.constant 0 : index
    %c0_921 = arith.constant 0 : index
    %c13_922 = arith.constant 13 : index
    %c1_923 = arith.constant 1 : index
    %c0_924 = arith.constant 0 : index
    %417 = vector.load %arg1[%c0_920, %c0_921, %c13_922, %c1_923, %c0_924] : memref<1x4x18x5x4xf32, #tpu.memory_space<vmem>>, vector<1x1x1x4x4xf32>
    %418 = vector.shape_cast %417 : vector<1x1x1x4x4xf32> to vector<4x4xf32>
    %c56_925 = arith.constant 56 : index
    %c20_926 = arith.constant 20 : index
    %419 = vector.load %arg11[%c56_925, %c20_926] : memref<64x36xf32, #tpu.memory_space<vmem>>, vector<4x4xf32>
    tpu.vector_store %arg11[%c56_925, %c20_926], %418 {strides = array<i32>} : memref<64x36xf32, #tpu.memory_space<vmem>>, vector<4x4xf32>,
    %c0_927 = arith.constant 0 : index
    %c2_928 = arith.constant 2 : index
    %c14_929 = arith.constant 14 : index
    %c0_930 = arith.constant 0 : index
    %c0_931 = arith.constant 0 : index
    %420 = vector.load %arg1[%c0_927, %c2_928, %c14_929, %c0_930, %c0_931] : memref<1x4x18x5x4xf32, #tpu.memory_space<vmem>>, vector<1x1x1x4x4xf32>
    %421 = vector.shape_cast %420 : vector<1x1x1x4x4xf32> to vector<4x4xf32>
    %c56_932 = arith.constant 56 : index
    %c24_933 = arith.constant 24 : index
    %422 = vector.load %arg11[%c56_932, %c24_933] : memref<64x36xf32, #tpu.memory_space<vmem>>, vector<4x4xf32>
    tpu.vector_store %arg11[%c56_932, %c24_933], %421 {strides = array<i32>} : memref<64x36xf32, #tpu.memory_space<vmem>>, vector<4x4xf32>,
    %c0_934 = arith.constant 0 : index
    %c3_935 = arith.constant 3 : index
    %c14_936 = arith.constant 14 : index
    %c0_937 = arith.constant 0 : index
    %c0_938 = arith.constant 0 : index
    %423 = vector.load %arg1[%c0_934, %c3_935, %c14_936, %c0_937, %c0_938] : memref<1x4x18x5x4xf32, #tpu.memory_space<vmem>>, vector<1x1x1x4x4xf32>
    %424 = vector.shape_cast %423 : vector<1x1x1x4x4xf32> to vector<4x4xf32>
    %c56_939 = arith.constant 56 : index
    %c28_940 = arith.constant 28 : index
    %425 = vector.load %arg11[%c56_939, %c28_940] : memref<64x36xf32, #tpu.memory_space<vmem>>, vector<4x4xf32>
    tpu.vector_store %arg11[%c56_939, %c28_940], %424 {strides = array<i32>} : memref<64x36xf32, #tpu.memory_space<vmem>>, vector<4x4xf32>,
    %c0_941 = arith.constant 0 : index
    %c0_942 = arith.constant 0 : index
    %c14_943 = arith.constant 14 : index
    %c1_944 = arith.constant 1 : index
    %c0_945 = arith.constant 0 : index
    %426 = vector.load %arg1[%c0_941, %c0_942, %c14_943, %c1_944, %c0_945] : memref<1x4x18x5x4xf32, #tpu.memory_space<vmem>>, vector<1x1x1x4x4xf32>
    %427 = vector.shape_cast %426 : vector<1x1x1x4x4xf32> to vector<4x4xf32>
    %c56_946 = arith.constant 56 : index
    %c32_947 = arith.constant 32 : index
    %428 = vector.load %arg11[%c56_946, %c32_947] : memref<64x36xf32, #tpu.memory_space<vmem>>, vector<4x4xf32>
    tpu.vector_store %arg11[%c56_946, %c32_947], %427 {strides = array<i32>} : memref<64x36xf32, #tpu.memory_space<vmem>>, vector<4x4xf32>,
    %c0_948 = arith.constant 0 : index
    %c2_949 = arith.constant 2 : index
    %c14_950 = arith.constant 14 : index
    %c0_951 = arith.constant 0 : index
    %c0_952 = arith.constant 0 : index
    %429 = vector.load %arg1[%c0_948, %c2_949, %c14_950, %c0_951, %c0_952] : memref<1x4x18x5x4xf32, #tpu.memory_space<vmem>>, vector<1x1x1x4x4xf32>
    %430 = vector.shape_cast %429 : vector<1x1x1x4x4xf32> to vector<4x4xf32>
    %c60 = arith.constant 60 : index
    %c0_953 = arith.constant 0 : index
    %431 = vector.load %arg11[%c60, %c0_953] : memref<64x36xf32, #tpu.memory_space<vmem>>, vector<4x4xf32>
    tpu.vector_store %arg11[%c60, %c0_953], %430 {strides = array<i32>} : memref<64x36xf32, #tpu.memory_space<vmem>>, vector<4x4xf32>,
    %c0_954 = arith.constant 0 : index
    %c3_955 = arith.constant 3 : index
    %c14_956 = arith.constant 14 : index
    %c0_957 = arith.constant 0 : index
    %c0_958 = arith.constant 0 : index
    %432 = vector.load %arg1[%c0_954, %c3_955, %c14_956, %c0_957, %c0_958] : memref<1x4x18x5x4xf32, #tpu.memory_space<vmem>>, vector<1x1x1x4x4xf32>
    %433 = vector.shape_cast %432 : vector<1x1x1x4x4xf32> to vector<4x4xf32>
    %c60_959 = arith.constant 60 : index
    %c4_960 = arith.constant 4 : index
    %434 = vector.load %arg11[%c60_959, %c4_960] : memref<64x36xf32, #tpu.memory_space<vmem>>, vector<4x4xf32>
    tpu.vector_store %arg11[%c60_959, %c4_960], %433 {strides = array<i32>} : memref<64x36xf32, #tpu.memory_space<vmem>>, vector<4x4xf32>,
    %c0_961 = arith.constant 0 : index
    %c0_962 = arith.constant 0 : index
    %c14_963 = arith.constant 14 : index
    %c1_964 = arith.constant 1 : index
    %c0_965 = arith.constant 0 : index
    %435 = vector.load %arg1[%c0_961, %c0_962, %c14_963, %c1_964, %c0_965] : memref<1x4x18x5x4xf32, #tpu.memory_space<vmem>>, vector<1x1x1x4x4xf32>
    %436 = vector.shape_cast %435 : vector<1x1x1x4x4xf32> to vector<4x4xf32>
    %c60_966 = arith.constant 60 : index
    %c8_967 = arith.constant 8 : index
    %437 = vector.load %arg11[%c60_966, %c8_967] : memref<64x36xf32, #tpu.memory_space<vmem>>, vector<4x4xf32>
    tpu.vector_store %arg11[%c60_966, %c8_967], %436 {strides = array<i32>} : memref<64x36xf32, #tpu.memory_space<vmem>>, vector<4x4xf32>,
    %c0_968 = arith.constant 0 : index
    %c2_969 = arith.constant 2 : index
    %c15_970 = arith.constant 15 : index
    %c0_971 = arith.constant 0 : index
    %c0_972 = arith.constant 0 : index
    %438 = vector.load %arg1[%c0_968, %c2_969, %c15_970, %c0_971, %c0_972] : memref<1x4x18x5x4xf32, #tpu.memory_space<vmem>>, vector<1x1x1x4x4xf32>
    %439 = vector.shape_cast %438 : vector<1x1x1x4x4xf32> to vector<4x4xf32>
    %c60_973 = arith.constant 60 : index
    %c12_974 = arith.constant 12 : index
    %440 = vector.load %arg11[%c60_973, %c12_974] : memref<64x36xf32, #tpu.memory_space<vmem>>, vector<4x4xf32>
    tpu.vector_store %arg11[%c60_973, %c12_974], %439 {strides = array<i32>} : memref<64x36xf32, #tpu.memory_space<vmem>>, vector<4x4xf32>,
    %c0_975 = arith.constant 0 : index
    %c3_976 = arith.constant 3 : index
    %c15_977 = arith.constant 15 : index
    %c0_978 = arith.constant 0 : index
    %c0_979 = arith.constant 0 : index
    %441 = vector.load %arg1[%c0_975, %c3_976, %c15_977, %c0_978, %c0_979] : memref<1x4x18x5x4xf32, #tpu.memory_space<vmem>>, vector<1x1x1x4x4xf32>
    %442 = vector.shape_cast %441 : vector<1x1x1x4x4xf32> to vector<4x4xf32>
    %c60_980 = arith.constant 60 : index
    %c16_981 = arith.constant 16 : index
    %443 = vector.load %arg11[%c60_980, %c16_981] : memref<64x36xf32, #tpu.memory_space<vmem>>, vector<4x4xf32>
    tpu.vector_store %arg11[%c60_980, %c16_981], %442 {strides = array<i32>} : memref<64x36xf32, #tpu.memory_space<vmem>>, vector<4x4xf32>,
    %c0_982 = arith.constant 0 : index
    %c0_983 = arith.constant 0 : index
    %c15_984 = arith.constant 15 : index
    %c1_985 = arith.constant 1 : index
    %c0_986 = arith.constant 0 : index
    %444 = vector.load %arg1[%c0_982, %c0_983, %c15_984, %c1_985, %c0_986] : memref<1x4x18x5x4xf32, #tpu.memory_space<vmem>>, vector<1x1x1x4x4xf32>
    %445 = vector.shape_cast %444 : vector<1x1x1x4x4xf32> to vector<4x4xf32>
    %c60_987 = arith.constant 60 : index
    %c20_988 = arith.constant 20 : index
    %446 = vector.load %arg11[%c60_987, %c20_988] : memref<64x36xf32, #tpu.memory_space<vmem>>, vector<4x4xf32>
    tpu.vector_store %arg11[%c60_987, %c20_988], %445 {strides = array<i32>} : memref<64x36xf32, #tpu.memory_space<vmem>>, vector<4x4xf32>,
    %c0_989 = arith.constant 0 : index
    %c2_990 = arith.constant 2 : index
    %c16_991 = arith.constant 16 : index
    %c0_992 = arith.constant 0 : index
    %c0_993 = arith.constant 0 : index
    %447 = vector.load %arg1[%c0_989, %c2_990, %c16_991, %c0_992, %c0_993] : memref<1x4x18x5x4xf32, #tpu.memory_space<vmem>>, vector<1x1x1x4x4xf32>
    %448 = vector.shape_cast %447 : vector<1x1x1x4x4xf32> to vector<4x4xf32>
    %c60_994 = arith.constant 60 : index
    %c24_995 = arith.constant 24 : index
    %449 = vector.load %arg11[%c60_994, %c24_995] : memref<64x36xf32, #tpu.memory_space<vmem>>, vector<4x4xf32>
    tpu.vector_store %arg11[%c60_994, %c24_995], %448 {strides = array<i32>} : memref<64x36xf32, #tpu.memory_space<vmem>>, vector<4x4xf32>,
    %c0_996 = arith.constant 0 : index
    %c3_997 = arith.constant 3 : index
    %c16_998 = arith.constant 16 : index
    %c0_999 = arith.constant 0 : index
    %c0_1000 = arith.constant 0 : index
    %450 = vector.load %arg1[%c0_996, %c3_997, %c16_998, %c0_999, %c0_1000] : memref<1x4x18x5x4xf32, #tpu.memory_space<vmem>>, vector<1x1x1x4x4xf32>
    %451 = vector.shape_cast %450 : vector<1x1x1x4x4xf32> to vector<4x4xf32>
    %c60_1001 = arith.constant 60 : index
    %c28_1002 = arith.constant 28 : index
    %452 = vector.load %arg11[%c60_1001, %c28_1002] : memref<64x36xf32, #tpu.memory_space<vmem>>, vector<4x4xf32>
    tpu.vector_store %arg11[%c60_1001, %c28_1002], %451 {strides = array<i32>} : memref<64x36xf32, #tpu.memory_space<vmem>>, vector<4x4xf32>,
    %c0_1003 = arith.constant 0 : index
    %c0_1004 = arith.constant 0 : index
    %c16_1005 = arith.constant 16 : index
    %c1_1006 = arith.constant 1 : index
    %c0_1007 = arith.constant 0 : index
    %453 = vector.load %arg1[%c0_1003, %c0_1004, %c16_1005, %c1_1006, %c0_1007] : memref<1x4x18x5x4xf32, #tpu.memory_space<vmem>>, vector<1x1x1x4x4xf32>
    %454 = vector.shape_cast %453 : vector<1x1x1x4x4xf32> to vector<4x4xf32>
    %c60_1008 = arith.constant 60 : index
    %c32_1009 = arith.constant 32 : index
    %455 = vector.load %arg11[%c60_1008, %c32_1009] : memref<64x36xf32, #tpu.memory_space<vmem>>, vector<4x4xf32>
    tpu.vector_store %arg11[%c60_1008, %c32_1009], %454 {strides = array<i32>} : memref<64x36xf32, #tpu.memory_space<vmem>>, vector<4x4xf32>,
    %c0_1010 = arith.constant 0 : index
    %c0_1011 = arith.constant 0 : index
    %456 = vector.load %arg11[%c0_1010, %c0_1011] : memref<64x36xf32, #tpu.memory_space<vmem>>, vector<64x36xf32>
    %457 = arith.truncf %456 : vector<64x36xf32> to vector<64x36xbf16>
    %c0_1012 = arith.constant 0 : index
    %c0_1013 = arith.constant 0 : index
    %458 = vector.load %arg2[%c0_1012, %c0_1013] : memref<36x16xbf16, #tpu.memory_space<vmem>>, vector<36x16xbf16>
    %cst_1014 = arith.constant dense<0.000000e+00> : vector<64x16xf32>
    %459 = tpu.matmul %457, %458, %cst_1014 {dimension_numbers = #tpu.dot_dimension_numbers<[1], [0], [0], [1], [0, 0, 1, 1], [], []>} : vector<64x36xbf16>, vector<36x16xbf16>, vector<64x16xf32> -> vector<64x16xf32>
    %c0_1015 = arith.constant 0 : index
    %c0_1016 = arith.constant 0 : index
    %460 = vector.load %arg5[%c0_1015, %c0_1016] : memref<1x16xf32, #tpu.memory_space<vmem>>, vector<1x16xf32>
    %461 = vector.broadcast %460 : vector<1x16xf32> to vector<64x16xf32>
    %462 = arith.addf %459, %461 : vector<64x16xf32>
    %cst_1017 = arith.constant 0.000000e+00 : f32
    %463 = vector.broadcast %cst_1017 : f32 to vector<64x16xf32>
    %464 = arith.maximumf %462, %463 : vector<64x16xf32>
    %465 = vector.extract_strided_slice %464 {offsets = [0, 0], sizes = [4, 16], strides = [1, 1]} : vector<64x16xf32> to vector<4x16xf32>
    %c1_1018 = arith.constant 1 : index
    %c1_1019 = arith.constant 1 : index
    %c0_1020 = arith.constant 0 : index
    %c0_1021 = arith.constant 0 : index
    %466 = vector.load %arg9[%c1_1018, %c1_1019, %c0_1020, %c0_1021] : memref<2x10x5x16xf32, #tpu.memory_space<vmem>>, vector<1x1x4x16xf32>
    %467 = vector.shape_cast %466 : vector<1x1x4x16xf32> to vector<4x16xf32>
    %468 = vector.shape_cast %465 : vector<4x16xf32> to vector<1x1x4x16xf32>
    tpu.vector_store %arg9[%c1_1018, %c1_1019, %c0_1020, %c0_1021], %468 {strides = array<i32>} : memref<2x10x5x16xf32, #tpu.memory_space<vmem>>, vector<1x1x4x16xf32>,
    %469 = vector.extract_strided_slice %464 {offsets = [4, 0], sizes = [4, 16], strides = [1, 1]} : vector<64x16xf32> to vector<4x16xf32>
    %c1_1022 = arith.constant 1 : index
    %c2_1023 = arith.constant 2 : index
    %c0_1024 = arith.constant 0 : index
    %c0_1025 = arith.constant 0 : index
    %470 = vector.load %arg9[%c1_1022, %c2_1023, %c0_1024, %c0_1025] : memref<2x10x5x16xf32, #tpu.memory_space<vmem>>, vector<1x1x4x16xf32>
    %471 = vector.shape_cast %470 : vector<1x1x4x16xf32> to vector<4x16xf32>
    %472 = vector.shape_cast %469 : vector<4x16xf32> to vector<1x1x4x16xf32>
    tpu.vector_store %arg9[%c1_1022, %c2_1023, %c0_1024, %c0_1025], %472 {strides = array<i32>} : memref<2x10x5x16xf32, #tpu.memory_space<vmem>>, vector<1x1x4x16xf32>,
    %473 = vector.extract_strided_slice %464 {offsets = [8, 0], sizes = [4, 16], strides = [1, 1]} : vector<64x16xf32> to vector<4x16xf32>
    %c1_1026 = arith.constant 1 : index
    %c3_1027 = arith.constant 3 : index
    %c0_1028 = arith.constant 0 : index
    %c0_1029 = arith.constant 0 : index
    %474 = vector.load %arg9[%c1_1026, %c3_1027, %c0_1028, %c0_1029] : memref<2x10x5x16xf32, #tpu.memory_space<vmem>>, vector<1x1x4x16xf32>
    %475 = vector.shape_cast %474 : vector<1x1x4x16xf32> to vector<4x16xf32>
    %476 = vector.shape_cast %473 : vector<4x16xf32> to vector<1x1x4x16xf32>
    tpu.vector_store %arg9[%c1_1026, %c3_1027, %c0_1028, %c0_1029], %476 {strides = array<i32>} : memref<2x10x5x16xf32, #tpu.memory_space<vmem>>, vector<1x1x4x16xf32>,
    %477 = vector.extract_strided_slice %464 {offsets = [12, 0], sizes = [4, 16], strides = [1, 1]} : vector<64x16xf32> to vector<4x16xf32>
    %c1_1030 = arith.constant 1 : index
    %c4_1031 = arith.constant 4 : index
    %c0_1032 = arith.constant 0 : index
    %c0_1033 = arith.constant 0 : index
    %478 = vector.load %arg9[%c1_1030, %c4_1031, %c0_1032, %c0_1033] : memref<2x10x5x16xf32, #tpu.memory_space<vmem>>, vector<1x1x4x16xf32>
    %479 = vector.shape_cast %478 : vector<1x1x4x16xf32> to vector<4x16xf32>
    %480 = vector.shape_cast %477 : vector<4x16xf32> to vector<1x1x4x16xf32>
    tpu.vector_store %arg9[%c1_1030, %c4_1031, %c0_1032, %c0_1033], %480 {strides = array<i32>} : memref<2x10x5x16xf32, #tpu.memory_space<vmem>>, vector<1x1x4x16xf32>,
    %481 = vector.extract_strided_slice %464 {offsets = [16, 0], sizes = [4, 16], strides = [1, 1]} : vector<64x16xf32> to vector<4x16xf32>
    %c1_1034 = arith.constant 1 : index
    %c5_1035 = arith.constant 5 : index
    %c0_1036 = arith.constant 0 : index
    %c0_1037 = arith.constant 0 : index
    %482 = vector.load %arg9[%c1_1034, %c5_1035, %c0_1036, %c0_1037] : memref<2x10x5x16xf32, #tpu.memory_space<vmem>>, vector<1x1x4x16xf32>
    %483 = vector.shape_cast %482 : vector<1x1x4x16xf32> to vector<4x16xf32>
    %484 = vector.shape_cast %481 : vector<4x16xf32> to vector<1x1x4x16xf32>
    tpu.vector_store %arg9[%c1_1034, %c5_1035, %c0_1036, %c0_1037], %484 {strides = array<i32>} : memref<2x10x5x16xf32, #tpu.memory_space<vmem>>, vector<1x1x4x16xf32>,
    %485 = vector.extract_strided_slice %464 {offsets = [20, 0], sizes = [4, 16], strides = [1, 1]} : vector<64x16xf32> to vector<4x16xf32>
    %c1_1038 = arith.constant 1 : index
    %c6_1039 = arith.constant 6 : index
    %c0_1040 = arith.constant 0 : index
    %c0_1041 = arith.constant 0 : index
    %486 = vector.load %arg9[%c1_1038, %c6_1039, %c0_1040, %c0_1041] : memref<2x10x5x16xf32, #tpu.memory_space<vmem>>, vector<1x1x4x16xf32>
    %487 = vector.shape_cast %486 : vector<1x1x4x16xf32> to vector<4x16xf32>
    %488 = vector.shape_cast %485 : vector<4x16xf32> to vector<1x1x4x16xf32>
    tpu.vector_store %arg9[%c1_1038, %c6_1039, %c0_1040, %c0_1041], %488 {strides = array<i32>} : memref<2x10x5x16xf32, #tpu.memory_space<vmem>>, vector<1x1x4x16xf32>,
    %489 = vector.extract_strided_slice %464 {offsets = [24, 0], sizes = [4, 16], strides = [1, 1]} : vector<64x16xf32> to vector<4x16xf32>
    %c1_1042 = arith.constant 1 : index
    %c7_1043 = arith.constant 7 : index
    %c0_1044 = arith.constant 0 : index
    %c0_1045 = arith.constant 0 : index
    %490 = vector.load %arg9[%c1_1042, %c7_1043, %c0_1044, %c0_1045] : memref<2x10x5x16xf32, #tpu.memory_space<vmem>>, vector<1x1x4x16xf32>
    %491 = vector.shape_cast %490 : vector<1x1x4x16xf32> to vector<4x16xf32>
    %492 = vector.shape_cast %489 : vector<4x16xf32> to vector<1x1x4x16xf32>
    tpu.vector_store %arg9[%c1_1042, %c7_1043, %c0_1044, %c0_1045], %492 {strides = array<i32>} : memref<2x10x5x16xf32, #tpu.memory_space<vmem>>, vector<1x1x4x16xf32>,
    %493 = vector.extract_strided_slice %464 {offsets = [28, 0], sizes = [4, 16], strides = [1, 1]} : vector<64x16xf32> to vector<4x16xf32>
    %c1_1046 = arith.constant 1 : index
    %c8_1047 = arith.constant 8 : index
    %c0_1048 = arith.constant 0 : index
    %c0_1049 = arith.constant 0 : index
    %494 = vector.load %arg9[%c1_1046, %c8_1047, %c0_1048, %c0_1049] : memref<2x10x5x16xf32, #tpu.memory_space<vmem>>, vector<1x1x4x16xf32>
    %495 = vector.shape_cast %494 : vector<1x1x4x16xf32> to vector<4x16xf32>
    %496 = vector.shape_cast %493 : vector<4x16xf32> to vector<1x1x4x16xf32>
    tpu.vector_store %arg9[%c1_1046, %c8_1047, %c0_1048, %c0_1049], %496 {strides = array<i32>} : memref<2x10x5x16xf32, #tpu.memory_space<vmem>>, vector<1x1x4x16xf32>,
    %497 = vector.extract_strided_slice %464 {offsets = [32, 0], sizes = [4, 16], strides = [1, 1]} : vector<64x16xf32> to vector<4x16xf32>
    %c0_1050 = arith.constant 0 : index
    %c1_1051 = arith.constant 1 : index
    %c1_1052 = arith.constant 1 : index
    %c0_1053 = arith.constant 0 : index
    %498 = vector.load %arg9[%c0_1050, %c1_1051, %c1_1052, %c0_1053] : memref<2x10x5x16xf32, #tpu.memory_space<vmem>>, vector<1x1x4x16xf32>
    %499 = vector.shape_cast %498 : vector<1x1x4x16xf32> to vector<4x16xf32>
    %500 = vector.shape_cast %497 : vector<4x16xf32> to vector<1x1x4x16xf32>
    tpu.vector_store %arg9[%c0_1050, %c1_1051, %c1_1052, %c0_1053], %500 {strides = array<i32>} : memref<2x10x5x16xf32, #tpu.memory_space<vmem>>, vector<1x1x4x16xf32>,
    %501 = vector.extract_strided_slice %464 {offsets = [36, 0], sizes = [4, 16], strides = [1, 1]} : vector<64x16xf32> to vector<4x16xf32>
    %c0_1054 = arith.constant 0 : index
    %c2_1055 = arith.constant 2 : index
    %c1_1056 = arith.constant 1 : index
    %c0_1057 = arith.constant 0 : index
    %502 = vector.load %arg9[%c0_1054, %c2_1055, %c1_1056, %c0_1057] : memref<2x10x5x16xf32, #tpu.memory_space<vmem>>, vector<1x1x4x16xf32>
    %503 = vector.shape_cast %502 : vector<1x1x4x16xf32> to vector<4x16xf32>
    %504 = vector.shape_cast %501 : vector<4x16xf32> to vector<1x1x4x16xf32>
    tpu.vector_store %arg9[%c0_1054, %c2_1055, %c1_1056, %c0_1057], %504 {strides = array<i32>} : memref<2x10x5x16xf32, #tpu.memory_space<vmem>>, vector<1x1x4x16xf32>,
    %505 = vector.extract_strided_slice %464 {offsets = [40, 0], sizes = [4, 16], strides = [1, 1]} : vector<64x16xf32> to vector<4x16xf32>
    %c0_1058 = arith.constant 0 : index
    %c3_1059 = arith.constant 3 : index
    %c1_1060 = arith.constant 1 : index
    %c0_1061 = arith.constant 0 : index
    %506 = vector.load %arg9[%c0_1058, %c3_1059, %c1_1060, %c0_1061] : memref<2x10x5x16xf32, #tpu.memory_space<vmem>>, vector<1x1x4x16xf32>
    %507 = vector.shape_cast %506 : vector<1x1x4x16xf32> to vector<4x16xf32>
    %508 = vector.shape_cast %505 : vector<4x16xf32> to vector<1x1x4x16xf32>
    tpu.vector_store %arg9[%c0_1058, %c3_1059, %c1_1060, %c0_1061], %508 {strides = array<i32>} : memref<2x10x5x16xf32, #tpu.memory_space<vmem>>, vector<1x1x4x16xf32>,
    %509 = vector.extract_strided_slice %464 {offsets = [44, 0], sizes = [4, 16], strides = [1, 1]} : vector<64x16xf32> to vector<4x16xf32>
    %c0_1062 = arith.constant 0 : index
    %c4_1063 = arith.constant 4 : index
    %c1_1064 = arith.constant 1 : index
    %c0_1065 = arith.constant 0 : index
    %510 = vector.load %arg9[%c0_1062, %c4_1063, %c1_1064, %c0_1065] : memref<2x10x5x16xf32, #tpu.memory_space<vmem>>, vector<1x1x4x16xf32>
    %511 = vector.shape_cast %510 : vector<1x1x4x16xf32> to vector<4x16xf32>
    %512 = vector.shape_cast %509 : vector<4x16xf32> to vector<1x1x4x16xf32>
    tpu.vector_store %arg9[%c0_1062, %c4_1063, %c1_1064, %c0_1065], %512 {strides = array<i32>} : memref<2x10x5x16xf32, #tpu.memory_space<vmem>>, vector<1x1x4x16xf32>,
    %513 = vector.extract_strided_slice %464 {offsets = [48, 0], sizes = [4, 16], strides = [1, 1]} : vector<64x16xf32> to vector<4x16xf32>
    %c0_1066 = arith.constant 0 : index
    %c5_1067 = arith.constant 5 : index
    %c1_1068 = arith.constant 1 : index
    %c0_1069 = arith.constant 0 : index
    %514 = vector.load %arg9[%c0_1066, %c5_1067, %c1_1068, %c0_1069] : memref<2x10x5x16xf32, #tpu.memory_space<vmem>>, vector<1x1x4x16xf32>
    %515 = vector.shape_cast %514 : vector<1x1x4x16xf32> to vector<4x16xf32>
    %516 = vector.shape_cast %513 : vector<4x16xf32> to vector<1x1x4x16xf32>
    tpu.vector_store %arg9[%c0_1066, %c5_1067, %c1_1068, %c0_1069], %516 {strides = array<i32>} : memref<2x10x5x16xf32, #tpu.memory_space<vmem>>, vector<1x1x4x16xf32>,
    %517 = vector.extract_strided_slice %464 {offsets = [52, 0], sizes = [4, 16], strides = [1, 1]} : vector<64x16xf32> to vector<4x16xf32>
    %c0_1070 = arith.constant 0 : index
    %c6_1071 = arith.constant 6 : index
    %c1_1072 = arith.constant 1 : index
    %c0_1073 = arith.constant 0 : index
    %518 = vector.load %arg9[%c0_1070, %c6_1071, %c1_1072, %c0_1073] : memref<2x10x5x16xf32, #tpu.memory_space<vmem>>, vector<1x1x4x16xf32>
    %519 = vector.shape_cast %518 : vector<1x1x4x16xf32> to vector<4x16xf32>
    %520 = vector.shape_cast %517 : vector<4x16xf32> to vector<1x1x4x16xf32>
    tpu.vector_store %arg9[%c0_1070, %c6_1071, %c1_1072, %c0_1073], %520 {strides = array<i32>} : memref<2x10x5x16xf32, #tpu.memory_space<vmem>>, vector<1x1x4x16xf32>,
    %521 = vector.extract_strided_slice %464 {offsets = [56, 0], sizes = [4, 16], strides = [1, 1]} : vector<64x16xf32> to vector<4x16xf32>
    %c0_1074 = arith.constant 0 : index
    %c7_1075 = arith.constant 7 : index
    %c1_1076 = arith.constant 1 : index
    %c0_1077 = arith.constant 0 : index
    %522 = vector.load %arg9[%c0_1074, %c7_1075, %c1_1076, %c0_1077] : memref<2x10x5x16xf32, #tpu.memory_space<vmem>>, vector<1x1x4x16xf32>
    %523 = vector.shape_cast %522 : vector<1x1x4x16xf32> to vector<4x16xf32>
    %524 = vector.shape_cast %521 : vector<4x16xf32> to vector<1x1x4x16xf32>
    tpu.vector_store %arg9[%c0_1074, %c7_1075, %c1_1076, %c0_1077], %524 {strides = array<i32>} : memref<2x10x5x16xf32, #tpu.memory_space<vmem>>, vector<1x1x4x16xf32>,
    %525 = vector.extract_strided_slice %464 {offsets = [60, 0], sizes = [4, 16], strides = [1, 1]} : vector<64x16xf32> to vector<4x16xf32>
    %c0_1078 = arith.constant 0 : index
    %c8_1079 = arith.constant 8 : index
    %c1_1080 = arith.constant 1 : index
    %c0_1081 = arith.constant 0 : index
    %526 = vector.load %arg9[%c0_1078, %c8_1079, %c1_1080, %c0_1081] : memref<2x10x5x16xf32, #tpu.memory_space<vmem>>, vector<1x1x4x16xf32>
    %527 = vector.shape_cast %526 : vector<1x1x4x16xf32> to vector<4x16xf32>
    %528 = vector.shape_cast %525 : vector<4x16xf32> to vector<1x1x4x16xf32>
    tpu.vector_store %arg9[%c0_1078, %c8_1079, %c1_1080, %c0_1081], %528 {strides = array<i32>} : memref<2x10x5x16xf32, #tpu.memory_space<vmem>>, vector<1x1x4x16xf32>,
    %c0_1082 = arith.constant 0 : index
    %c0_1083 = arith.constant 0 : index
    %c0_1084 = arith.constant 0 : index
    %c0_1085 = arith.constant 0 : index
    %529 = vector.load %arg9[%c0_1082, %c0_1083, %c0_1084, %c0_1085] : memref<2x10x5x16xf32, #tpu.memory_space<vmem>>, vector<1x1x4x16xf32>
    %530 = vector.shape_cast %529 : vector<1x1x4x16xf32> to vector<4x16xf32>
    %c0_1086 = arith.constant 0 : index
    %c0_1087 = arith.constant 0 : index
    %531 = vector.load %arg12[%c0_1086, %c0_1087] : memref<16x144xf32, #tpu.memory_space<vmem>>, vector<4x16xf32>
    tpu.vector_store %arg12[%c0_1086, %c0_1087], %530 {strides = array<i32>} : memref<16x144xf32, #tpu.memory_space<vmem>>, vector<4x16xf32>,
    %c1_1088 = arith.constant 1 : index
    %c0_1089 = arith.constant 0 : index
    %c0_1090 = arith.constant 0 : index
    %c0_1091 = arith.constant 0 : index
    %532 = vector.load %arg9[%c1_1088, %c0_1089, %c0_1090, %c0_1091] : memref<2x10x5x16xf32, #tpu.memory_space<vmem>>, vector<1x1x4x16xf32>
    %533 = vector.shape_cast %532 : vector<1x1x4x16xf32> to vector<4x16xf32>
    %c0_1092 = arith.constant 0 : index
    %c16_1093 = arith.constant 16 : index
    %534 = vector.load %arg12[%c0_1092, %c16_1093] : memref<16x144xf32, #tpu.memory_space<vmem>>, vector<4x16xf32>
    tpu.vector_store %arg12[%c0_1092, %c16_1093], %533 {strides = array<i32>} : memref<16x144xf32, #tpu.memory_space<vmem>>, vector<4x16xf32>,
    %c0_1094 = arith.constant 0 : index
    %c0_1095 = arith.constant 0 : index
    %c1_1096 = arith.constant 1 : index
    %c0_1097 = arith.constant 0 : index
    %535 = vector.load %arg9[%c0_1094, %c0_1095, %c1_1096, %c0_1097] : memref<2x10x5x16xf32, #tpu.memory_space<vmem>>, vector<1x1x4x16xf32>
    %536 = vector.shape_cast %535 : vector<1x1x4x16xf32> to vector<4x16xf32>
    %c0_1098 = arith.constant 0 : index
    %c32_1099 = arith.constant 32 : index
    %537 = vector.load %arg12[%c0_1098, %c32_1099] : memref<16x144xf32, #tpu.memory_space<vmem>>, vector<4x16xf32>
    tpu.vector_store %arg12[%c0_1098, %c32_1099], %536 {strides = array<i32>} : memref<16x144xf32, #tpu.memory_space<vmem>>, vector<4x16xf32>,
    %c0_1100 = arith.constant 0 : index
    %c1_1101 = arith.constant 1 : index
    %c0_1102 = arith.constant 0 : index
    %c0_1103 = arith.constant 0 : index
    %538 = vector.load %arg9[%c0_1100, %c1_1101, %c0_1102, %c0_1103] : memref<2x10x5x16xf32, #tpu.memory_space<vmem>>, vector<1x1x4x16xf32>
    %539 = vector.shape_cast %538 : vector<1x1x4x16xf32> to vector<4x16xf32>
    %c0_1104 = arith.constant 0 : index
    %c48_1105 = arith.constant 48 : index
    %540 = vector.load %arg12[%c0_1104, %c48_1105] : memref<16x144xf32, #tpu.memory_space<vmem>>, vector<4x16xf32>
    tpu.vector_store %arg12[%c0_1104, %c48_1105], %539 {strides = array<i32>} : memref<16x144xf32, #tpu.memory_space<vmem>>, vector<4x16xf32>,
    %c1_1106 = arith.constant 1 : index
    %c1_1107 = arith.constant 1 : index
    %c0_1108 = arith.constant 0 : index
    %c0_1109 = arith.constant 0 : index
    %541 = vector.load %arg9[%c1_1106, %c1_1107, %c0_1108, %c0_1109] : memref<2x10x5x16xf32, #tpu.memory_space<vmem>>, vector<1x1x4x16xf32>
    %542 = vector.shape_cast %541 : vector<1x1x4x16xf32> to vector<4x16xf32>
    %c0_1110 = arith.constant 0 : index
    %c64 = arith.constant 64 : index
    %543 = vector.load %arg12[%c0_1110, %c64] : memref<16x144xf32, #tpu.memory_space<vmem>>, vector<4x16xf32>
    tpu.vector_store %arg12[%c0_1110, %c64], %542 {strides = array<i32>} : memref<16x144xf32, #tpu.memory_space<vmem>>, vector<4x16xf32>,
    %c0_1111 = arith.constant 0 : index
    %c1_1112 = arith.constant 1 : index
    %c1_1113 = arith.constant 1 : index
    %c0_1114 = arith.constant 0 : index
    %544 = vector.load %arg9[%c0_1111, %c1_1112, %c1_1113, %c0_1114] : memref<2x10x5x16xf32, #tpu.memory_space<vmem>>, vector<1x1x4x16xf32>
    %545 = vector.shape_cast %544 : vector<1x1x4x16xf32> to vector<4x16xf32>
    %c0_1115 = arith.constant 0 : index
    %c80 = arith.constant 80 : index
    %546 = vector.load %arg12[%c0_1115, %c80] : memref<16x144xf32, #tpu.memory_space<vmem>>, vector<4x16xf32>
    tpu.vector_store %arg12[%c0_1115, %c80], %545 {strides = array<i32>} : memref<16x144xf32, #tpu.memory_space<vmem>>, vector<4x16xf32>,
    %c0_1116 = arith.constant 0 : index
    %c2_1117 = arith.constant 2 : index
    %c0_1118 = arith.constant 0 : index
    %c0_1119 = arith.constant 0 : index
    %547 = vector.load %arg9[%c0_1116, %c2_1117, %c0_1118, %c0_1119] : memref<2x10x5x16xf32, #tpu.memory_space<vmem>>, vector<1x1x4x16xf32>
    %548 = vector.shape_cast %547 : vector<1x1x4x16xf32> to vector<4x16xf32>
    %c0_1120 = arith.constant 0 : index
    %c96 = arith.constant 96 : index
    %549 = vector.load %arg12[%c0_1120, %c96] : memref<16x144xf32, #tpu.memory_space<vmem>>, vector<4x16xf32>
    tpu.vector_store %arg12[%c0_1120, %c96], %548 {strides = array<i32>} : memref<16x144xf32, #tpu.memory_space<vmem>>, vector<4x16xf32>,
    %c1_1121 = arith.constant 1 : index
    %c2_1122 = arith.constant 2 : index
    %c0_1123 = arith.constant 0 : index
    %c0_1124 = arith.constant 0 : index
    %550 = vector.load %arg9[%c1_1121, %c2_1122, %c0_1123, %c0_1124] : memref<2x10x5x16xf32, #tpu.memory_space<vmem>>, vector<1x1x4x16xf32>
    %551 = vector.shape_cast %550 : vector<1x1x4x16xf32> to vector<4x16xf32>
    %c0_1125 = arith.constant 0 : index
    %c112 = arith.constant 112 : index
    %552 = vector.load %arg12[%c0_1125, %c112] : memref<16x144xf32, #tpu.memory_space<vmem>>, vector<4x16xf32>
    tpu.vector_store %arg12[%c0_1125, %c112], %551 {strides = array<i32>} : memref<16x144xf32, #tpu.memory_space<vmem>>, vector<4x16xf32>,
    %c0_1126 = arith.constant 0 : index
    %c2_1127 = arith.constant 2 : index
    %c1_1128 = arith.constant 1 : index
    %c0_1129 = arith.constant 0 : index
    %553 = vector.load %arg9[%c0_1126, %c2_1127, %c1_1128, %c0_1129] : memref<2x10x5x16xf32, #tpu.memory_space<vmem>>, vector<1x1x4x16xf32>
    %554 = vector.shape_cast %553 : vector<1x1x4x16xf32> to vector<4x16xf32>
    %c0_1130 = arith.constant 0 : index
    %c128 = arith.constant 128 : index
    %555 = vector.load %arg12[%c0_1130, %c128] : memref<16x144xf32, #tpu.memory_space<vmem>>, vector<4x16xf32>
    tpu.vector_store %arg12[%c0_1130, %c128], %554 {strides = array<i32>} : memref<16x144xf32, #tpu.memory_space<vmem>>, vector<4x16xf32>,
    %c0_1131 = arith.constant 0 : index
    %c2_1132 = arith.constant 2 : index
    %c0_1133 = arith.constant 0 : index
    %c0_1134 = arith.constant 0 : index
    %556 = vector.load %arg9[%c0_1131, %c2_1132, %c0_1133, %c0_1134] : memref<2x10x5x16xf32, #tpu.memory_space<vmem>>, vector<1x1x4x16xf32>
    %557 = vector.shape_cast %556 : vector<1x1x4x16xf32> to vector<4x16xf32>
    %c4_1135 = arith.constant 4 : index
    %c0_1136 = arith.constant 0 : index
    %558 = vector.load %arg12[%c4_1135, %c0_1136] : memref<16x144xf32, #tpu.memory_space<vmem>>, vector<4x16xf32>
    tpu.vector_store %arg12[%c4_1135, %c0_1136], %557 {strides = array<i32>} : memref<16x144xf32, #tpu.memory_space<vmem>>, vector<4x16xf32>,
    %c1_1137 = arith.constant 1 : index
    %c2_1138 = arith.constant 2 : index
    %c0_1139 = arith.constant 0 : index
    %c0_1140 = arith.constant 0 : index
    %559 = vector.load %arg9[%c1_1137, %c2_1138, %c0_1139, %c0_1140] : memref<2x10x5x16xf32, #tpu.memory_space<vmem>>, vector<1x1x4x16xf32>
    %560 = vector.shape_cast %559 : vector<1x1x4x16xf32> to vector<4x16xf32>
    %c4_1141 = arith.constant 4 : index
    %c16_1142 = arith.constant 16 : index
    %561 = vector.load %arg12[%c4_1141, %c16_1142] : memref<16x144xf32, #tpu.memory_space<vmem>>, vector<4x16xf32>
    tpu.vector_store %arg12[%c4_1141, %c16_1142], %560 {strides = array<i32>} : memref<16x144xf32, #tpu.memory_space<vmem>>, vector<4x16xf32>,
    %c0_1143 = arith.constant 0 : index
    %c2_1144 = arith.constant 2 : index
    %c1_1145 = arith.constant 1 : index
    %c0_1146 = arith.constant 0 : index
    %562 = vector.load %arg9[%c0_1143, %c2_1144, %c1_1145, %c0_1146] : memref<2x10x5x16xf32, #tpu.memory_space<vmem>>, vector<1x1x4x16xf32>
    %563 = vector.shape_cast %562 : vector<1x1x4x16xf32> to vector<4x16xf32>
    %c4_1147 = arith.constant 4 : index
    %c32_1148 = arith.constant 32 : index
    %564 = vector.load %arg12[%c4_1147, %c32_1148] : memref<16x144xf32, #tpu.memory_space<vmem>>, vector<4x16xf32>
    tpu.vector_store %arg12[%c4_1147, %c32_1148], %563 {strides = array<i32>} : memref<16x144xf32, #tpu.memory_space<vmem>>, vector<4x16xf32>,
    %c0_1149 = arith.constant 0 : index
    %c3_1150 = arith.constant 3 : index
    %c0_1151 = arith.constant 0 : index
    %c0_1152 = arith.constant 0 : index
    %565 = vector.load %arg9[%c0_1149, %c3_1150, %c0_1151, %c0_1152] : memref<2x10x5x16xf32, #tpu.memory_space<vmem>>, vector<1x1x4x16xf32>
    %566 = vector.shape_cast %565 : vector<1x1x4x16xf32> to vector<4x16xf32>
    %c4_1153 = arith.constant 4 : index
    %c48_1154 = arith.constant 48 : index
    %567 = vector.load %arg12[%c4_1153, %c48_1154] : memref<16x144xf32, #tpu.memory_space<vmem>>, vector<4x16xf32>
    tpu.vector_store %arg12[%c4_1153, %c48_1154], %566 {strides = array<i32>} : memref<16x144xf32, #tpu.memory_space<vmem>>, vector<4x16xf32>,
    %c1_1155 = arith.constant 1 : index
    %c3_1156 = arith.constant 3 : index
    %c0_1157 = arith.constant 0 : index
    %c0_1158 = arith.constant 0 : index
    %568 = vector.load %arg9[%c1_1155, %c3_1156, %c0_1157, %c0_1158] : memref<2x10x5x16xf32, #tpu.memory_space<vmem>>, vector<1x1x4x16xf32>
    %569 = vector.shape_cast %568 : vector<1x1x4x16xf32> to vector<4x16xf32>
    %c4_1159 = arith.constant 4 : index
    %c64_1160 = arith.constant 64 : index
    %570 = vector.load %arg12[%c4_1159, %c64_1160] : memref<16x144xf32, #tpu.memory_space<vmem>>, vector<4x16xf32>
    tpu.vector_store %arg12[%c4_1159, %c64_1160], %569 {strides = array<i32>} : memref<16x144xf32, #tpu.memory_space<vmem>>, vector<4x16xf32>,
    %c0_1161 = arith.constant 0 : index
    %c3_1162 = arith.constant 3 : index
    %c1_1163 = arith.constant 1 : index
    %c0_1164 = arith.constant 0 : index
    %571 = vector.load %arg9[%c0_1161, %c3_1162, %c1_1163, %c0_1164] : memref<2x10x5x16xf32, #tpu.memory_space<vmem>>, vector<1x1x4x16xf32>
    %572 = vector.shape_cast %571 : vector<1x1x4x16xf32> to vector<4x16xf32>
    %c4_1165 = arith.constant 4 : index
    %c80_1166 = arith.constant 80 : index
    %573 = vector.load %arg12[%c4_1165, %c80_1166] : memref<16x144xf32, #tpu.memory_space<vmem>>, vector<4x16xf32>
    tpu.vector_store %arg12[%c4_1165, %c80_1166], %572 {strides = array<i32>} : memref<16x144xf32, #tpu.memory_space<vmem>>, vector<4x16xf32>,
    %c0_1167 = arith.constant 0 : index
    %c4_1168 = arith.constant 4 : index
    %c0_1169 = arith.constant 0 : index
    %c0_1170 = arith.constant 0 : index
    %574 = vector.load %arg9[%c0_1167, %c4_1168, %c0_1169, %c0_1170] : memref<2x10x5x16xf32, #tpu.memory_space<vmem>>, vector<1x1x4x16xf32>
    %575 = vector.shape_cast %574 : vector<1x1x4x16xf32> to vector<4x16xf32>
    %c4_1171 = arith.constant 4 : index
    %c96_1172 = arith.constant 96 : index
    %576 = vector.load %arg12[%c4_1171, %c96_1172] : memref<16x144xf32, #tpu.memory_space<vmem>>, vector<4x16xf32>
    tpu.vector_store %arg12[%c4_1171, %c96_1172], %575 {strides = array<i32>} : memref<16x144xf32, #tpu.memory_space<vmem>>, vector<4x16xf32>,
    %c1_1173 = arith.constant 1 : index
    %c4_1174 = arith.constant 4 : index
    %c0_1175 = arith.constant 0 : index
    %c0_1176 = arith.constant 0 : index
    %577 = vector.load %arg9[%c1_1173, %c4_1174, %c0_1175, %c0_1176] : memref<2x10x5x16xf32, #tpu.memory_space<vmem>>, vector<1x1x4x16xf32>
    %578 = vector.shape_cast %577 : vector<1x1x4x16xf32> to vector<4x16xf32>
    %c4_1177 = arith.constant 4 : index
    %c112_1178 = arith.constant 112 : index
    %579 = vector.load %arg12[%c4_1177, %c112_1178] : memref<16x144xf32, #tpu.memory_space<vmem>>, vector<4x16xf32>
    tpu.vector_store %arg12[%c4_1177, %c112_1178], %578 {strides = array<i32>} : memref<16x144xf32, #tpu.memory_space<vmem>>, vector<4x16xf32>,
    %c0_1179 = arith.constant 0 : index
    %c4_1180 = arith.constant 4 : index
    %c1_1181 = arith.constant 1 : index
    %c0_1182 = arith.constant 0 : index
    %580 = vector.load %arg9[%c0_1179, %c4_1180, %c1_1181, %c0_1182] : memref<2x10x5x16xf32, #tpu.memory_space<vmem>>, vector<1x1x4x16xf32>
    %581 = vector.shape_cast %580 : vector<1x1x4x16xf32> to vector<4x16xf32>
    %c4_1183 = arith.constant 4 : index
    %c128_1184 = arith.constant 128 : index
    %582 = vector.load %arg12[%c4_1183, %c128_1184] : memref<16x144xf32, #tpu.memory_space<vmem>>, vector<4x16xf32>
    tpu.vector_store %arg12[%c4_1183, %c128_1184], %581 {strides = array<i32>} : memref<16x144xf32, #tpu.memory_space<vmem>>, vector<4x16xf32>,
    %c0_1185 = arith.constant 0 : index
    %c4_1186 = arith.constant 4 : index
    %c0_1187 = arith.constant 0 : index
    %c0_1188 = arith.constant 0 : index
    %583 = vector.load %arg9[%c0_1185, %c4_1186, %c0_1187, %c0_1188] : memref<2x10x5x16xf32, #tpu.memory_space<vmem>>, vector<1x1x4x16xf32>
    %584 = vector.shape_cast %583 : vector<1x1x4x16xf32> to vector<4x16xf32>
    %c8_1189 = arith.constant 8 : index
    %c0_1190 = arith.constant 0 : index
    %585 = vector.load %arg12[%c8_1189, %c0_1190] : memref<16x144xf32, #tpu.memory_space<vmem>>, vector<4x16xf32>
    tpu.vector_store %arg12[%c8_1189, %c0_1190], %584 {strides = array<i32>} : memref<16x144xf32, #tpu.memory_space<vmem>>, vector<4x16xf32>,
    %c1_1191 = arith.constant 1 : index
    %c4_1192 = arith.constant 4 : index
    %c0_1193 = arith.constant 0 : index
    %c0_1194 = arith.constant 0 : index
    %586 = vector.load %arg9[%c1_1191, %c4_1192, %c0_1193, %c0_1194] : memref<2x10x5x16xf32, #tpu.memory_space<vmem>>, vector<1x1x4x16xf32>
    %587 = vector.shape_cast %586 : vector<1x1x4x16xf32> to vector<4x16xf32>
    %c8_1195 = arith.constant 8 : index
    %c16_1196 = arith.constant 16 : index
    %588 = vector.load %arg12[%c8_1195, %c16_1196] : memref<16x144xf32, #tpu.memory_space<vmem>>, vector<4x16xf32>
    tpu.vector_store %arg12[%c8_1195, %c16_1196], %587 {strides = array<i32>} : memref<16x144xf32, #tpu.memory_space<vmem>>, vector<4x16xf32>,
    %c0_1197 = arith.constant 0 : index
    %c4_1198 = arith.constant 4 : index
    %c1_1199 = arith.constant 1 : index
    %c0_1200 = arith.constant 0 : index
    %589 = vector.load %arg9[%c0_1197, %c4_1198, %c1_1199, %c0_1200] : memref<2x10x5x16xf32, #tpu.memory_space<vmem>>, vector<1x1x4x16xf32>
    %590 = vector.shape_cast %589 : vector<1x1x4x16xf32> to vector<4x16xf32>
    %c8_1201 = arith.constant 8 : index
    %c32_1202 = arith.constant 32 : index
    %591 = vector.load %arg12[%c8_1201, %c32_1202] : memref<16x144xf32, #tpu.memory_space<vmem>>, vector<4x16xf32>
    tpu.vector_store %arg12[%c8_1201, %c32_1202], %590 {strides = array<i32>} : memref<16x144xf32, #tpu.memory_space<vmem>>, vector<4x16xf32>,
    %c0_1203 = arith.constant 0 : index
    %c5_1204 = arith.constant 5 : index
    %c0_1205 = arith.constant 0 : index
    %c0_1206 = arith.constant 0 : index
    %592 = vector.load %arg9[%c0_1203, %c5_1204, %c0_1205, %c0_1206] : memref<2x10x5x16xf32, #tpu.memory_space<vmem>>, vector<1x1x4x16xf32>
    %593 = vector.shape_cast %592 : vector<1x1x4x16xf32> to vector<4x16xf32>
    %c8_1207 = arith.constant 8 : index
    %c48_1208 = arith.constant 48 : index
    %594 = vector.load %arg12[%c8_1207, %c48_1208] : memref<16x144xf32, #tpu.memory_space<vmem>>, vector<4x16xf32>
    tpu.vector_store %arg12[%c8_1207, %c48_1208], %593 {strides = array<i32>} : memref<16x144xf32, #tpu.memory_space<vmem>>, vector<4x16xf32>,
    %c1_1209 = arith.constant 1 : index
    %c5_1210 = arith.constant 5 : index
    %c0_1211 = arith.constant 0 : index
    %c0_1212 = arith.constant 0 : index
    %595 = vector.load %arg9[%c1_1209, %c5_1210, %c0_1211, %c0_1212] : memref<2x10x5x16xf32, #tpu.memory_space<vmem>>, vector<1x1x4x16xf32>
    %596 = vector.shape_cast %595 : vector<1x1x4x16xf32> to vector<4x16xf32>
    %c8_1213 = arith.constant 8 : index
    %c64_1214 = arith.constant 64 : index
    %597 = vector.load %arg12[%c8_1213, %c64_1214] : memref<16x144xf32, #tpu.memory_space<vmem>>, vector<4x16xf32>
    tpu.vector_store %arg12[%c8_1213, %c64_1214], %596 {strides = array<i32>} : memref<16x144xf32, #tpu.memory_space<vmem>>, vector<4x16xf32>,
    %c0_1215 = arith.constant 0 : index
    %c5_1216 = arith.constant 5 : index
    %c1_1217 = arith.constant 1 : index
    %c0_1218 = arith.constant 0 : index
    %598 = vector.load %arg9[%c0_1215, %c5_1216, %c1_1217, %c0_1218] : memref<2x10x5x16xf32, #tpu.memory_space<vmem>>, vector<1x1x4x16xf32>
    %599 = vector.shape_cast %598 : vector<1x1x4x16xf32> to vector<4x16xf32>
    %c8_1219 = arith.constant 8 : index
    %c80_1220 = arith.constant 80 : index
    %600 = vector.load %arg12[%c8_1219, %c80_1220] : memref<16x144xf32, #tpu.memory_space<vmem>>, vector<4x16xf32>
    tpu.vector_store %arg12[%c8_1219, %c80_1220], %599 {strides = array<i32>} : memref<16x144xf32, #tpu.memory_space<vmem>>, vector<4x16xf32>,
    %c0_1221 = arith.constant 0 : index
    %c6_1222 = arith.constant 6 : index
    %c0_1223 = arith.constant 0 : index
    %c0_1224 = arith.constant 0 : index
    %601 = vector.load %arg9[%c0_1221, %c6_1222, %c0_1223, %c0_1224] : memref<2x10x5x16xf32, #tpu.memory_space<vmem>>, vector<1x1x4x16xf32>
    %602 = vector.shape_cast %601 : vector<1x1x4x16xf32> to vector<4x16xf32>
    %c8_1225 = arith.constant 8 : index
    %c96_1226 = arith.constant 96 : index
    %603 = vector.load %arg12[%c8_1225, %c96_1226] : memref<16x144xf32, #tpu.memory_space<vmem>>, vector<4x16xf32>
    tpu.vector_store %arg12[%c8_1225, %c96_1226], %602 {strides = array<i32>} : memref<16x144xf32, #tpu.memory_space<vmem>>, vector<4x16xf32>,
    %c1_1227 = arith.constant 1 : index
    %c6_1228 = arith.constant 6 : index
    %c0_1229 = arith.constant 0 : index
    %c0_1230 = arith.constant 0 : index
    %604 = vector.load %arg9[%c1_1227, %c6_1228, %c0_1229, %c0_1230] : memref<2x10x5x16xf32, #tpu.memory_space<vmem>>, vector<1x1x4x16xf32>
    %605 = vector.shape_cast %604 : vector<1x1x4x16xf32> to vector<4x16xf32>
    %c8_1231 = arith.constant 8 : index
    %c112_1232 = arith.constant 112 : index
    %606 = vector.load %arg12[%c8_1231, %c112_1232] : memref<16x144xf32, #tpu.memory_space<vmem>>, vector<4x16xf32>
    tpu.vector_store %arg12[%c8_1231, %c112_1232], %605 {strides = array<i32>} : memref<16x144xf32, #tpu.memory_space<vmem>>, vector<4x16xf32>,
    %c0_1233 = arith.constant 0 : index
    %c6_1234 = arith.constant 6 : index
    %c1_1235 = arith.constant 1 : index
    %c0_1236 = arith.constant 0 : index
    %607 = vector.load %arg9[%c0_1233, %c6_1234, %c1_1235, %c0_1236] : memref<2x10x5x16xf32, #tpu.memory_space<vmem>>, vector<1x1x4x16xf32>
    %608 = vector.shape_cast %607 : vector<1x1x4x16xf32> to vector<4x16xf32>
    %c8_1237 = arith.constant 8 : index
    %c128_1238 = arith.constant 128 : index
    %609 = vector.load %arg12[%c8_1237, %c128_1238] : memref<16x144xf32, #tpu.memory_space<vmem>>, vector<4x16xf32>
    tpu.vector_store %arg12[%c8_1237, %c128_1238], %608 {strides = array<i32>} : memref<16x144xf32, #tpu.memory_space<vmem>>, vector<4x16xf32>,
    %c0_1239 = arith.constant 0 : index
    %c6_1240 = arith.constant 6 : index
    %c0_1241 = arith.constant 0 : index
    %c0_1242 = arith.constant 0 : index
    %610 = vector.load %arg9[%c0_1239, %c6_1240, %c0_1241, %c0_1242] : memref<2x10x5x16xf32, #tpu.memory_space<vmem>>, vector<1x1x4x16xf32>
    %611 = vector.shape_cast %610 : vector<1x1x4x16xf32> to vector<4x16xf32>
    %c12_1243 = arith.constant 12 : index
    %c0_1244 = arith.constant 0 : index
    %612 = vector.load %arg12[%c12_1243, %c0_1244] : memref<16x144xf32, #tpu.memory_space<vmem>>, vector<4x16xf32>
    tpu.vector_store %arg12[%c12_1243, %c0_1244], %611 {strides = array<i32>} : memref<16x144xf32, #tpu.memory_space<vmem>>, vector<4x16xf32>,
    %c1_1245 = arith.constant 1 : index
    %c6_1246 = arith.constant 6 : index
    %c0_1247 = arith.constant 0 : index
    %c0_1248 = arith.constant 0 : index
    %613 = vector.load %arg9[%c1_1245, %c6_1246, %c0_1247, %c0_1248] : memref<2x10x5x16xf32, #tpu.memory_space<vmem>>, vector<1x1x4x16xf32>
    %614 = vector.shape_cast %613 : vector<1x1x4x16xf32> to vector<4x16xf32>
    %c12_1249 = arith.constant 12 : index
    %c16_1250 = arith.constant 16 : index
    %615 = vector.load %arg12[%c12_1249, %c16_1250] : memref<16x144xf32, #tpu.memory_space<vmem>>, vector<4x16xf32>
    tpu.vector_store %arg12[%c12_1249, %c16_1250], %614 {strides = array<i32>} : memref<16x144xf32, #tpu.memory_space<vmem>>, vector<4x16xf32>,
    %c0_1251 = arith.constant 0 : index
    %c6_1252 = arith.constant 6 : index
    %c1_1253 = arith.constant 1 : index
    %c0_1254 = arith.constant 0 : index
    %616 = vector.load %arg9[%c0_1251, %c6_1252, %c1_1253, %c0_1254] : memref<2x10x5x16xf32, #tpu.memory_space<vmem>>, vector<1x1x4x16xf32>
    %617 = vector.shape_cast %616 : vector<1x1x4x16xf32> to vector<4x16xf32>
    %c12_1255 = arith.constant 12 : index
    %c32_1256 = arith.constant 32 : index
    %618 = vector.load %arg12[%c12_1255, %c32_1256] : memref<16x144xf32, #tpu.memory_space<vmem>>, vector<4x16xf32>
    tpu.vector_store %arg12[%c12_1255, %c32_1256], %617 {strides = array<i32>} : memref<16x144xf32, #tpu.memory_space<vmem>>, vector<4x16xf32>,
    %c0_1257 = arith.constant 0 : index
    %c7_1258 = arith.constant 7 : index
    %c0_1259 = arith.constant 0 : index
    %c0_1260 = arith.constant 0 : index
    %619 = vector.load %arg9[%c0_1257, %c7_1258, %c0_1259, %c0_1260] : memref<2x10x5x16xf32, #tpu.memory_space<vmem>>, vector<1x1x4x16xf32>
    %620 = vector.shape_cast %619 : vector<1x1x4x16xf32> to vector<4x16xf32>
    %c12_1261 = arith.constant 12 : index
    %c48_1262 = arith.constant 48 : index
    %621 = vector.load %arg12[%c12_1261, %c48_1262] : memref<16x144xf32, #tpu.memory_space<vmem>>, vector<4x16xf32>
    tpu.vector_store %arg12[%c12_1261, %c48_1262], %620 {strides = array<i32>} : memref<16x144xf32, #tpu.memory_space<vmem>>, vector<4x16xf32>,
    %c1_1263 = arith.constant 1 : index
    %c7_1264 = arith.constant 7 : index
    %c0_1265 = arith.constant 0 : index
    %c0_1266 = arith.constant 0 : index
    %622 = vector.load %arg9[%c1_1263, %c7_1264, %c0_1265, %c0_1266] : memref<2x10x5x16xf32, #tpu.memory_space<vmem>>, vector<1x1x4x16xf32>
    %623 = vector.shape_cast %622 : vector<1x1x4x16xf32> to vector<4x16xf32>
    %c12_1267 = arith.constant 12 : index
    %c64_1268 = arith.constant 64 : index
    %624 = vector.load %arg12[%c12_1267, %c64_1268] : memref<16x144xf32, #tpu.memory_space<vmem>>, vector<4x16xf32>
    tpu.vector_store %arg12[%c12_1267, %c64_1268], %623 {strides = array<i32>} : memref<16x144xf32, #tpu.memory_space<vmem>>, vector<4x16xf32>,
    %c0_1269 = arith.constant 0 : index
    %c7_1270 = arith.constant 7 : index
    %c1_1271 = arith.constant 1 : index
    %c0_1272 = arith.constant 0 : index
    %625 = vector.load %arg9[%c0_1269, %c7_1270, %c1_1271, %c0_1272] : memref<2x10x5x16xf32, #tpu.memory_space<vmem>>, vector<1x1x4x16xf32>
    %626 = vector.shape_cast %625 : vector<1x1x4x16xf32> to vector<4x16xf32>
    %c12_1273 = arith.constant 12 : index
    %c80_1274 = arith.constant 80 : index
    %627 = vector.load %arg12[%c12_1273, %c80_1274] : memref<16x144xf32, #tpu.memory_space<vmem>>, vector<4x16xf32>
    tpu.vector_store %arg12[%c12_1273, %c80_1274], %626 {strides = array<i32>} : memref<16x144xf32, #tpu.memory_space<vmem>>, vector<4x16xf32>,
    %c0_1275 = arith.constant 0 : index
    %c8_1276 = arith.constant 8 : index
    %c0_1277 = arith.constant 0 : index
    %c0_1278 = arith.constant 0 : index
    %628 = vector.load %arg9[%c0_1275, %c8_1276, %c0_1277, %c0_1278] : memref<2x10x5x16xf32, #tpu.memory_space<vmem>>, vector<1x1x4x16xf32>
    %629 = vector.shape_cast %628 : vector<1x1x4x16xf32> to vector<4x16xf32>
    %c12_1279 = arith.constant 12 : index
    %c96_1280 = arith.constant 96 : index
    %630 = vector.load %arg12[%c12_1279, %c96_1280] : memref<16x144xf32, #tpu.memory_space<vmem>>, vector<4x16xf32>
    tpu.vector_store %arg12[%c12_1279, %c96_1280], %629 {strides = array<i32>} : memref<16x144xf32, #tpu.memory_space<vmem>>, vector<4x16xf32>,
    %c1_1281 = arith.constant 1 : index
    %c8_1282 = arith.constant 8 : index
    %c0_1283 = arith.constant 0 : index
    %c0_1284 = arith.constant 0 : index
    %631 = vector.load %arg9[%c1_1281, %c8_1282, %c0_1283, %c0_1284] : memref<2x10x5x16xf32, #tpu.memory_space<vmem>>, vector<1x1x4x16xf32>
    %632 = vector.shape_cast %631 : vector<1x1x4x16xf32> to vector<4x16xf32>
    %c12_1285 = arith.constant 12 : index
    %c112_1286 = arith.constant 112 : index
    %633 = vector.load %arg12[%c12_1285, %c112_1286] : memref<16x144xf32, #tpu.memory_space<vmem>>, vector<4x16xf32>
    tpu.vector_store %arg12[%c12_1285, %c112_1286], %632 {strides = array<i32>} : memref<16x144xf32, #tpu.memory_space<vmem>>, vector<4x16xf32>,
    %c0_1287 = arith.constant 0 : index
    %c8_1288 = arith.constant 8 : index
    %c1_1289 = arith.constant 1 : index
    %c0_1290 = arith.constant 0 : index
    %634 = vector.load %arg9[%c0_1287, %c8_1288, %c1_1289, %c0_1290] : memref<2x10x5x16xf32, #tpu.memory_space<vmem>>, vector<1x1x4x16xf32>
    %635 = vector.shape_cast %634 : vector<1x1x4x16xf32> to vector<4x16xf32>
    %c12_1291 = arith.constant 12 : index
    %c128_1292 = arith.constant 128 : index
    %636 = vector.load %arg12[%c12_1291, %c128_1292] : memref<16x144xf32, #tpu.memory_space<vmem>>, vector<4x16xf32>
    tpu.vector_store %arg12[%c12_1291, %c128_1292], %635 {strides = array<i32>} : memref<16x144xf32, #tpu.memory_space<vmem>>, vector<4x16xf32>,
    %c0_1293 = arith.constant 0 : index
    %c0_1294 = arith.constant 0 : index
    %637 = vector.load %arg12[%c0_1293, %c0_1294] : memref<16x144xf32, #tpu.memory_space<vmem>>, vector<16x144xf32>
    %638 = arith.truncf %637 : vector<16x144xf32> to vector<16x144xbf16>
    %c0_1295 = arith.constant 0 : index
    %c0_1296 = arith.constant 0 : index
    %639 = vector.load %arg3[%c0_1295, %c0_1296] : memref<144x32xbf16, #tpu.memory_space<vmem>>, vector<144x32xbf16>
    %cst_1297 = arith.constant dense<0.000000e+00> : vector<16x32xf32>
    %640 = tpu.matmul %638, %639, %cst_1297 {dimension_numbers = #tpu.dot_dimension_numbers<[1], [0], [0], [1], [0, 0, 1, 1], [], []>} : vector<16x144xbf16>, vector<144x32xbf16>, vector<16x32xf32> -> vector<16x32xf32>
    %c0_1298 = arith.constant 0 : index
    %c0_1299 = arith.constant 0 : index
    %641 = vector.load %arg6[%c0_1298, %c0_1299] : memref<1x32xf32, #tpu.memory_space<vmem>>, vector<1x32xf32>
    %642 = vector.broadcast %641 : vector<1x32xf32> to vector<16x32xf32>
    %643 = arith.addf %640, %642 : vector<16x32xf32>
    %cst_1300 = arith.constant 0.000000e+00 : f32
    %644 = vector.broadcast %cst_1300 : f32 to vector<16x32xf32>
    %645 = arith.maximumf %643, %644 : vector<16x32xf32>
    %646 = vector.extract_strided_slice %645 {offsets = [0, 0], sizes = [4, 32], strides = [1, 1]} : vector<16x32xf32> to vector<4x32xf32>
    %c1_1301 = arith.constant 1 : index
    %c1_1302 = arith.constant 1 : index
    %c0_1303 = arith.constant 0 : index
    %647 = vector.load %arg10[%c1_1301, %c1_1302, %c0_1303] : memref<6x6x32xf32, #tpu.memory_space<vmem>>, vector<1x4x32xf32>
    %648 = vector.shape_cast %647 : vector<1x4x32xf32> to vector<4x32xf32>
    %649 = vector.shape_cast %646 : vector<4x32xf32> to vector<1x4x32xf32>
    tpu.vector_store %arg10[%c1_1301, %c1_1302, %c0_1303], %649 {strides = array<i32>} : memref<6x6x32xf32, #tpu.memory_space<vmem>>, vector<1x4x32xf32>,
    %650 = vector.extract_strided_slice %645 {offsets = [4, 0], sizes = [4, 32], strides = [1, 1]} : vector<16x32xf32> to vector<4x32xf32>
    %c2_1304 = arith.constant 2 : index
    %c1_1305 = arith.constant 1 : index
    %c0_1306 = arith.constant 0 : index
    %651 = vector.load %arg10[%c2_1304, %c1_1305, %c0_1306] : memref<6x6x32xf32, #tpu.memory_space<vmem>>, vector<1x4x32xf32>
    %652 = vector.shape_cast %651 : vector<1x4x32xf32> to vector<4x32xf32>
    %653 = vector.shape_cast %650 : vector<4x32xf32> to vector<1x4x32xf32>
    tpu.vector_store %arg10[%c2_1304, %c1_1305, %c0_1306], %653 {strides = array<i32>} : memref<6x6x32xf32, #tpu.memory_space<vmem>>, vector<1x4x32xf32>,
    %654 = vector.extract_strided_slice %645 {offsets = [8, 0], sizes = [4, 32], strides = [1, 1]} : vector<16x32xf32> to vector<4x32xf32>
    %c3_1307 = arith.constant 3 : index
    %c1_1308 = arith.constant 1 : index
    %c0_1309 = arith.constant 0 : index
    %655 = vector.load %arg10[%c3_1307, %c1_1308, %c0_1309] : memref<6x6x32xf32, #tpu.memory_space<vmem>>, vector<1x4x32xf32>
    %656 = vector.shape_cast %655 : vector<1x4x32xf32> to vector<4x32xf32>
    %657 = vector.shape_cast %654 : vector<4x32xf32> to vector<1x4x32xf32>
    tpu.vector_store %arg10[%c3_1307, %c1_1308, %c0_1309], %657 {strides = array<i32>} : memref<6x6x32xf32, #tpu.memory_space<vmem>>, vector<1x4x32xf32>,
    %658 = vector.extract_strided_slice %645 {offsets = [12, 0], sizes = [4, 32], strides = [1, 1]} : vector<16x32xf32> to vector<4x32xf32>
    %c4_1310 = arith.constant 4 : index
    %c1_1311 = arith.constant 1 : index
    %c0_1312 = arith.constant 0 : index
    %659 = vector.load %arg10[%c4_1310, %c1_1311, %c0_1312] : memref<6x6x32xf32, #tpu.memory_space<vmem>>, vector<1x4x32xf32>
    %660 = vector.shape_cast %659 : vector<1x4x32xf32> to vector<4x32xf32>
    %661 = vector.shape_cast %658 : vector<4x32xf32> to vector<1x4x32xf32>
    tpu.vector_store %arg10[%c4_1310, %c1_1311, %c0_1312], %661 {strides = array<i32>} : memref<6x6x32xf32, #tpu.memory_space<vmem>>, vector<1x4x32xf32>,
    %c0_1313 = arith.constant 0 : index
    %c0_1314 = arith.constant 0 : index
    %c0_1315 = arith.constant 0 : index
    %662 = vector.load %arg10[%c0_1313, %c0_1314, %c0_1315] : memref<6x6x32xf32, #tpu.memory_space<vmem>>, vector<1x4x32xf32>
    %663 = vector.shape_cast %662 : vector<1x4x32xf32> to vector<4x32xf32>
    %c0_1316 = arith.constant 0 : index
    %c0_1317 = arith.constant 0 : index
    %664 = vector.load %arg13[%c0_1316, %c0_1317] : memref<16x288xf32, #tpu.memory_space<vmem>>, vector<4x32xf32>
    tpu.vector_store %arg13[%c0_1316, %c0_1317], %663 {strides = array<i32>} : memref<16x288xf32, #tpu.memory_space<vmem>>, vector<4x32xf32>,
    %c0_1318 = arith.constant 0 : index
    %c1_1319 = arith.constant 1 : index
    %c0_1320 = arith.constant 0 : index
    %665 = vector.load %arg10[%c0_1318, %c1_1319, %c0_1320] : memref<6x6x32xf32, #tpu.memory_space<vmem>>, vector<1x4x32xf32>
    %666 = vector.shape_cast %665 : vector<1x4x32xf32> to vector<4x32xf32>
    %c0_1321 = arith.constant 0 : index
    %c32_1322 = arith.constant 32 : index
    %667 = vector.load %arg13[%c0_1321, %c32_1322] : memref<16x288xf32, #tpu.memory_space<vmem>>, vector<4x32xf32>
    tpu.vector_store %arg13[%c0_1321, %c32_1322], %666 {strides = array<i32>} : memref<16x288xf32, #tpu.memory_space<vmem>>, vector<4x32xf32>,
    %c0_1323 = arith.constant 0 : index
    %c2_1324 = arith.constant 2 : index
    %c0_1325 = arith.constant 0 : index
    %668 = vector.load %arg10[%c0_1323, %c2_1324, %c0_1325] : memref<6x6x32xf32, #tpu.memory_space<vmem>>, vector<1x4x32xf32>
    %669 = vector.shape_cast %668 : vector<1x4x32xf32> to vector<4x32xf32>
    %c0_1326 = arith.constant 0 : index
    %c64_1327 = arith.constant 64 : index
    %670 = vector.load %arg13[%c0_1326, %c64_1327] : memref<16x288xf32, #tpu.memory_space<vmem>>, vector<4x32xf32>
    tpu.vector_store %arg13[%c0_1326, %c64_1327], %669 {strides = array<i32>} : memref<16x288xf32, #tpu.memory_space<vmem>>, vector<4x32xf32>,
    %c1_1328 = arith.constant 1 : index
    %c0_1329 = arith.constant 0 : index
    %c0_1330 = arith.constant 0 : index
    %671 = vector.load %arg10[%c1_1328, %c0_1329, %c0_1330] : memref<6x6x32xf32, #tpu.memory_space<vmem>>, vector<1x4x32xf32>
    %672 = vector.shape_cast %671 : vector<1x4x32xf32> to vector<4x32xf32>
    %c0_1331 = arith.constant 0 : index
    %c96_1332 = arith.constant 96 : index
    %673 = vector.load %arg13[%c0_1331, %c96_1332] : memref<16x288xf32, #tpu.memory_space<vmem>>, vector<4x32xf32>
    tpu.vector_store %arg13[%c0_1331, %c96_1332], %672 {strides = array<i32>} : memref<16x288xf32, #tpu.memory_space<vmem>>, vector<4x32xf32>,
    %c1_1333 = arith.constant 1 : index
    %c1_1334 = arith.constant 1 : index
    %c0_1335 = arith.constant 0 : index
    %674 = vector.load %arg10[%c1_1333, %c1_1334, %c0_1335] : memref<6x6x32xf32, #tpu.memory_space<vmem>>, vector<1x4x32xf32>
    %675 = vector.shape_cast %674 : vector<1x4x32xf32> to vector<4x32xf32>
    %c0_1336 = arith.constant 0 : index
    %c128_1337 = arith.constant 128 : index
    %676 = vector.load %arg13[%c0_1336, %c128_1337] : memref<16x288xf32, #tpu.memory_space<vmem>>, vector<4x32xf32>
    tpu.vector_store %arg13[%c0_1336, %c128_1337], %675 {strides = array<i32>} : memref<16x288xf32, #tpu.memory_space<vmem>>, vector<4x32xf32>,
    %c1_1338 = arith.constant 1 : index
    %c2_1339 = arith.constant 2 : index
    %c0_1340 = arith.constant 0 : index
    %677 = vector.load %arg10[%c1_1338, %c2_1339, %c0_1340] : memref<6x6x32xf32, #tpu.memory_space<vmem>>, vector<1x4x32xf32>
    %678 = vector.shape_cast %677 : vector<1x4x32xf32> to vector<4x32xf32>
    %c0_1341 = arith.constant 0 : index
    %c160 = arith.constant 160 : index
    %679 = vector.load %arg13[%c0_1341, %c160] : memref<16x288xf32, #tpu.memory_space<vmem>>, vector<4x32xf32>
    tpu.vector_store %arg13[%c0_1341, %c160], %678 {strides = array<i32>} : memref<16x288xf32, #tpu.memory_space<vmem>>, vector<4x32xf32>,
    %c2_1342 = arith.constant 2 : index
    %c0_1343 = arith.constant 0 : index
    %c0_1344 = arith.constant 0 : index
    %680 = vector.load %arg10[%c2_1342, %c0_1343, %c0_1344] : memref<6x6x32xf32, #tpu.memory_space<vmem>>, vector<1x4x32xf32>
    %681 = vector.shape_cast %680 : vector<1x4x32xf32> to vector<4x32xf32>
    %c0_1345 = arith.constant 0 : index
    %c192 = arith.constant 192 : index
    %682 = vector.load %arg13[%c0_1345, %c192] : memref<16x288xf32, #tpu.memory_space<vmem>>, vector<4x32xf32>
    tpu.vector_store %arg13[%c0_1345, %c192], %681 {strides = array<i32>} : memref<16x288xf32, #tpu.memory_space<vmem>>, vector<4x32xf32>,
    %c2_1346 = arith.constant 2 : index
    %c1_1347 = arith.constant 1 : index
    %c0_1348 = arith.constant 0 : index
    %683 = vector.load %arg10[%c2_1346, %c1_1347, %c0_1348] : memref<6x6x32xf32, #tpu.memory_space<vmem>>, vector<1x4x32xf32>
    %684 = vector.shape_cast %683 : vector<1x4x32xf32> to vector<4x32xf32>
    %c0_1349 = arith.constant 0 : index
    %c224 = arith.constant 224 : index
    %685 = vector.load %arg13[%c0_1349, %c224] : memref<16x288xf32, #tpu.memory_space<vmem>>, vector<4x32xf32>
    tpu.vector_store %arg13[%c0_1349, %c224], %684 {strides = array<i32>} : memref<16x288xf32, #tpu.memory_space<vmem>>, vector<4x32xf32>,
    %c2_1350 = arith.constant 2 : index
    %c2_1351 = arith.constant 2 : index
    %c0_1352 = arith.constant 0 : index
    %686 = vector.load %arg10[%c2_1350, %c2_1351, %c0_1352] : memref<6x6x32xf32, #tpu.memory_space<vmem>>, vector<1x4x32xf32>
    %687 = vector.shape_cast %686 : vector<1x4x32xf32> to vector<4x32xf32>
    %c0_1353 = arith.constant 0 : index
    %c256 = arith.constant 256 : index
    %688 = vector.load %arg13[%c0_1353, %c256] : memref<16x288xf32, #tpu.memory_space<vmem>>, vector<4x32xf32>
    tpu.vector_store %arg13[%c0_1353, %c256], %687 {strides = array<i32>} : memref<16x288xf32, #tpu.memory_space<vmem>>, vector<4x32xf32>,
    %c1_1354 = arith.constant 1 : index
    %c0_1355 = arith.constant 0 : index
    %c0_1356 = arith.constant 0 : index
    %689 = vector.load %arg10[%c1_1354, %c0_1355, %c0_1356] : memref<6x6x32xf32, #tpu.memory_space<vmem>>, vector<1x4x32xf32>
    %690 = vector.shape_cast %689 : vector<1x4x32xf32> to vector<4x32xf32>
    %c4_1357 = arith.constant 4 : index
    %c0_1358 = arith.constant 0 : index
    %691 = vector.load %arg13[%c4_1357, %c0_1358] : memref<16x288xf32, #tpu.memory_space<vmem>>, vector<4x32xf32>
    tpu.vector_store %arg13[%c4_1357, %c0_1358], %690 {strides = array<i32>} : memref<16x288xf32, #tpu.memory_space<vmem>>, vector<4x32xf32>,
    %c1_1359 = arith.constant 1 : index
    %c1_1360 = arith.constant 1 : index
    %c0_1361 = arith.constant 0 : index
    %692 = vector.load %arg10[%c1_1359, %c1_1360, %c0_1361] : memref<6x6x32xf32, #tpu.memory_space<vmem>>, vector<1x4x32xf32>
    %693 = vector.shape_cast %692 : vector<1x4x32xf32> to vector<4x32xf32>
    %c4_1362 = arith.constant 4 : index
    %c32_1363 = arith.constant 32 : index
    %694 = vector.load %arg13[%c4_1362, %c32_1363] : memref<16x288xf32, #tpu.memory_space<vmem>>, vector<4x32xf32>
    tpu.vector_store %arg13[%c4_1362, %c32_1363], %693 {strides = array<i32>} : memref<16x288xf32, #tpu.memory_space<vmem>>, vector<4x32xf32>,
    %c1_1364 = arith.constant 1 : index
    %c2_1365 = arith.constant 2 : index
    %c0_1366 = arith.constant 0 : index
    %695 = vector.load %arg10[%c1_1364, %c2_1365, %c0_1366] : memref<6x6x32xf32, #tpu.memory_space<vmem>>, vector<1x4x32xf32>
    %696 = vector.shape_cast %695 : vector<1x4x32xf32> to vector<4x32xf32>
    %c4_1367 = arith.constant 4 : index
    %c64_1368 = arith.constant 64 : index
    %697 = vector.load %arg13[%c4_1367, %c64_1368] : memref<16x288xf32, #tpu.memory_space<vmem>>, vector<4x32xf32>
    tpu.vector_store %arg13[%c4_1367, %c64_1368], %696 {strides = array<i32>} : memref<16x288xf32, #tpu.memory_space<vmem>>, vector<4x32xf32>,
    %c2_1369 = arith.constant 2 : index
    %c0_1370 = arith.constant 0 : index
    %c0_1371 = arith.constant 0 : index
    %698 = vector.load %arg10[%c2_1369, %c0_1370, %c0_1371] : memref<6x6x32xf32, #tpu.memory_space<vmem>>, vector<1x4x32xf32>
    %699 = vector.shape_cast %698 : vector<1x4x32xf32> to vector<4x32xf32>
    %c4_1372 = arith.constant 4 : index
    %c96_1373 = arith.constant 96 : index
    %700 = vector.load %arg13[%c4_1372, %c96_1373] : memref<16x288xf32, #tpu.memory_space<vmem>>, vector<4x32xf32>
    tpu.vector_store %arg13[%c4_1372, %c96_1373], %699 {strides = array<i32>} : memref<16x288xf32, #tpu.memory_space<vmem>>, vector<4x32xf32>,
    %c2_1374 = arith.constant 2 : index
    %c1_1375 = arith.constant 1 : index
    %c0_1376 = arith.constant 0 : index
    %701 = vector.load %arg10[%c2_1374, %c1_1375, %c0_1376] : memref<6x6x32xf32, #tpu.memory_space<vmem>>, vector<1x4x32xf32>
    %702 = vector.shape_cast %701 : vector<1x4x32xf32> to vector<4x32xf32>
    %c4_1377 = arith.constant 4 : index
    %c128_1378 = arith.constant 128 : index
    %703 = vector.load %arg13[%c4_1377, %c128_1378] : memref<16x288xf32, #tpu.memory_space<vmem>>, vector<4x32xf32>
    tpu.vector_store %arg13[%c4_1377, %c128_1378], %702 {strides = array<i32>} : memref<16x288xf32, #tpu.memory_space<vmem>>, vector<4x32xf32>,
    %c2_1379 = arith.constant 2 : index
    %c2_1380 = arith.constant 2 : index
    %c0_1381 = arith.constant 0 : index
    %704 = vector.load %arg10[%c2_1379, %c2_1380, %c0_1381] : memref<6x6x32xf32, #tpu.memory_space<vmem>>, vector<1x4x32xf32>
    %705 = vector.shape_cast %704 : vector<1x4x32xf32> to vector<4x32xf32>
    %c4_1382 = arith.constant 4 : index
    %c160_1383 = arith.constant 160 : index
    %706 = vector.load %arg13[%c4_1382, %c160_1383] : memref<16x288xf32, #tpu.memory_space<vmem>>, vector<4x32xf32>
    tpu.vector_store %arg13[%c4_1382, %c160_1383], %705 {strides = array<i32>} : memref<16x288xf32, #tpu.memory_space<vmem>>, vector<4x32xf32>,
    %c3_1384 = arith.constant 3 : index
    %c0_1385 = arith.constant 0 : index
    %c0_1386 = arith.constant 0 : index
    %707 = vector.load %arg10[%c3_1384, %c0_1385, %c0_1386] : memref<6x6x32xf32, #tpu.memory_space<vmem>>, vector<1x4x32xf32>
    %708 = vector.shape_cast %707 : vector<1x4x32xf32> to vector<4x32xf32>
    %c4_1387 = arith.constant 4 : index
    %c192_1388 = arith.constant 192 : index
    %709 = vector.load %arg13[%c4_1387, %c192_1388] : memref<16x288xf32, #tpu.memory_space<vmem>>, vector<4x32xf32>
    tpu.vector_store %arg13[%c4_1387, %c192_1388], %708 {strides = array<i32>} : memref<16x288xf32, #tpu.memory_space<vmem>>, vector<4x32xf32>,
    %c3_1389 = arith.constant 3 : index
    %c1_1390 = arith.constant 1 : index
    %c0_1391 = arith.constant 0 : index
    %710 = vector.load %arg10[%c3_1389, %c1_1390, %c0_1391] : memref<6x6x32xf32, #tpu.memory_space<vmem>>, vector<1x4x32xf32>
    %711 = vector.shape_cast %710 : vector<1x4x32xf32> to vector<4x32xf32>
    %c4_1392 = arith.constant 4 : index
    %c224_1393 = arith.constant 224 : index
    %712 = vector.load %arg13[%c4_1392, %c224_1393] : memref<16x288xf32, #tpu.memory_space<vmem>>, vector<4x32xf32>
    tpu.vector_store %arg13[%c4_1392, %c224_1393], %711 {strides = array<i32>} : memref<16x288xf32, #tpu.memory_space<vmem>>, vector<4x32xf32>,
    %c3_1394 = arith.constant 3 : index
    %c2_1395 = arith.constant 2 : index
    %c0_1396 = arith.constant 0 : index
    %713 = vector.load %arg10[%c3_1394, %c2_1395, %c0_1396] : memref<6x6x32xf32, #tpu.memory_space<vmem>>, vector<1x4x32xf32>
    %714 = vector.shape_cast %713 : vector<1x4x32xf32> to vector<4x32xf32>
    %c4_1397 = arith.constant 4 : index
    %c256_1398 = arith.constant 256 : index
    %715 = vector.load %arg13[%c4_1397, %c256_1398] : memref<16x288xf32, #tpu.memory_space<vmem>>, vector<4x32xf32>
    tpu.vector_store %arg13[%c4_1397, %c256_1398], %714 {strides = array<i32>} : memref<16x288xf32, #tpu.memory_space<vmem>>, vector<4x32xf32>,
    %c2_1399 = arith.constant 2 : index
    %c0_1400 = arith.constant 0 : index
    %c0_1401 = arith.constant 0 : index
    %716 = vector.load %arg10[%c2_1399, %c0_1400, %c0_1401] : memref<6x6x32xf32, #tpu.memory_space<vmem>>, vector<1x4x32xf32>
    %717 = vector.shape_cast %716 : vector<1x4x32xf32> to vector<4x32xf32>
    %c8_1402 = arith.constant 8 : index
    %c0_1403 = arith.constant 0 : index
    %718 = vector.load %arg13[%c8_1402, %c0_1403] : memref<16x288xf32, #tpu.memory_space<vmem>>, vector<4x32xf32>
    tpu.vector_store %arg13[%c8_1402, %c0_1403], %717 {strides = array<i32>} : memref<16x288xf32, #tpu.memory_space<vmem>>, vector<4x32xf32>,
    %c2_1404 = arith.constant 2 : index
    %c1_1405 = arith.constant 1 : index
    %c0_1406 = arith.constant 0 : index
    %719 = vector.load %arg10[%c2_1404, %c1_1405, %c0_1406] : memref<6x6x32xf32, #tpu.memory_space<vmem>>, vector<1x4x32xf32>
    %720 = vector.shape_cast %719 : vector<1x4x32xf32> to vector<4x32xf32>
    %c8_1407 = arith.constant 8 : index
    %c32_1408 = arith.constant 32 : index
    %721 = vector.load %arg13[%c8_1407, %c32_1408] : memref<16x288xf32, #tpu.memory_space<vmem>>, vector<4x32xf32>
    tpu.vector_store %arg13[%c8_1407, %c32_1408], %720 {strides = array<i32>} : memref<16x288xf32, #tpu.memory_space<vmem>>, vector<4x32xf32>,
    %c2_1409 = arith.constant 2 : index
    %c2_1410 = arith.constant 2 : index
    %c0_1411 = arith.constant 0 : index
    %722 = vector.load %arg10[%c2_1409, %c2_1410, %c0_1411] : memref<6x6x32xf32, #tpu.memory_space<vmem>>, vector<1x4x32xf32>
    %723 = vector.shape_cast %722 : vector<1x4x32xf32> to vector<4x32xf32>
    %c8_1412 = arith.constant 8 : index
    %c64_1413 = arith.constant 64 : index
    %724 = vector.load %arg13[%c8_1412, %c64_1413] : memref<16x288xf32, #tpu.memory_space<vmem>>, vector<4x32xf32>
    tpu.vector_store %arg13[%c8_1412, %c64_1413], %723 {strides = array<i32>} : memref<16x288xf32, #tpu.memory_space<vmem>>, vector<4x32xf32>,
    %c3_1414 = arith.constant 3 : index
    %c0_1415 = arith.constant 0 : index
    %c0_1416 = arith.constant 0 : index
    %725 = vector.load %arg10[%c3_1414, %c0_1415, %c0_1416] : memref<6x6x32xf32, #tpu.memory_space<vmem>>, vector<1x4x32xf32>
    %726 = vector.shape_cast %725 : vector<1x4x32xf32> to vector<4x32xf32>
    %c8_1417 = arith.constant 8 : index
    %c96_1418 = arith.constant 96 : index
    %727 = vector.load %arg13[%c8_1417, %c96_1418] : memref<16x288xf32, #tpu.memory_space<vmem>>, vector<4x32xf32>
    tpu.vector_store %arg13[%c8_1417, %c96_1418], %726 {strides = array<i32>} : memref<16x288xf32, #tpu.memory_space<vmem>>, vector<4x32xf32>,
    %c3_1419 = arith.constant 3 : index
    %c1_1420 = arith.constant 1 : index
    %c0_1421 = arith.constant 0 : index
    %728 = vector.load %arg10[%c3_1419, %c1_1420, %c0_1421] : memref<6x6x32xf32, #tpu.memory_space<vmem>>, vector<1x4x32xf32>
    %729 = vector.shape_cast %728 : vector<1x4x32xf32> to vector<4x32xf32>
    %c8_1422 = arith.constant 8 : index
    %c128_1423 = arith.constant 128 : index
    %730 = vector.load %arg13[%c8_1422, %c128_1423] : memref<16x288xf32, #tpu.memory_space<vmem>>, vector<4x32xf32>
    tpu.vector_store %arg13[%c8_1422, %c128_1423], %729 {strides = array<i32>} : memref<16x288xf32, #tpu.memory_space<vmem>>, vector<4x32xf32>,
    %c3_1424 = arith.constant 3 : index
    %c2_1425 = arith.constant 2 : index
    %c0_1426 = arith.constant 0 : index
    %731 = vector.load %arg10[%c3_1424, %c2_1425, %c0_1426] : memref<6x6x32xf32, #tpu.memory_space<vmem>>, vector<1x4x32xf32>
    %732 = vector.shape_cast %731 : vector<1x4x32xf32> to vector<4x32xf32>
    %c8_1427 = arith.constant 8 : index
    %c160_1428 = arith.constant 160 : index
    %733 = vector.load %arg13[%c8_1427, %c160_1428] : memref<16x288xf32, #tpu.memory_space<vmem>>, vector<4x32xf32>
    tpu.vector_store %arg13[%c8_1427, %c160_1428], %732 {strides = array<i32>} : memref<16x288xf32, #tpu.memory_space<vmem>>, vector<4x32xf32>,
    %c4_1429 = arith.constant 4 : index
    %c0_1430 = arith.constant 0 : index
    %c0_1431 = arith.constant 0 : index
    %734 = vector.load %arg10[%c4_1429, %c0_1430, %c0_1431] : memref<6x6x32xf32, #tpu.memory_space<vmem>>, vector<1x4x32xf32>
    %735 = vector.shape_cast %734 : vector<1x4x32xf32> to vector<4x32xf32>
    %c8_1432 = arith.constant 8 : index
    %c192_1433 = arith.constant 192 : index
    %736 = vector.load %arg13[%c8_1432, %c192_1433] : memref<16x288xf32, #tpu.memory_space<vmem>>, vector<4x32xf32>
    tpu.vector_store %arg13[%c8_1432, %c192_1433], %735 {strides = array<i32>} : memref<16x288xf32, #tpu.memory_space<vmem>>, vector<4x32xf32>,
    %c4_1434 = arith.constant 4 : index
    %c1_1435 = arith.constant 1 : index
    %c0_1436 = arith.constant 0 : index
    %737 = vector.load %arg10[%c4_1434, %c1_1435, %c0_1436] : memref<6x6x32xf32, #tpu.memory_space<vmem>>, vector<1x4x32xf32>
    %738 = vector.shape_cast %737 : vector<1x4x32xf32> to vector<4x32xf32>
    %c8_1437 = arith.constant 8 : index
    %c224_1438 = arith.constant 224 : index
    %739 = vector.load %arg13[%c8_1437, %c224_1438] : memref<16x288xf32, #tpu.memory_space<vmem>>, vector<4x32xf32>
    tpu.vector_store %arg13[%c8_1437, %c224_1438], %738 {strides = array<i32>} : memref<16x288xf32, #tpu.memory_space<vmem>>, vector<4x32xf32>,
    %c4_1439 = arith.constant 4 : index
    %c2_1440 = arith.constant 2 : index
    %c0_1441 = arith.constant 0 : index
    %740 = vector.load %arg10[%c4_1439, %c2_1440, %c0_1441] : memref<6x6x32xf32, #tpu.memory_space<vmem>>, vector<1x4x32xf32>
    %741 = vector.shape_cast %740 : vector<1x4x32xf32> to vector<4x32xf32>
    %c8_1442 = arith.constant 8 : index
    %c256_1443 = arith.constant 256 : index
    %742 = vector.load %arg13[%c8_1442, %c256_1443] : memref<16x288xf32, #tpu.memory_space<vmem>>, vector<4x32xf32>
    tpu.vector_store %arg13[%c8_1442, %c256_1443], %741 {strides = array<i32>} : memref<16x288xf32, #tpu.memory_space<vmem>>, vector<4x32xf32>,
    %c3_1444 = arith.constant 3 : index
    %c0_1445 = arith.constant 0 : index
    %c0_1446 = arith.constant 0 : index
    %743 = vector.load %arg10[%c3_1444, %c0_1445, %c0_1446] : memref<6x6x32xf32, #tpu.memory_space<vmem>>, vector<1x4x32xf32>
    %744 = vector.shape_cast %743 : vector<1x4x32xf32> to vector<4x32xf32>
    %c12_1447 = arith.constant 12 : index
    %c0_1448 = arith.constant 0 : index
    %745 = vector.load %arg13[%c12_1447, %c0_1448] : memref<16x288xf32, #tpu.memory_space<vmem>>, vector<4x32xf32>
    tpu.vector_store %arg13[%c12_1447, %c0_1448], %744 {strides = array<i32>} : memref<16x288xf32, #tpu.memory_space<vmem>>, vector<4x32xf32>,
    %c3_1449 = arith.constant 3 : index
    %c1_1450 = arith.constant 1 : index
    %c0_1451 = arith.constant 0 : index
    %746 = vector.load %arg10[%c3_1449, %c1_1450, %c0_1451] : memref<6x6x32xf32, #tpu.memory_space<vmem>>, vector<1x4x32xf32>
    %747 = vector.shape_cast %746 : vector<1x4x32xf32> to vector<4x32xf32>
    %c12_1452 = arith.constant 12 : index
    %c32_1453 = arith.constant 32 : index
    %748 = vector.load %arg13[%c12_1452, %c32_1453] : memref<16x288xf32, #tpu.memory_space<vmem>>, vector<4x32xf32>
    tpu.vector_store %arg13[%c12_1452, %c32_1453], %747 {strides = array<i32>} : memref<16x288xf32, #tpu.memory_space<vmem>>, vector<4x32xf32>,
    %c3_1454 = arith.constant 3 : index
    %c2_1455 = arith.constant 2 : index
    %c0_1456 = arith.constant 0 : index
    %749 = vector.load %arg10[%c3_1454, %c2_1455, %c0_1456] : memref<6x6x32xf32, #tpu.memory_space<vmem>>, vector<1x4x32xf32>
    %750 = vector.shape_cast %749 : vector<1x4x32xf32> to vector<4x32xf32>
    %c12_1457 = arith.constant 12 : index
    %c64_1458 = arith.constant 64 : index
    %751 = vector.load %arg13[%c12_1457, %c64_1458] : memref<16x288xf32, #tpu.memory_space<vmem>>, vector<4x32xf32>
    tpu.vector_store %arg13[%c12_1457, %c64_1458], %750 {strides = array<i32>} : memref<16x288xf32, #tpu.memory_space<vmem>>, vector<4x32xf32>,
    %c4_1459 = arith.constant 4 : index
    %c0_1460 = arith.constant 0 : index
    %c0_1461 = arith.constant 0 : index
    %752 = vector.load %arg10[%c4_1459, %c0_1460, %c0_1461] : memref<6x6x32xf32, #tpu.memory_space<vmem>>, vector<1x4x32xf32>
    %753 = vector.shape_cast %752 : vector<1x4x32xf32> to vector<4x32xf32>
    %c12_1462 = arith.constant 12 : index
    %c96_1463 = arith.constant 96 : index
    %754 = vector.load %arg13[%c12_1462, %c96_1463] : memref<16x288xf32, #tpu.memory_space<vmem>>, vector<4x32xf32>
    tpu.vector_store %arg13[%c12_1462, %c96_1463], %753 {strides = array<i32>} : memref<16x288xf32, #tpu.memory_space<vmem>>, vector<4x32xf32>,
    %c4_1464 = arith.constant 4 : index
    %c1_1465 = arith.constant 1 : index
    %c0_1466 = arith.constant 0 : index
    %755 = vector.load %arg10[%c4_1464, %c1_1465, %c0_1466] : memref<6x6x32xf32, #tpu.memory_space<vmem>>, vector<1x4x32xf32>
    %756 = vector.shape_cast %755 : vector<1x4x32xf32> to vector<4x32xf32>
    %c12_1467 = arith.constant 12 : index
    %c128_1468 = arith.constant 128 : index
    %757 = vector.load %arg13[%c12_1467, %c128_1468] : memref<16x288xf32, #tpu.memory_space<vmem>>, vector<4x32xf32>
    tpu.vector_store %arg13[%c12_1467, %c128_1468], %756 {strides = array<i32>} : memref<16x288xf32, #tpu.memory_space<vmem>>, vector<4x32xf32>,
    %c4_1469 = arith.constant 4 : index
    %c2_1470 = arith.constant 2 : index
    %c0_1471 = arith.constant 0 : index
    %758 = vector.load %arg10[%c4_1469, %c2_1470, %c0_1471] : memref<6x6x32xf32, #tpu.memory_space<vmem>>, vector<1x4x32xf32>
    %759 = vector.shape_cast %758 : vector<1x4x32xf32> to vector<4x32xf32>
    %c12_1472 = arith.constant 12 : index
    %c160_1473 = arith.constant 160 : index
    %760 = vector.load %arg13[%c12_1472, %c160_1473] : memref<16x288xf32, #tpu.memory_space<vmem>>, vector<4x32xf32>
    tpu.vector_store %arg13[%c12_1472, %c160_1473], %759 {strides = array<i32>} : memref<16x288xf32, #tpu.memory_space<vmem>>, vector<4x32xf32>,
    %c5_1474 = arith.constant 5 : index
    %c0_1475 = arith.constant 0 : index
    %c0_1476 = arith.constant 0 : index
    %761 = vector.load %arg10[%c5_1474, %c0_1475, %c0_1476] : memref<6x6x32xf32, #tpu.memory_space<vmem>>, vector<1x4x32xf32>
    %762 = vector.shape_cast %761 : vector<1x4x32xf32> to vector<4x32xf32>
    %c12_1477 = arith.constant 12 : index
    %c192_1478 = arith.constant 192 : index
    %763 = vector.load %arg13[%c12_1477, %c192_1478] : memref<16x288xf32, #tpu.memory_space<vmem>>, vector<4x32xf32>
    tpu.vector_store %arg13[%c12_1477, %c192_1478], %762 {strides = array<i32>} : memref<16x288xf32, #tpu.memory_space<vmem>>, vector<4x32xf32>,
    %c5_1479 = arith.constant 5 : index
    %c1_1480 = arith.constant 1 : index
    %c0_1481 = arith.constant 0 : index
    %764 = vector.load %arg10[%c5_1479, %c1_1480, %c0_1481] : memref<6x6x32xf32, #tpu.memory_space<vmem>>, vector<1x4x32xf32>
    %765 = vector.shape_cast %764 : vector<1x4x32xf32> to vector<4x32xf32>
    %c12_1482 = arith.constant 12 : index
    %c224_1483 = arith.constant 224 : index
    %766 = vector.load %arg13[%c12_1482, %c224_1483] : memref<16x288xf32, #tpu.memory_space<vmem>>, vector<4x32xf32>
    tpu.vector_store %arg13[%c12_1482, %c224_1483], %765 {strides = array<i32>} : memref<16x288xf32, #tpu.memory_space<vmem>>, vector<4x32xf32>,
    %c5_1484 = arith.constant 5 : index
    %c2_1485 = arith.constant 2 : index
    %c0_1486 = arith.constant 0 : index
    %767 = vector.load %arg10[%c5_1484, %c2_1485, %c0_1486] : memref<6x6x32xf32, #tpu.memory_space<vmem>>, vector<1x4x32xf32>
    %768 = vector.shape_cast %767 : vector<1x4x32xf32> to vector<4x32xf32>
    %c12_1487 = arith.constant 12 : index
    %c256_1488 = arith.constant 256 : index
    %769 = vector.load %arg13[%c12_1487, %c256_1488] : memref<16x288xf32, #tpu.memory_space<vmem>>, vector<4x32xf32>
    tpu.vector_store %arg13[%c12_1487, %c256_1488], %768 {strides = array<i32>} : memref<16x288xf32, #tpu.memory_space<vmem>>, vector<4x32xf32>,
    %c0_1489 = arith.constant 0 : index
    %c0_1490 = arith.constant 0 : index
    %770 = vector.load %arg13[%c0_1489, %c0_1490] : memref<16x288xf32, #tpu.memory_space<vmem>>, vector<16x288xf32>
    %771 = arith.truncf %770 : vector<16x288xf32> to vector<16x288xbf16>
    %c0_1491 = arith.constant 0 : index
    %c0_1492 = arith.constant 0 : index
    %772 = vector.load %arg4[%c0_1491, %c0_1492] : memref<288x32xbf16, #tpu.memory_space<vmem>>, vector<288x32xbf16>
    %cst_1493 = arith.constant dense<0.000000e+00> : vector<16x32xf32>
    %773 = tpu.matmul %771, %772, %cst_1493 {dimension_numbers = #tpu.dot_dimension_numbers<[1], [0], [0], [1], [0, 0, 1, 1], [], []>} : vector<16x288xbf16>, vector<288x32xbf16>, vector<16x32xf32> -> vector<16x32xf32>
    %c0_1494 = arith.constant 0 : index
    %c0_1495 = arith.constant 0 : index
    %774 = vector.load %arg7[%c0_1494, %c0_1495] : memref<1x32xf32, #tpu.memory_space<vmem>>, vector<1x32xf32>
    %775 = vector.broadcast %774 : vector<1x32xf32> to vector<16x32xf32>
    %776 = arith.addf %773, %775 : vector<16x32xf32>
    %c0_1496 = arith.constant 0 : index
    %c0_1497 = arith.constant 0 : index
    %c0_1498 = arith.constant 0 : index
    %777 = vector.load %arg8[%c0_1496, %c0_1497, %c0_1498] : memref<1x16x32xf32, #tpu.memory_space<vmem>>, vector<1x16x32xf32>
    %778 = vector.shape_cast %777 : vector<1x16x32xf32> to vector<16x32xf32>
    %779 = vector.shape_cast %776 : vector<16x32xf32> to vector<1x16x32xf32>
    tpu.vector_store %arg8[%c0_1496, %c0_1497, %c0_1498], %779 {strides = array<i32>} : memref<1x16x32xf32, #tpu.memory_space<vmem>>, vector<1x16x32xf32>,
    return
  }
  func.func @transform_0(%arg0: i32) -> (i32, i32, i32, i32, i32) {
    %c0_i32 = arith.constant 0 : i32
    %c0_i32_0 = arith.constant 0 : i32
    %c0_i32_1 = arith.constant 0 : i32
    %c0_i32_2 = arith.constant 0 : i32
    %c0_i32_3 = arith.constant 0 : i32
    return %arg0, %c0_i32, %c0_i32_0, %c0_i32_1, %c0_i32_2 : i32, i32, i32, i32, i32
  }
  func.func @transform_1(%arg0: i32) -> (i32, i32) {
    %c0_i32 = arith.constant 0 : i32
    %c0_i32_0 = arith.constant 0 : i32
    %c0_i32_1 = arith.constant 0 : i32
    return %c0_i32, %c0_i32_0 : i32, i32
  }
  func.func @transform_2(%arg0: i32) -> (i32, i32) {
    %c0_i32 = arith.constant 0 : i32
    %c0_i32_0 = arith.constant 0 : i32
    %c0_i32_1 = arith.constant 0 : i32
    return %c0_i32, %c0_i32_0 : i32, i32
  }
  func.func @transform_3(%arg0: i32) -> (i32, i32) {
    %c0_i32 = arith.constant 0 : i32
    %c0_i32_0 = arith.constant 0 : i32
    %c0_i32_1 = arith.constant 0 : i32
    return %c0_i32, %c0_i32_0 : i32, i32
  }
  func.func @transform_4(%arg0: i32) -> (i32, i32) {
    %c0_i32 = arith.constant 0 : i32
    %c0_i32_0 = arith.constant 0 : i32
    %c0_i32_1 = arith.constant 0 : i32
    return %c0_i32, %c0_i32_0 : i32, i32
  }
  func.func @transform_5(%arg0: i32) -> (i32, i32) {
    %c0_i32 = arith.constant 0 : i32
    %c0_i32_0 = arith.constant 0 : i32
    %c0_i32_1 = arith.constant 0 : i32
    return %c0_i32, %c0_i32_0 : i32, i32
  }
  func.func @transform_6(%arg0: i32) -> (i32, i32) {
    %c0_i32 = arith.constant 0 : i32
    %c0_i32_0 = arith.constant 0 : i32
    %c0_i32_1 = arith.constant 0 : i32
    return %c0_i32, %c0_i32_0 : i32, i32
  }
  func.func @transform_7(%arg0: i32) -> (i32, i32, i32) {
    %c0_i32 = arith.constant 0 : i32
    %c0_i32_0 = arith.constant 0 : i32
    %c0_i32_1 = arith.constant 0 : i32
    return %arg0, %c0_i32, %c0_i32_0 : i32, i32, i32
  }
}

</mosaic_0001>

<bundles_post_ra>
// kernel: stem_forward.1
= control target key start
LH: loop header
LB: loop body
LE: loop exit
PB: predicated region body
PF: predicated region fallthrough
CT: control target
= control target key end

     0   :  { %12 = vsyncpa [#allocation8], 0  ;;  %s3521_s0 = inlined_call_operand.vmem [shape: f32[2,4,18,5,4], index: 0, kind: input, shape index: {}]   ;;  %s3522_s1 = inlined_call_operand.vmem [shape: bf16[36,16], index: 1, kind: input, shape index: {}]   ;;  %s3523_s2 = inlined_call_operand.vmem [shape: bf16[144,32], index: 2, kind: input, shape index: {}]   ;;  %s3524_s3 = inlined_call_operand.vmem [shape: bf16[288,32], index: 3, kind: input, shape index: {}]   ;;  %s3525_s4 = inlined_call_operand.vmem [shape: f32[1,16], index: 4, kind: input, shape index: {}]   ;;  %s3526_s5 = inlined_call_operand.vmem [shape: f32[1,32], index: 5, kind: input, shape index: {}]   ;;  %s3527_s6 = inlined_call_operand.vmem [shape: f32[1,32], index: 6, kind: input, shape index: {}]   ;;  %s3528_s7 = inlined_call_operand.hbm [shape: f32[2,16,32], index: 7, kind: output, shape index: {}]  }
   0x1   :  { %14 = vsyncpa [#allocation8 + $0x1], 0  ;;  %s2700_s24 = smov 0   ;;  %s2702_s25 = smov 0  }
   0x2   :  { %s2704_s26 = smov 0   ;;  %s2706_s27 = smov 0  }
   0x3 LB: > { %s2721_s28 = sadd.s32 4294967295, %s2640_s27   ;;  %s2243_s29 = sadd.s32 4294967294, %s2640_s27   ;;  %s2640_s27 = sphi %s2706_s27, %s3534_s27   ;;  %s2636_s26 = sphi %s2704_s26, %s3533_s26   ;;  %s2632_s25 = sphi %s2702_s25, %s3532_s25   ;;  %s2628_s24 = sphi %s2700_s24, %s3531_s24  }
   0x4   : > { %s2725_s30 = sadd.s32 1, %s2640_s27   ;;  %s179_s8 = sadd.s32 1, %s2636_s26 }
   0x5   : > { %s176_s9 = ssub.s32 %s2640_s27, %s2725_s30  ;;  %p189_p0 = scmp.ne.s32.totalorder %s2636_s26, %s2632_s25 }
   0x6   : > { %p177_p1 = scmp.eq.s32.totalorder %s176_s9, 0  ;;  %p190_p2 = scmp.eq.s32.totalorder %s2721_s28, 1 }
   0x7   : > { %p195_p3 = scmp.ne.s32.totalorder %s2632_s25, %s2628_s24  ;;  %p196_p4 = scmp.eq.s32.totalorder %s2243_s29, 1 }
   0x8   : > { %s2736_s10 = scalar_select %p177_p1, %s2636_s26, %s179_s8  }
   0x9   : > { %p2738_p5 = por %p190_p2, %p189_p0  ;;  %p2742_p6 = por %p196_p4, %p195_p3 }
   0xa   : > { %p2246_p7 = scmp.ge.s32.totalorder %s2640_s27, 1  ;;  %p240_p8 = scmp.lt.s32.totalorder %s2640_s27, 3 }
   0xc   : > { %p241_p9 = pnand %p2246_p7, %p240_p8 }
   0xd   : > { %p272_p10 = scmp.lt.s32.totalorder (!%p241_p9), %s2721_s28, 1  ;;  %s2642_s18 = smov (!%p241_p9), 4   ;;  %vm311_vm0 = vcmask (!%p241_p9), 27648   ;;  %vm319_vm1 = vcmask (!%p241_p9), 60448   ;;  %vm1238_vm2 = vcmask (!%p241_p9), 1041408   ;;  %vm327_vm3 = vcmask (!%p241_p9), 93248  }
   0xe   : > { %244 = sbr.rel (%p241_p9) target bundleno = 1420 (0x58c), region = 48  ;;  %s2643_s19 = smov (!%p241_p9), 8   ;;  %vm335_vm4 = vcmask (!%p241_p9), 126048   ;;  %vm343_vm5 = vcmask (!%p241_p9), 158848   ;;  %vm351_vm6 = vcmask (!%p241_p9), 191648   ;;  %vm359_vm7 = vcmask (!%p241_p9), 224448  }
   0xf   : > { %s2644_s20 = smov (!%p241_p9), 12   ;;  %s2645_s21 = smov (!%p241_p9), 16   ;;  %vm367_vm8 = vcmask (!%p241_p9), 257248   ;;  %vm375_vm9 = vcmask (!%p241_p9), 290048   ;;  %vm1225_vm10 = vcmask (!%p241_p9), 293888   ;;  %vm278_vm11 = vcmask (!%p241_p9), 126976  }
  0x10   : > { %s2646_s22 = smov (!%p241_p9), 20   ;;  %s2647_s23 = smov (!%p241_p9), 24   ;;  %vm282_vm12 = vcmask (!%p241_p9), 122880   ;;  %vm1316_vm13 = vcmask (!%p241_p9), 125952   ;;  %vm1356_vm14 = vcmask (!%p241_p9), 257152   ;;  %vm1363_vm15 = vcmask (!%p241_p9), 388352  }
  0x11   : > { %s2648_s29 = smov (!%p241_p9), 28   ;;  %s2649_s8 = smov (!%p241_p9), 32  }
  0x15   : > { %s273_s13 = scalar_select %p272_p10, %s2721_s28, 1 }
  0x17   : > { %s2491_s14 = smul.u32 576, %s273_s13  ;;  %s2655_s13 = smov 96  }
  0x19   : > { %s2753_s17 = scalar_lea.vmem %s3521_s0, %s2491_s14 }
  0x1a   : > { %v2267_v0 = vld [vmem:[%s2753_s17 + $0xb0] sm:$0xf]  ;;  %v2276_v2 = vld [vmem:[%s2753_s17 + $0xc0] sm:$0xf]  ;;  %v2260_v14 = vld [vmem:[%s2753_s17 + $0x18] sm:$0xf] }
  0x1b   : > { %v2249_v1 = vld [vmem:[%s2753_s17 + $0x90] sm:$0xf]  ;;  %437 = vrot.lane.b32.xlu1 %v2267_v0, %s2642_s18  ;;  %v2258_v3 = vld [vmem:[%s2753_s17 + $0xa0] sm:$0xf]  ;;  %v2251_v15 = vld [vmem:[%s2753_s17 + $0x8] sm:$0xf] }
  0x1c   : > { %316 = vrot.lane.b32.xlu0 %v2249_v1, %s2642_s18  ;;  %v2259_v4 = vld [vmem:[%s2753_s17 + $0x130] sm:$0xf]  ;;  %v2250_v5 = vld [vmem:[%s2753_s17 + $0x120] sm:$0xf]  ;;  %v2278_v19 = vld [vmem:[%s2753_s17 + $0x38] sm:$0xf] }
  0x1d   : > { %v2277_v6 = vld [vmem:[%s2753_s17 + $0x150] sm:$0xf]  ;;  %v2268_v7 = vld [vmem:[%s2753_s17 + $0x140] sm:$0xf]  ;;  %v2269_v20 = vld [vmem:[%s2753_s17 + $0x28] sm:$0xf] }
  0x1e   : > { %v2294_v8 = vld [vmem:[%s2753_s17 + $0xe0] sm:$0xf]  ;;  %v2285_v9 = vld [vmem:[%s2753_s17 + $0xd0] sm:$0xf]  ;;  %v2261_v28 = vld [vmem:[%s2753_s17 + $0xa8] sm:$0xf] }
  0x1f   : > { %493 = vrot.lane.b32.xlu1 %v2276_v2, %s2642_s18  ;;  %v2312_v10 = vld [vmem:[%s2753_s17 + $0x100] sm:$0xf]  ;;  %v2303_v11 = vld [vmem:[%s2753_s17 + $0xf0] sm:$0xf]  ;;  %v2252_v29 = vld [vmem:[%s2753_s17 + $0x98] sm:$0xf] }
  0x20   : > { %381 = vrot.lane.b32.xlu0 %v2258_v3, %s2642_s18  ;;  %v2266_v12 = vld [vmem:[%s2753_s17 + $0x20] sm:$0xf]  ;;  %v2275_v16 = vld [vmem:[%s2753_s17 + $0x30] sm:$0xf]  ;;  %v2279_v30 = vld [vmem:[%s2753_s17 + $0xc8] sm:$0xf] }
  0x21   : > { %v310_v13 = vld [vmem:[%s2753_s17] sm:$0xf]  ;;  %434 = vst.msk [vmem:[#allocation4 + $0x8] sm:$0xf] %vm311_vm0, %v2266_v12  ;;  %490 = vst.msk [vmem:[#allocation4 + $0xc] sm:$0xf] %vm311_vm0, %v2275_v16 }
  0x22   : > { %312 = vst.msk [vmem:[#allocation4] sm:$0xf] %vm311_vm0, %v310_v13  ;;  %v2257_v17 = vld [vmem:[%s2753_s17 + $0x10] sm:$0xf]  ;;  %v2284_v21 = vld [vmem:[%s2753_s17 + $0x40] sm:$0xf] }
  0x23   : > { %387 = vrot.lane.b32.xlu1 %v2259_v4, %s2643_s19  ;;  %378 = vst.msk [vmem:[#allocation4 + $0x4] sm:$0xf] %vm311_vm0, %v2257_v17  ;;  %v2293_v18 = vld [vmem:[%s2753_s17 + $0x50] sm:$0xf]  ;;  %546 = vst.msk [vmem:[#allocation4 + $0x10] sm:$0xf] %vm311_vm0, %v2284_v21 }
  0x24   : > { %324 = vrot.lane.b32.xlu0 %v2250_v5, %s2643_s19  ;;  %602 = vst.msk [vmem:[#allocation4 + $0x14] sm:$0xf] %vm311_vm0, %v2293_v18  ;;  %v2311_v22 = vld [vmem:[%s2753_s17 + $0x70] sm:$0xf]  ;;  %v2302_v23 = vld [vmem:[%s2753_s17 + $0x60] sm:$0xf] }
  0x25   : > { %714 = vst.msk [vmem:[#allocation4 + $0x1c] sm:$0xf] %vm311_vm0, %v2311_v22  ;;  %658 = vst.msk [vmem:[#allocation4 + $0x18] sm:$0xf] %vm311_vm0, %v2302_v23  ;;  %v2295_v24 = vld [vmem:[%s2753_s17 + $0x170] sm:$0xf] }
  0x26   : > { %v2286_v25 = vld [vmem:[%s2753_s17 + $0x160] sm:$0xf]  ;;  %v2313_v26 = vld [vmem:[%s2753_s17 + $0x190] sm:$0xf]  ;;  %v2270_v31 = vld [vmem:[%s2753_s17 + $0xb8] sm:$0xf] }
  0x27   : > { %499 = vrot.lane.b32.xlu1 %v2277_v6, %s2643_s19  ;;  %v2304_v27 = vld [vmem:[%s2753_s17 + $0x180] sm:$0xf]  ;;  %v2296_v32 = vld [vmem:[%s2753_s17 + $0x58] sm:$0xf]  ;;  %v2287_v33 = vld [vmem:[%s2753_s17 + $0x48] sm:$0xf] }
  0x28   : > { %443 = vrot.lane.b32.xlu0 %v2268_v7, %s2643_s19  ;;  %v2314_v34 = vld [vmem:[%s2753_s17 + $0x78] sm:$0xf]  ;;  %v2305_v35 = vld [vmem:[%s2753_s17 + $0x68] sm:$0xf]  ;;  %v2263_v44 = vld [vmem:[%s2753_s17 + $0x20] sm:$0xf] }
  0x29   : > { %v2262_v36 = vld [vmem:[%s2753_s17 + $0x138] sm:$0xf]  ;;  %v2253_v37 = vld [vmem:[%s2753_s17 + $0x128] sm:$0xf]  ;;  %v2254_v45 = vld [vmem:[%s2753_s17 + $0x10] sm:$0xf] }
  0x2a   : > { %v2280_v38 = vld [vmem:[%s2753_s17 + $0x158] sm:$0xf]  ;;  %v2271_v39 = vld [vmem:[%s2753_s17 + $0x148] sm:$0xf]  ;;  %v2281_v46 = vld [vmem:[%s2753_s17 + $0x40] sm:$0xf] }
  0x2b   : > { %605 = vrot.lane.b32.xlu1 %v2294_v8, %s2642_s18  ;;  %v2297_v40 = vld [vmem:[%s2753_s17 + $0xe8] sm:$0xf]  ;;  %v2288_v41 = vld [vmem:[%s2753_s17 + $0xd8] sm:$0xf]  ;;  %v2272_v47 = vld [vmem:[%s2753_s17 + $0x30] sm:$0xf] }
  0x2c   : > { %549 = vrot.lane.b32.xlu0 %v2285_v9, %s2642_s18  ;;  %v2315_v42 = vld [vmem:[%s2753_s17 + $0x108] sm:$0xf]  ;;  %v2306_v43 = vld [vmem:[%s2753_s17 + $0xf8] sm:$0xf]  ;;  %v2264_v52 = vld [vmem:[%s2753_s17 + $0xb0] sm:$0xf] }
  0x2d   : > { %v2298_v48 = vld [vmem:[%s2753_s17 + $0x178] sm:$0xf]  ;;  %v2289_v49 = vld [vmem:[%s2753_s17 + $0x168] sm:$0xf]  ;;  %v2255_v53 = vld [vmem:[%s2753_s17 + $0xa0] sm:$0xf] }
  0x2e   : > { %v2316_v50 = vld [vmem:[%s2753_s17 + $0x198] sm:$0xf]  ;;  %v2307_v51 = vld [vmem:[%s2753_s17 + $0x188] sm:$0xf]  ;;  %v2282_v54 = vld [vmem:[%s2753_s17 + $0xd0] sm:$0xf] }
  0x2f   : > { %717 = vrot.lane.b32.xlu1 %v2312_v10, %s2642_s18  ;;  %v2273_v55 = vld [vmem:[%s2753_s17 + $0xc0] sm:$0xf]  ;;  %v2290_v57 = vld [vmem:[%s2753_s17 + $0x50] sm:$0xf]  ;;  %v2549_v3 = vld [vmem:[%s3522_s1 + $0x8] sm:$0xff]  }
  0x30   : > { %661 = vrot.lane.b32.xlu0 %v2303_v11, %s2642_s18  ;;  %v2299_v56 = vld [vmem:[%s2753_s17 + $0x60] sm:$0xf]  ;;  %v2308_v59 = vld [vmem:[%s2753_s17 + $0x70] sm:$0xf] }
  0x31   : > { %v2317_v58 = vld [vmem:[%s2753_s17 + $0x80] sm:$0xf]  ;;  %v2256_v61 = vld [vmem:[%s2753_s17 + $0x130] sm:$0xf] }
  0x32   : > { %v2265_v60 = vld [vmem:[%s2753_s17 + $0x140] sm:$0xf]  ;;  %v2274_v63 = vld [vmem:[%s2753_s17 + $0x150] sm:$0xf] }
  0x33   : > { %394 = vrot.lane.b32.xlu1 %v2260_v14, %s2644_s20  ;;  %v2283_v62 = vld [vmem:[%s2753_s17 + $0x160] sm:$0xf]  ;;  %v2300_v1 = vld [vmem:[%s2753_s17 + $0xf0] sm:$0xf] }
  0x34   : > { %332 = vrot.lane.b32.xlu0 %v2251_v15, %s2644_s20  ;;  %v2548_v0 = vld [vmem:[%s3522_s1] sm:$0xff]   ;;  %v2328_v4 = vld [vmem:[%s2753_s17 + $0x130] sm:$0xf] }
  0x35   : > { %v2291_v2 = vld [vmem:[%s2753_s17 + $0xe0] sm:$0xf]  ;;  %2468 = vmatprep.subr.bf16.mxu0 %v2548_v0  ;;  %v2318_v5 = vld [vmem:[%s2753_s17 + $0x110] sm:$0xf]  ;;  %823 = vst.msk [vmem:[#allocation4 + $0x24] sm:$0xf] %vm311_vm0, %v2328_v4 }
  0x36   : > { %2469 = vmatpush3.bf16.msra.mxu0 %v2548_v0  ;;  %v2309_v6 = vld [vmem:[%s2753_s17 + $0x100] sm:$0xf]  ;;  %v2550_v10 = vld [vmem:[%s3522_s1 + $0x10] ss:$0 sps:$4 sm:$0x33]  }
  0x37   : > { %506 = vrot.lane.b32.xlu1 %v2278_v19, %s2644_s20  ;;  %2470 = vmatprep.subr.bf16.mxu0 %v2549_v3  ;;  %v2320_v7 = vld [vmem:[%s2753_s17 + $0x120] sm:$0xf]  ;;  %v2346_v11 = vld [vmem:[%s2753_s17 + $0x150] sm:$0xf]  ;;  %v1240_v17 = vsel %vm1238_vm2, %v2550_v10, 0 }
  0x38   : > { %450 = vrot.lane.b32.xlu0 %v2269_v20, %s2644_s20  ;;  %770 = vst.msk [vmem:[#allocation4 + $0x20] sm:$0xf] %vm311_vm0, %v2320_v7  ;;  %v2301_v12 = vld [vmem:[%s2753_s17 + $0x180] sm:$0xf]  ;;  %v2292_v13 = vld [vmem:[%s2753_s17 + $0x170] sm:$0xf] }
  0x39   : > { %927 = vst.msk [vmem:[#allocation4 + $0x2c] sm:$0xf] %vm311_vm0, %v2346_v11  ;;  %v2337_v14 = vld [vmem:[%s2753_s17 + $0x140] sm:$0xf]  ;;  %v2310_v19 = vld [vmem:[%s2753_s17 + $0x190] sm:$0xf] }
  0x3a   : > { %2471 = vmatpush3.bf16.msra.mxu0 %v2549_v3  ;;  %875 = vst.msk [vmem:[#allocation4 + $0x28] sm:$0xf] %vm311_vm0, %v2337_v14  ;;  %v2319_v18 = vld [vmem:[%s2753_s17 + $0x1a0] sm:$0xf]  ;;  %v2321_v23 = vld [vmem:[%s2753_s17 + $0x1b0] sm:$0xf] }
  0x3b   : > { %611 = vrot.lane.b32.xlu1 %v2295_v24, %s2643_s19  ;;  %2490 = vmatprep.subr.msk.bf16.mxu0 %vm1238_vm2, %v2550_v10  ;;  %v2329_v22 = vld [vmem:[%s2753_s17 + $0x1c0] sm:$0xf]  ;;  %v2323_v3 = vld [vmem:[%s2753_s17 + $0x1b8] sm:$0xf]  ;;  %v2358_v11 = vld [vmem:[%s2753_s17 + $0x168] sm:$0xf] }
  0x3c   : > { %555 = vrot.lane.b32.xlu0 %v2286_v25, %s2643_s19  ;;  %v2341_v7 = vld [vmem:[%s2753_s17 + $0x1d8] sm:$0xf]  ;;  %vm1658_vm2 = vcmask 130048  }
  0x3d   : > { %v2367_v10 = vld [vmem:[%s2753_s17 + $0x178] sm:$0xf] }
  0x3e   : > { %2473 = vmatpush3.bf16.msra.mxu0 %v1240_v17  ;;  %v2385_v14 = vld [vmem:[%s2753_s17 + $0x198] sm:$0xf] }
  0x3f   : > { %723 = vrot.lane.b32.xlu1 %v2313_v26, %s2643_s19  ;;  %v2364_v26 = vld [vmem:[%s2753_s17 + $0x170] sm:$0xf] }
  0x40   : > { %667 = vrot.lane.b32.xlu0 %v2304_v27, %s2643_s19  ;;  %1031 = vst.msk [vmem:[#allocation4 + $0x34] sm:$0xf] %vm311_vm0, %v2364_v26  ;;  %v2347_v27 = vld [vmem:[%s2753_s17 + $0x1e0] sm:$0xf]  ;;  %v2368_v26 = vld [vmem:[%s2753_s17 + $0x208] sm:$0xf] }
  0x43   : > { %401 = vrot.lane.b32.xlu1 %v2261_v28, %s2645_s21  ;;  %v2338_v28 = vld [vmem:[%s2753_s17 + $0x1d0] sm:$0xf] }
  0x44   : > { %340 = vrot.lane.b32.xlu0 %v2252_v29, %s2645_s21  ;;  %v2355_v29 = vld [vmem:[%s2753_s17 + $0x160] sm:$0xf] }
  0x45   : > { %979 = vst.msk [vmem:[#allocation4 + $0x30] sm:$0xf] %vm311_vm0, %v2355_v29 }
  0x47   : > { %513 = vrot.lane.b32.xlu1 %v2279_v30, %s2645_s21 }
  0x48   : > { %457 = vrot.lane.b32.xlu0 %v2270_v31, %s2645_s21 }
  0x4b   : > { %618 = vrot.lane.b32.xlu1 %v2296_v32, %s2644_s20  ;;  %v2382_v32 = vld [vmem:[%s2753_s17 + $0x190] sm:$0xf] }
  0x4c   : > { %562 = vrot.lane.b32.xlu0 %v2287_v33, %s2644_s20  ;;  %1135 = vst.msk [vmem:[#allocation4 + $0x3c] sm:$0xf] %vm311_vm0, %v2382_v32  ;;  %v2330_v33 = vld [vmem:[%s2753_s17 + $0x11] sm:$0xf] }
  0x4f   : > { %730 = vrot.lane.b32.xlu1 %v2314_v34, %s2644_s20  ;;  %v778_v34 = vld [vmem:[%s2753_s17 + $0x1] sm:$0xf] }
  0x50   : > { %674 = vrot.lane.b32.xlu0 %v2305_v35, %s2644_s20  ;;  %v2373_v35 = vld [vmem:[%s2753_s17 + $0x180] sm:$0xf] }
  0x51   : > { %1083 = vst.msk [vmem:[#allocation4 + $0x38] sm:$0xf] %vm311_vm0, %v2373_v35  ;;  %v2325_v35 = vld [vmem:[%s2753_s17 + $0x130] sm:$0xf]  ;;  %vm1319_vm0 = vcmask 130052  }
  0x53   : > { %408 = vrot.lane.b32.xlu1 %v2262_v36, %s2646_s22 }
  0x54   : > { %348 = vrot.lane.b32.xlu0 %v2253_v37, %s2646_s22 }
  0x57   : > { %520 = vrot.lane.b32.xlu1 %v2280_v38, %s2646_s22  ;;  %v2348_v38 = vld [vmem:[%s2753_s17 + $0x31] sm:$0xf] }
  0x58   : > { %464 = vrot.lane.b32.xlu0 %v2271_v39, %s2646_s22  ;;  %v2339_v39 = vld [vmem:[%s2753_s17 + $0x21] sm:$0xf] }
  0x5b   : > { %625 = vrot.lane.b32.xlu1 %v2297_v40, %s2645_s21 }
  0x5c   : > { %569 = vrot.lane.b32.xlu0 %v2288_v41, %s2645_s21 }
  0x5f   : > { %737 = vrot.lane.b32.xlu1 %v2315_v42, %s2645_s21  ;;  %v2365_v42 = vld [vmem:[%s2753_s17 + $0x200] sm:$0xf] }
  0x60   : > { %681 = vrot.lane.b32.xlu0 %v2306_v43, %s2645_s21  ;;  %v2356_v43 = vld [vmem:[%s2753_s17 + $0x1f0] sm:$0xf] }
  0x63   : > { %415 = vrot.lane.b32.xlu1 %v2263_v44, %s2647_s23 }
  0x64   : > { %356 = vrot.lane.b32.xlu0 %v2254_v45, %s2647_s23 }
  0x67   : > { %527 = vrot.lane.b32.xlu1 %v2281_v46, %s2647_s23  ;;  %v2383_v46 = vld [vmem:[%s2753_s17 + $0x220] sm:$0xf] }
  0x68   : > { %471 = vrot.lane.b32.xlu0 %v2272_v47, %s2647_s23  ;;  %v2374_v47 = vld [vmem:[%s2753_s17 + $0x210] sm:$0xf] }
  0x6b   : > { %632 = vrot.lane.b32.xlu1 %v2298_v48, %s2646_s22 }
  0x6c   : > { %576 = vrot.lane.b32.xlu0 %v2289_v49, %s2646_s22 }
  0x6f   : > { %744 = vrot.lane.b32.xlu1 %v2316_v50, %s2646_s22  ;;  %v2331_v50 = vld [vmem:[%s2753_s17 + $0x138] sm:$0xf] }
  0x70   : > { %688 = vrot.lane.b32.xlu0 %v2307_v51, %s2646_s22  ;;  %v2322_v51 = vld [vmem:[%s2753_s17 + $0x128] sm:$0xf] }
  0x73   : > { %422 = vrot.lane.b32.xlu1 %v2264_v52, %s2648_s29 }
  0x74   : > { %364 = vrot.lane.b32.xlu0 %v2255_v53, %s2648_s29 }
  0x77   : > { %534 = vrot.lane.b32.xlu1 %v2282_v54, %s2648_s29  ;;  %v2349_v54 = vld [vmem:[%s2753_s17 + $0x158] sm:$0xf] }
  0x78   : > { %478 = vrot.lane.b32.xlu0 %v2273_v55, %s2648_s29  ;;  %v2340_v55 = vld [vmem:[%s2753_s17 + $0x148] sm:$0xf] }
  0x7b   : > { %639 = vrot.lane.b32.xlu1 %v2299_v56, %s2647_s23 }
  0x7c   : > { %583 = vrot.lane.b32.xlu0 %v2290_v57, %s2647_s23 }
  0x7f   : > { %751 = vrot.lane.b32.xlu1 %v2317_v58, %s2647_s23  ;;  %v2366_v58 = vld [vmem:[%s2753_s17 + $0x51] sm:$0xf] }
  0x80   : > { %695 = vrot.lane.b32.xlu0 %v2308_v59, %s2647_s23  ;;  %v2357_v59 = vld [vmem:[%s2753_s17 + $0x41] sm:$0xf] }
  0x83   : > { %429 = vrot.lane.b32.xlu1 %v2265_v60, %s2649_s8 }
  0x84   : > { %372 = vrot.lane.b32.xlu0 %v2256_v61, %s2649_s8 }
  0x87   : > { %541 = vrot.lane.b32.xlu1 %v2283_v62, %s2649_s8  ;;  %v2384_v62 = vld [vmem:[%s2753_s17 + $0x71] sm:$0xf] }
  0x88   : > { %485 = vrot.lane.b32.xlu0 %v2274_v63, %s2649_s8  ;;  %v2375_v63 = vld [vmem:[%s2753_s17 + $0x61] sm:$0xf] }
  0x8b   : > { %646 = vrot.lane.b32.xlu1 %v2300_v1, %s2648_s29 }
  0x8c   : > { %590 = vrot.lane.b32.xlu0 %v2291_v2, %s2648_s29  ;;  %v2332_v2 = vld [vmem:[%s2753_s17 + $0x1c8] sm:$0xf] }
  0x8d   : > { %v438_v8 = vpop.permute.xlu1 %437 }
  0x8e   : > { %v317_v9 = vpop.permute.xlu0 %316  ;;  %440 = vst.msk [vmem:[#allocation4 + $0x8] sm:$0xf] %vm319_vm1, %v438_v8 }
  0x8f   : > { %320 = vst.msk [vmem:[#allocation4] sm:$0xf] %vm319_vm1, %v317_v9  ;;  %758 = vrot.lane.b32.xlu1 %v2318_v5, %s2648_s29 }
  0x90   : > { %702 = vrot.lane.b32.xlu0 %v2309_v6, %s2648_s29  ;;  %v2350_v6 = vld [vmem:[%s2753_s17 + $0x1e8] sm:$0xf] }
  0x91   : > { %v494_v15 = vpop.permute.xlu1 %493 }
  0x92   : > { %v382_v16 = vpop.permute.xlu0 %381  ;;  %496 = vst.msk [vmem:[#allocation4 + $0xc] sm:$0xf] %vm319_vm1, %v494_v15  ;;  %v2376_v15 = vld [vmem:[%s2753_s17 + $0x188] sm:$0xf] }
  0x93   : > { %384 = vst.msk [vmem:[#allocation4 + $0x4] sm:$0xf] %vm319_vm1, %v382_v16  ;;  %653 = vrot.lane.b32.xlu1 %v2301_v12, %s2649_s8 }
  0x94   : > { %597 = vrot.lane.b32.xlu0 %v2292_v13, %s2649_s8 }
  0x95   : > { %v388_v20 = vpop.permute.xlu1 %387 }
  0x96   : > { %v325_v21 = vpop.permute.xlu0 %324  ;;  %390 = vst.msk [vmem:[#allocation4 + $0x4] sm:$0xf] %vm327_vm3, %v388_v20 }
  0x97   : > { %328 = vst.msk [vmem:[#allocation4] sm:$0xf] %vm327_vm3, %v325_v21  ;;  %765 = vrot.lane.b32.xlu1 %v2319_v18, %s2649_s8  ;;  %v2333_v18 = vld [vmem:[%s2753_s17 + $0x19] sm:$0xf] }
  0x98   : > { %709 = vrot.lane.b32.xlu0 %v2310_v19, %s2649_s8  ;;  %v2324_v19 = vld [vmem:[%s2753_s17 + $0x9] sm:$0xf] }
  0x99   : > { %v500_v24 = vpop.permute.xlu1 %499 }
  0x9a   : > { %v444_v25 = vpop.permute.xlu0 %443  ;;  %502 = vst.msk [vmem:[#allocation4 + $0xc] sm:$0xf] %vm327_vm3, %v500_v24 }
  0x9b   : > { %446 = vst.msk [vmem:[#allocation4 + $0x8] sm:$0xf] %vm327_vm3, %v444_v25  ;;  %826 = vrot.lane.b32.xlu1 %v2329_v22, %s2642_s18  ;;  %v2351_v22 = vld [vmem:[%s2753_s17 + $0x39] sm:$0xf] }
  0x9c   : > { %774 = vrot.lane.b32.xlu0 %v2321_v23, %s2642_s18  ;;  %v2342_v23 = vld [vmem:[%s2753_s17 + $0x29] sm:$0xf] }
  0x9d   : > { %v606_v30 = vpop.permute.xlu1 %605 }
  0x9e   : > { %v550_v31 = vpop.permute.xlu0 %549  ;;  %608 = vst.msk [vmem:[#allocation4 + $0x14] sm:$0xf] %vm319_vm1, %v606_v30  ;;  %v2386_v30 = vld [vmem:[%s2753_s17 + $0x228] sm:$0xf] }
  0x9f   : > { %552 = vst.msk [vmem:[#allocation4 + $0x10] sm:$0xf] %vm319_vm1, %v550_v31  ;;  %930 = vrot.lane.b32.xlu1 %v2347_v27, %s2642_s18  ;;  %v2359_v27 = vld [vmem:[%s2753_s17 + $0x1f8] sm:$0xf] }
  0xa0   : > { %878 = vrot.lane.b32.xlu0 %v2338_v28, %s2642_s18  ;;  %v2377_v31 = vld [vmem:[%s2753_s17 + $0x218] sm:$0xf] }
  0xa1   : > { %v718_v36 = vpop.permute.xlu1 %717 }
  0xa2   : > { %v662_v37 = vpop.permute.xlu0 %661  ;;  %720 = vst.msk [vmem:[#allocation4 + $0x1c] sm:$0xf] %vm319_vm1, %v718_v36 }
  0xa3   : > { %664 = vst.msk [vmem:[#allocation4 + $0x18] sm:$0xf] %vm319_vm1, %v662_v37  ;;  %832 = vrot.lane.b32.xlu1 %v2330_v33, %s2643_s19 }
  0xa4   : > { %780 = vrot.lane.b32.xlu0 %v778_v34, %s2643_s19  ;;  %v2334_v34 = vld [vmem:[%s2753_s17 + $0x140] sm:$0xf] }
  0xa5   : > { %v395_v40 = vpop.permute.xlu1 %394 }
  0xa6   : > { %v333_v41 = vpop.permute.xlu0 %332  ;;  %397 = vst.msk [vmem:[#allocation4 + $0x4] sm:$0xf] %vm335_vm4, %v395_v40 }
  0xa7   : > { %336 = vst.msk [vmem:[#allocation4] sm:$0xf] %vm335_vm4, %v333_v41  ;;  %936 = vrot.lane.b32.xlu1 %v2348_v38, %s2643_s19  ;;  %v2352_v38 = vld [vmem:[%s2753_s17 + $0x160] sm:$0xf] }
  0xa8   : > { %884 = vrot.lane.b32.xlu0 %v2339_v39, %s2643_s19  ;;  %v2343_v39 = vld [vmem:[%s2753_s17 + $0x150] sm:$0xf] }
  0xa9   : > { %v507_v44 = vpop.permute.xlu1 %506 }
  0xaa   : > { %v451_v45 = vpop.permute.xlu0 %450  ;;  %509 = vst.msk [vmem:[#allocation4 + $0xc] sm:$0xf] %vm335_vm4, %v507_v44 }
  0xab   : > { %453 = vst.msk [vmem:[#allocation4 + $0x8] sm:$0xf] %vm335_vm4, %v451_v45  ;;  %1034 = vrot.lane.b32.xlu1 %v2365_v42, %s2642_s18  ;;  %v2369_v42 = vld [vmem:[%s2753_s17 + $0x59] sm:$0xf] }
  0xac   : > { %982 = vrot.lane.b32.xlu0 %v2356_v43, %s2642_s18  ;;  %v2360_v43 = vld [vmem:[%s2753_s17 + $0x49] sm:$0xf] }
  0xad   : > { %v612_v48 = vpop.permute.xlu1 %611 }
  0xae   : > { %v556_v49 = vpop.permute.xlu0 %555  ;;  %614 = vst.msk [vmem:[#allocation4 + $0x14] sm:$0xf] %vm327_vm3, %v612_v48 }
  0xaf   : > { %558 = vst.msk [vmem:[#allocation4 + $0x10] sm:$0xf] %vm327_vm3, %v556_v49  ;;  %1138 = vrot.lane.b32.xlu1 %v2383_v46, %s2642_s18  ;;  %v2387_v46 = vld [vmem:[%s2753_s17 + $0x79] sm:$0xf] }
  0xb0   : > { %1086 = vrot.lane.b32.xlu0 %v2374_v47, %s2642_s18  ;;  %v2378_v47 = vld [vmem:[%s2753_s17 + $0x69] sm:$0xf] }
  0xb1   : > { %v724_v52 = vpop.permute.xlu1 %723 }
  0xb2   : > { %v668_v53 = vpop.permute.xlu0 %667  ;;  %726 = vst.msk [vmem:[#allocation4 + $0x1c] sm:$0xf] %vm327_vm3, %v724_v52 }
  0xb3   : > { %670 = vst.msk [vmem:[#allocation4 + $0x18] sm:$0xf] %vm327_vm3, %v668_v53  ;;  %838 = vrot.lane.b32.xlu1 %v2331_v50, %s2644_s20  ;;  %v2335_v50 = vld [vmem:[%s2753_s17 + $0x1d0] sm:$0xf] }
  0xb4   : > { %786 = vrot.lane.b32.xlu0 %v2322_v51, %s2644_s20  ;;  %v2326_v51 = vld [vmem:[%s2753_s17 + $0x1c0] sm:$0xf] }
  0xb5   : > { %v402_v56 = vpop.permute.xlu1 %401 }
  0xb6   : > { %v341_v57 = vpop.permute.xlu0 %340  ;;  %404 = vst.msk [vmem:[#allocation4 + $0x4] sm:$0xf] %vm343_vm5, %v402_v56 }
  0xb7   : > { %344 = vst.msk [vmem:[#allocation4] sm:$0xf] %vm343_vm5, %v341_v57  ;;  %942 = vrot.lane.b32.xlu1 %v2349_v54, %s2644_s20  ;;  %v2353_v54 = vld [vmem:[%s2753_s17 + $0x1f0] sm:$0xf] }
  0xb8   : > { %890 = vrot.lane.b32.xlu0 %v2340_v55, %s2644_s20  ;;  %v2344_v55 = vld [vmem:[%s2753_s17 + $0x1e0] sm:$0xf] }
  0xb9   : > { %v514_v60 = vpop.permute.xlu1 %513 }
  0xba   : > { %v458_v61 = vpop.permute.xlu0 %457  ;;  %516 = vst.msk [vmem:[#allocation4 + $0xc] sm:$0xf] %vm343_vm5, %v514_v60 }
  0xbb   : > { %460 = vst.msk [vmem:[#allocation4 + $0x8] sm:$0xf] %vm343_vm5, %v458_v61  ;;  %1040 = vrot.lane.b32.xlu1 %v2366_v58, %s2643_s19  ;;  %v2370_v58 = vld [vmem:[%s2753_s17 + $0x180] sm:$0xf] }
  0xbc   : > { %988 = vrot.lane.b32.xlu0 %v2357_v59, %s2643_s19  ;;  %v2361_v59 = vld [vmem:[%s2753_s17 + $0x170] sm:$0xf] }
  0xbd   : > { %v619_v0 = vpop.permute.xlu1 %618 }
  0xbe   : > { %v563_v1 = vpop.permute.xlu0 %562  ;;  %621 = vst.msk [vmem:[#allocation4 + $0x14] sm:$0xf] %vm335_vm4, %v619_v0 }
  0xbf   : > { %565 = vst.msk [vmem:[#allocation4 + $0x10] sm:$0xf] %vm335_vm4, %v563_v1  ;;  %1144 = vrot.lane.b32.xlu1 %v2384_v62, %s2643_s19  ;;  %v2388_v62 = vld [vmem:[%s2753_s17 + $0x1a0] sm:$0xf] }
  0xc0   : > { %1092 = vrot.lane.b32.xlu0 %v2375_v63, %s2643_s19  ;;  %v2379_v63 = vld [vmem:[%s2753_s17 + $0x190] sm:$0xf] }
  0xc1   : > { %v731_v4 = vpop.permute.xlu1 %730 }
  0xc2   : > { %v675_v5 = vpop.permute.xlu0 %674  ;;  %733 = vst.msk [vmem:[#allocation4 + $0x1c] sm:$0xf] %vm335_vm4, %v731_v4 }
  0xc3   : > { %677 = vst.msk [vmem:[#allocation4 + $0x18] sm:$0xf] %vm335_vm4, %v675_v5  ;;  %845 = vrot.lane.b32.xlu1 %v2332_v2, %s2645_s21  ;;  %v2336_v2 = vld [vmem:[%s2753_s17 + $0x21] sm:$0xf] }
  0xc4   : > { %793 = vrot.lane.b32.xlu0 %v2323_v3, %s2645_s21  ;;  %v2327_v3 = vld [vmem:[%s2753_s17 + $0x11] sm:$0xf] }
  0xc5   : > { %v409_v8 = vpop.permute.xlu1 %408 }
  0xc6   : > { %v349_v9 = vpop.permute.xlu0 %348  ;;  %411 = vst.msk [vmem:[#allocation4 + $0x4] sm:$0xf] %vm351_vm6, %v409_v8 }
  0xc7   : > { %352 = vst.msk [vmem:[#allocation4] sm:$0xf] %vm351_vm6, %v349_v9  ;;  %949 = vrot.lane.b32.xlu1 %v2350_v6, %s2645_s21  ;;  %v2354_v9 = vld [vmem:[%s2753_s17 + $0x41] sm:$0xf] }
  0xc8   : > { %897 = vrot.lane.b32.xlu0 %v2341_v7, %s2645_s21 }
  0xc9   : > { %v521_v12 = vpop.permute.xlu1 %520 }
  0xca   : > { %v465_v13 = vpop.permute.xlu0 %464  ;;  %523 = vst.msk [vmem:[#allocation4 + $0xc] sm:$0xf] %vm351_vm6, %v521_v12 }
  0xcb   : > { %467 = vst.msk [vmem:[#allocation4 + $0x8] sm:$0xf] %vm351_vm6, %v465_v13  ;;  %1046 = vrot.lane.b32.xlu1 %v2367_v10, %s2644_s20  ;;  %v2345_v10 = vld [vmem:[%s2753_s17 + $0x31] sm:$0xf] }
  0xcc   : > { %994 = vrot.lane.b32.xlu0 %v2358_v11, %s2644_s20  ;;  %v2371_v13 = vld [vmem:[%s2753_s17 + $0x210] sm:$0xf] }
  0xcd   : > { %v626_v16 = vpop.permute.xlu1 %625 }
  0xce   : > { %v570_v17 = vpop.permute.xlu0 %569  ;;  %628 = vst.msk [vmem:[#allocation4 + $0x14] sm:$0xf] %vm343_vm5, %v626_v16 }
  0xcf   : > { %572 = vst.msk [vmem:[#allocation4 + $0x10] sm:$0xf] %vm343_vm5, %v570_v17  ;;  %1150 = vrot.lane.b32.xlu1 %v2385_v14, %s2644_s20  ;;  %v2362_v14 = vld [vmem:[%s2753_s17 + $0x200] sm:$0xf]  ;;  %v2389_v17 = vld [vmem:[%s2753_s17 + $0x230] sm:$0xf] }
  0xd0   : > { %1098 = vrot.lane.b32.xlu0 %v2376_v15, %s2644_s20  ;;  %s2651_s20 = smov 64  }
  0xd1   : > { %v738_v20 = vpop.permute.xlu1 %737 }
  0xd2   : > { %v682_v21 = vpop.permute.xlu0 %681  ;;  %740 = vst.msk [vmem:[#allocation4 + $0x1c] sm:$0xf] %vm343_vm5, %v738_v20 }
  0xd3   : > { %684 = vst.msk [vmem:[#allocation4 + $0x18] sm:$0xf] %vm343_vm5, %v682_v21  ;;  %851 = vrot.lane.b32.xlu1 %v2333_v18, %s2646_s22  ;;  %v2380_v18 = vld [vmem:[%s2753_s17 + $0x220] sm:$0xf] }
  0xd4   : > { %799 = vrot.lane.b32.xlu0 %v2324_v19, %s2646_s22  ;;  %v2372_v21 = vld [vmem:[%s2753_s17 + $0x61] sm:$0xf] }
  0xd5   : > { %v416_v24 = vpop.permute.xlu1 %415 }
  0xd6   : > { %v357_v25 = vpop.permute.xlu0 %356  ;;  %418 = vst.msk [vmem:[#allocation4 + $0x4] sm:$0xf] %vm359_vm7, %v416_v24 }
  0xd7   : > { %360 = vst.msk [vmem:[#allocation4] sm:$0xf] %vm359_vm7, %v357_v25  ;;  %955 = vrot.lane.b32.xlu1 %v2351_v22, %s2646_s22  ;;  %v2363_v22 = vld [vmem:[%s2753_s17 + $0x51] sm:$0xf] }
  0xd8   : > { %903 = vrot.lane.b32.xlu0 %v2342_v23, %s2646_s22 }
  0xd9   : > { %v528_v28 = vpop.permute.xlu1 %527 }
  0xda   : > { %v472_v29 = vpop.permute.xlu0 %471  ;;  %530 = vst.msk [vmem:[#allocation4 + $0xc] sm:$0xf] %vm359_vm7, %v528_v28  ;;  %v2390_v28 = vld [vmem:[%s2753_s17 + $0x81] sm:$0xf] }
  0xdb   : > { %474 = vst.msk [vmem:[#allocation4 + $0x8] sm:$0xf] %vm359_vm7, %v472_v29  ;;  %1053 = vrot.lane.b32.xlu1 %v2368_v26, %s2645_s21  ;;  %v2381_v29 = vld [vmem:[%s2753_s17 + $0x71] sm:$0xf]  ;;  %s2656_s17 = smov 112  }
  0xdc   : > { %1001 = vrot.lane.b32.xlu0 %v2359_v27, %s2645_s21 }
  0xdd   : > { %v633_v32 = vpop.permute.xlu1 %632 }
  0xde   : > { %v577_v33 = vpop.permute.xlu0 %576  ;;  %635 = vst.msk [vmem:[#allocation4 + $0x14] sm:$0xf] %vm351_vm6, %v633_v32 }
  0xdf   : > { %579 = vst.msk [vmem:[#allocation4 + $0x10] sm:$0xf] %vm351_vm6, %v577_v33  ;;  %1157 = vrot.lane.b32.xlu1 %v2386_v30, %s2645_s21 }
  0xe0   : > { %1105 = vrot.lane.b32.xlu0 %v2377_v31, %s2645_s21 }
  0xe1   : > { %v745_v36 = vpop.permute.xlu1 %744 }
  0xe2   : > { %v689_v37 = vpop.permute.xlu0 %688  ;;  %747 = vst.msk [vmem:[#allocation4 + $0x1c] sm:$0xf] %vm351_vm6, %v745_v36 }
  0xe3   : > { %691 = vst.msk [vmem:[#allocation4 + $0x18] sm:$0xf] %vm351_vm6, %v689_v37  ;;  %857 = vrot.lane.b32.xlu1 %v2334_v34, %s2647_s23 }
  0xe4   : > { %805 = vrot.lane.b32.xlu0 %v2325_v35, %s2647_s23 }
  0xe5   : > { %v423_v40 = vpop.permute.xlu1 %422 }
  0xe6   : > { %v365_v41 = vpop.permute.xlu0 %364  ;;  %425 = vst.msk [vmem:[#allocation4 + $0x4] sm:$0xf] %vm367_vm8, %v423_v40 }
  0xe7   : > { %368 = vst.msk [vmem:[#allocation4] sm:$0xf] %vm367_vm8, %v365_v41  ;;  %961 = vrot.lane.b32.xlu1 %v2352_v38, %s2647_s23 }
  0xe8   : > { %909 = vrot.lane.b32.xlu0 %v2343_v39, %s2647_s23 }
  0xe9   : > { %v535_v44 = vpop.permute.xlu1 %534 }
  0xea   : > { %v479_v45 = vpop.permute.xlu0 %478  ;;  %537 = vst.msk [vmem:[#allocation4 + $0xc] sm:$0xf] %vm367_vm8, %v535_v44 }
  0xeb   : > { %481 = vst.msk [vmem:[#allocation4 + $0x8] sm:$0xf] %vm367_vm8, %v479_v45  ;;  %1059 = vrot.lane.b32.xlu1 %v2369_v42, %s2646_s22 }
  0xec   : > { %1007 = vrot.lane.b32.xlu0 %v2360_v43, %s2646_s22 }
  0xed   : > { %v640_v48 = vpop.permute.xlu1 %639 }
  0xee   : > { %v584_v49 = vpop.permute.xlu0 %583  ;;  %642 = vst.msk [vmem:[#allocation4 + $0x14] sm:$0xf] %vm359_vm7, %v640_v48 }
  0xef   : > { %586 = vst.msk [vmem:[#allocation4 + $0x10] sm:$0xf] %vm359_vm7, %v584_v49  ;;  %1163 = vrot.lane.b32.xlu1 %v2387_v46, %s2646_s22 }
  0xf0   : > { %1111 = vrot.lane.b32.xlu0 %v2378_v47, %s2646_s22  ;;  %s2658_s22 = smov [#allocation7]  }
  0xf1   : > { %v752_v52 = vpop.permute.xlu1 %751 }
  0xf2   : > { %v696_v53 = vpop.permute.xlu0 %695  ;;  %754 = vst.msk [vmem:[#allocation4 + $0x1c] sm:$0xf] %vm359_vm7, %v752_v52 }
  0xf3   : > { %698 = vst.msk [vmem:[#allocation4 + $0x18] sm:$0xf] %vm359_vm7, %v696_v53  ;;  %864 = vrot.lane.b32.xlu1 %v2335_v50, %s2648_s29 }
  0xf4   : > { %812 = vrot.lane.b32.xlu0 %v2326_v51, %s2648_s29 }
  0xf5   : > { %v430_v56 = vpop.permute.xlu1 %429 }
  0xf6   : > { %v373_v57 = vpop.permute.xlu0 %372  ;;  %432 = vst.msk [vmem:[#allocation4 + $0x4] sm:$0xf] %vm375_vm9, %v430_v56 }
  0xf7   : > { %376 = vst.msk [vmem:[#allocation4] sm:$0xf] %vm375_vm9, %v373_v57  ;;  %968 = vrot.lane.b32.xlu1 %v2353_v54, %s2648_s29 }
  0xf8   : > { %916 = vrot.lane.b32.xlu0 %v2344_v55, %s2648_s29 }
  0xf9   : > { %v542_v60 = vpop.permute.xlu1 %541 }
  0xfa   : > { %v486_v61 = vpop.permute.xlu0 %485  ;;  %544 = vst.msk [vmem:[#allocation4 + $0xc] sm:$0xf] %vm375_vm9, %v542_v60 }
  0xfb   : > { %488 = vst.msk [vmem:[#allocation4 + $0x8] sm:$0xf] %vm375_vm9, %v486_v61  ;;  %1065 = vrot.lane.b32.xlu1 %v2370_v58, %s2647_s23 }
  0xfc   : > { %1013 = vrot.lane.b32.xlu0 %v2361_v59, %s2647_s23 }
  0xfd   : > { %v647_v0 = vpop.permute.xlu1 %646 }
  0xfe   : > { %v591_v1 = vpop.permute.xlu0 %590  ;;  %649 = vst.msk [vmem:[#allocation4 + $0x14] sm:$0xf] %vm367_vm8, %v647_v0  ;;  %v1186_v6 = vld [vmem:[#allocation4] sm:$0xff] }
  0xff   : > { %593 = vst.msk [vmem:[#allocation4 + $0x10] sm:$0xf] %vm367_vm8, %v591_v1  ;;  %1169 = vrot.lane.b32.xlu1 %v2388_v62, %s2647_s23 }
 0x100   : > { %1117 = vrot.lane.b32.xlu0 %v2379_v63, %s2647_s23  ;;  %s2582_s23 = sshll.u32 %s2658_s22, 4  ;;  %s2583_s23 = int_to_ptr.vmem [resolvable:$false] %s2582_s23 }
 0x101   : > { %v759_v4 = vpop.permute.xlu1 %758 }
 0x102   : > { %v703_v5 = vpop.permute.xlu0 %702  ;;  %v1187_v7 = vld [vmem:[#allocation4 + $0x8] sm:$0xff]  ;;  %761 = vst.msk [vmem:[#allocation4 + $0x1c] sm:$0xf] %vm367_vm8, %v759_v4 }
 0x103   : > { %705 = vst.msk [vmem:[#allocation4 + $0x18] sm:$0xf] %vm367_vm8, %v703_v5  ;;  %v1194_v8 = vpack.c.bf16 %v1187_v7, %v1186_v6  ;;  %870 = vrot.lane.b32.xlu1 %v2336_v2, %s2649_s8  ;;  %v2650_v6 = vmov 0.0  }
 0x104   : > { %818 = vrot.lane.b32.xlu0 %v2327_v3, %s2649_s8  ;;  %281 = vst.msk [vmem:[#allocation2 + $0x50] sm:$0x1f] %vm278_vm11, %v2650_v6  ;;  %279 = vst.msk [vmem:[#allocation2] sm:$0x1f] %vm278_vm11, %v2650_v6  ;;  %vm1445_vm11 = vcmask 786052  }
 0x105   : > { %2474 = vmatprep.mubr.msk.bf16.mxu0 %vm1225_vm10, %v1194_v8  ;;  %v654_v11 = vpop.permute.xlu1 %653  ;;  %283 = vst.msk [vmem:[#allocation2] sm:$0x1] %vm282_vm12, %v2650_v6  ;;  %284 = vst.msk [vmem:[#allocation2 + $0x8] sm:$0x1] %vm282_vm12, %v2650_v6 }
 0x106   : > { %v598_v12 = vpop.permute.xlu0 %597  ;;  %656 = vst.msk [vmem:[#allocation4 + $0x14] sm:$0xf] %vm375_vm9, %v654_v11 }
 0x107   : > { %600 = vst.msk [vmem:[#allocation4 + $0x10] sm:$0xf] %vm375_vm9, %v598_v12  ;;  %974 = vrot.lane.b32.xlu1 %v2354_v9, %s2649_s8 }
 0x108   : > { %922 = vrot.lane.b32.xlu0 %v2345_v10, %s2649_s8  ;;  %285 = vst.msk [vmem:[#allocation2 + $0x10] sm:$0x1] %vm282_vm12, %v2650_v6  ;;  %286 = vst.msk [vmem:[#allocation2 + $0x18] sm:$0x1] %vm282_vm12, %v2650_v6 }
 0x109   : > { %v766_v15 = vpop.permute.xlu1 %765  ;;  %287 = vst.msk [vmem:[#allocation2 + $0x20] sm:$0x1] %vm282_vm12, %v2650_v6  ;;  %288 = vst.msk [vmem:[#allocation2 + $0x28] sm:$0x1] %vm282_vm12, %v2650_v6 }
 0x10a   : > { %v710_v16 = vpop.permute.xlu0 %709  ;;  %768 = vst.msk [vmem:[#allocation4 + $0x1c] sm:$0xf] %vm375_vm9, %v766_v15 }
 0x10b   : > { %712 = vst.msk [vmem:[#allocation4 + $0x18] sm:$0xf] %vm375_vm9, %v710_v16  ;;  %1072 = vrot.lane.b32.xlu1 %v2371_v13, %s2648_s29  ;;  %v1351_v11 = vld [vmem:[#allocation2 + $0x50] sm:$0xf] }
 0x10c   : > { %1020 = vrot.lane.b32.xlu0 %v2362_v14, %s2648_s29  ;;  %v1358_v14 = vld [vmem:[#allocation2 + $0x1] sm:$0xf]  ;;  %289 = vst.msk [vmem:[#allocation2 + $0x30] sm:$0x1] %vm282_vm12, %v2650_v6  ;;  %290 = vst.msk [vmem:[#allocation2 + $0x38] sm:$0x1] %vm282_vm12, %v2650_v6 }
 0x10d   : > { %v827_v19 = vpop.permute.xlu1 %826  ;;  %291 = vst.msk [vmem:[#allocation2 + $0x40] sm:$0x1] %vm282_vm12, %v2650_v6  ;;  %vm1391_vm12 = vcmask 913152  }
 0x10e   : > { %v775_v20 = vpop.permute.xlu0 %774  ;;  %829 = vst.msk [vmem:[#allocation4 + $0x24] sm:$0xf] %vm319_vm1, %v827_v19  ;;  %v1188_v25 = vld [vmem:[#allocation4 + $0x10] sm:$0xff] }
 0x10f   : > { %777 = vst.msk [vmem:[#allocation4 + $0x20] sm:$0xf] %vm319_vm1, %v775_v20  ;;  %1176 = vrot.lane.b32.xlu1 %v2389_v17, %s2648_s29 }
 0x110   : > { %1124 = vrot.lane.b32.xlu0 %v2380_v18, %s2648_s29  ;;  %s2654_s29 = smov 80  }
 0x111   : > { %v931_v23 = vpop.permute.xlu1 %930 }
 0x112   : > { %v879_v24 = vpop.permute.xlu0 %878  ;;  %v1189_v26 = vld [vmem:[#allocation4 + $0x18] sm:$0xff]  ;;  %933 = vst.msk [vmem:[#allocation4 + $0x2c] sm:$0xf] %vm319_vm1, %v931_v23 }
 0x113   : > { %881 = vst.msk [vmem:[#allocation4 + $0x28] sm:$0xf] %vm319_vm1, %v879_v24  ;;  %v1195_v27 = vpack.c.bf16 %v1189_v26, %v1188_v25  ;;  %1078 = vrot.lane.b32.xlu1 %v2372_v21, %s2649_s8 }
 0x114   : > { %1026 = vrot.lane.b32.xlu0 %v2363_v22, %s2649_s8 }
 0x115   : > { %2475 = vmatmul.mubr.msk.bf16.vlgmr.msra.gmra.mrb[0].mxu0 %vm1225_vm10, %v1195_v27  ;;  %v833_v30 = vpop.permute.xlu1 %832 }
 0x116   : > { %v781_v31 = vpop.permute.xlu0 %780  ;;  %835 = vst.msk [vmem:[#allocation4 + $0x24] sm:$0xf] %vm327_vm3, %v833_v30 }
 0x117   : > { %783 = vst.msk [vmem:[#allocation4 + $0x20] sm:$0xf] %vm327_vm3, %v781_v31  ;;  %1182 = vrot.lane.b32.xlu1 %v2390_v28, %s2649_s8 }
 0x118   : > { %1130 = vrot.lane.b32.xlu0 %v2381_v29, %s2649_s8 }
 0x119   : > { %v937_v32 = vpop.permute.xlu1 %936 }
 0x11a   : > { %v885_v33 = vpop.permute.xlu0 %884  ;;  %939 = vst.msk [vmem:[#allocation4 + $0x2c] sm:$0xf] %vm327_vm3, %v937_v32  ;;  %v1349_v32 = vld [vmem:[#allocation2] sm:$0xf] }
 0x11b   : > { %887 = vst.msk [vmem:[#allocation4 + $0x28] sm:$0xf] %vm327_vm3, %v885_v33 }
 0x11c   : > { %1353 = vrot.lane.b32.xlu0 %v1351_v11, %s2645_s21  ;;  %1350 = vst.msk [vmem:[#allocation5] sm:$0xf] %vm1316_vm13, %v1349_v32 }
 0x11d   : > { %v1035_v34 = vpop.permute.xlu1 %1034 }
 0x11e   : > { %v983_v35 = vpop.permute.xlu0 %982  ;;  %1037 = vst.msk [vmem:[#allocation4 + $0x34] sm:$0xf] %vm319_vm1, %v1035_v34 }
 0x11f   : > { %985 = vst.msk [vmem:[#allocation4 + $0x30] sm:$0xf] %vm319_vm1, %v983_v35 }
 0x120   : > { %1360 = vrot.lane.b32.xlu0 %v1358_v14, %s2649_s8 }
 0x121   : > { %v1139_v36 = vpop.permute.xlu1 %1138 }
 0x122   : > { %v1087_v37 = vpop.permute.xlu0 %1086  ;;  %1141 = vst.msk [vmem:[#allocation4 + $0x3c] sm:$0xf] %vm319_vm1, %v1139_v36 }
 0x123   : > { %1089 = vst.msk [vmem:[#allocation4 + $0x38] sm:$0xf] %vm319_vm1, %v1087_v37  ;;  %vm1413_vm1 = vcmask 261252  }
 0x125   : > { %v839_v38 = vpop.permute.xlu1 %838 }
 0x126   : > { %v787_v39 = vpop.permute.xlu0 %786  ;;  %841 = vst.msk [vmem:[#allocation4 + $0x24] sm:$0xf] %vm335_vm4, %v839_v38  ;;  %v2391_v38 = vld [vmem:[%s3525_s4] ss:$0 sm:$0xff] }
 0x127   : > { %789 = vst.msk [vmem:[#allocation4 + $0x20] sm:$0xf] %vm335_vm4, %v787_v39 }
 0x129   : > { %v943_v40 = vpop.permute.xlu1 %942 }
 0x12a   : > { %v891_v41 = vpop.permute.xlu0 %890  ;;  %945 = vst.msk [vmem:[#allocation4 + $0x2c] sm:$0xf] %vm335_vm4, %v943_v40 }
 0x12b   : > { %893 = vst.msk [vmem:[#allocation4 + $0x28] sm:$0xf] %vm335_vm4, %v891_v41 }
 0x12d   : > { %v1041_v42 = vpop.permute.xlu1 %1040 }
 0x12e   : > { %v989_v43 = vpop.permute.xlu0 %988  ;;  %1043 = vst.msk [vmem:[#allocation4 + $0x34] sm:$0xf] %vm327_vm3, %v1041_v42 }
 0x12f   : > { %991 = vst.msk [vmem:[#allocation4 + $0x30] sm:$0xf] %vm327_vm3, %v989_v43 }
 0x131   : > { %v1145_v44 = vpop.permute.xlu1 %1144 }
 0x132   : > { %v1093_v45 = vpop.permute.xlu0 %1092  ;;  %1147 = vst.msk [vmem:[#allocation4 + $0x3c] sm:$0xf] %vm327_vm3, %v1145_v44 }
 0x133   : > { %1095 = vst.msk [vmem:[#allocation4 + $0x38] sm:$0xf] %vm327_vm3, %v1093_v45  ;;  %vm293_vm3 = vcmask 259072  }
 0x134   : > { %296 = vst.msk [vmem:[#allocation3 + $0x28] sm:$0x3f] %vm293_vm3, %v2650_v6  ;;  %294 = vst.msk [vmem:[#allocation3] sm:$0x3f] %vm293_vm3, %v2650_v6  ;;  %vm1722_vm3 = vcmask 519424  }
 0x135   : > { %v846_v46 = vpop.permute.xlu1 %845 }
 0x136   : > { %v794_v47 = vpop.permute.xlu0 %793  ;;  %848 = vst.msk [vmem:[#allocation4 + $0x24] sm:$0xf] %vm343_vm5, %v846_v46 }
 0x137   : > { %796 = vst.msk [vmem:[#allocation4 + $0x20] sm:$0xf] %vm343_vm5, %v794_v47 }
 0x139   : > { %v950_v48 = vpop.permute.xlu1 %949 }
 0x13a   : > { %v898_v49 = vpop.permute.xlu0 %897  ;;  %952 = vst.msk [vmem:[#allocation4 + $0x2c] sm:$0xf] %vm343_vm5, %v950_v48 }
 0x13b   : > { %900 = vst.msk [vmem:[#allocation4 + $0x28] sm:$0xf] %vm343_vm5, %v898_v49 }
 0x13d   : > { %v1047_v50 = vpop.permute.xlu1 %1046 }
 0x13e   : > { %v995_v51 = vpop.permute.xlu0 %994  ;;  %1049 = vst.msk [vmem:[#allocation4 + $0x34] sm:$0xf] %vm335_vm4, %v1047_v50 }
 0x13f   : > { %997 = vst.msk [vmem:[#allocation4 + $0x30] sm:$0xf] %vm335_vm4, %v995_v51 }
 0x141   : > { %v1151_v52 = vpop.permute.xlu1 %1150 }
 0x142   : > { %v1099_v53 = vpop.permute.xlu0 %1098  ;;  %1153 = vst.msk [vmem:[#allocation4 + $0x3c] sm:$0xf] %vm335_vm4, %v1151_v52 }
 0x143   : > { %1101 = vst.msk [vmem:[#allocation4 + $0x38] sm:$0xf] %vm335_vm4, %v1099_v53  ;;  %vm297_vm4 = vcmask 253952  }
 0x144   : > { %306 = vst.msk [vmem:[#allocation3 + $0x15] sm:$0x1] %vm297_vm4, %v2650_v6  ;;  %299 = vst.msk [vmem:[#allocation3 + $0x8] sm:$0x1] %vm297_vm4, %v2650_v6 }
 0x145   : > { %v852_v54 = vpop.permute.xlu1 %851  ;;  %300 = vst.msk [vmem:[#allocation3 + $0x10] sm:$0x1] %vm297_vm4, %v2650_v6  ;;  %301 = vst.msk [vmem:[#allocation3 + $0x18] sm:$0x1] %vm297_vm4, %v2650_v6 }
 0x146   : > { %v800_v55 = vpop.permute.xlu0 %799  ;;  %854 = vst.msk [vmem:[#allocation4 + $0x24] sm:$0xf] %vm351_vm6, %v852_v54 }
 0x147   : > { %802 = vst.msk [vmem:[#allocation4 + $0x20] sm:$0xf] %vm351_vm6, %v800_v55 }
 0x148   : > { %302 = vst.msk [vmem:[#allocation3 + $0x20] sm:$0x1] %vm297_vm4, %v2650_v6  ;;  %305 = vst.msk [vmem:[#allocation3 + $0xd] sm:$0x1] %vm297_vm4, %v2650_v6 }
 0x149   : > { %v956_v56 = vpop.permute.xlu1 %955  ;;  %307 = vst.msk [vmem:[#allocation3 + $0x1d] sm:$0x1] %vm297_vm4, %v2650_v6  ;;  %308 = vst.msk [vmem:[#allocation3 + $0x25] sm:$0x1] %vm297_vm4, %v2650_v6 }
 0x14a   : > { %v904_v57 = vpop.permute.xlu0 %903  ;;  %958 = vst.msk [vmem:[#allocation4 + $0x2c] sm:$0xf] %vm351_vm6, %v956_v56 }
 0x14b   : > { %906 = vst.msk [vmem:[#allocation4 + $0x28] sm:$0xf] %vm351_vm6, %v904_v57 }
 0x14c   : > { %309 = vst.msk [vmem:[#allocation3 + $0x2d] sm:$0x1] %vm297_vm4, %v2650_v6  ;;  %303 = vst.msk [vmem:[#allocation3 + $0x28] sm:$0x1] %vm297_vm4, %v2650_v6 }
 0x14d   : > { %v1054_v58 = vpop.permute.xlu1 %1053  ;;  %298 = vst.msk [vmem:[#allocation3] sm:$0x1] %vm297_vm4, %v2650_v6  ;;  %304 = vst.msk [vmem:[#allocation3 + $0x5] sm:$0x1] %vm297_vm4, %v2650_v6  ;;  %vm1729_vm4 = vcmask 781824  }
 0x14e   : > { %v1002_v59 = vpop.permute.xlu0 %1001  ;;  %1056 = vst.msk [vmem:[#allocation4 + $0x34] sm:$0xf] %vm343_vm5, %v1054_v58 }
 0x14f   : > { %1004 = vst.msk [vmem:[#allocation4 + $0x30] sm:$0xf] %vm343_vm5, %v1002_v59 }
 0x151   : > { %v1158_v60 = vpop.permute.xlu1 %1157 }
 0x152   : > { %v1106_v61 = vpop.permute.xlu0 %1105  ;;  %1160 = vst.msk [vmem:[#allocation4 + $0x3c] sm:$0xf] %vm343_vm5, %v1158_v60 }
 0x153   : > { %1108 = vst.msk [vmem:[#allocation4 + $0x38] sm:$0xf] %vm343_vm5, %v1106_v61  ;;  %vm1421_vm5 = vcmask 392452  }
 0x155   : > { %v858_v62 = vpop.permute.xlu1 %857 }
 0x156   : > { %v806_v63 = vpop.permute.xlu0 %805  ;;  %860 = vst.msk [vmem:[#allocation4 + $0x24] sm:$0xf] %vm359_vm7, %v858_v62 }
 0x157   : > { %808 = vst.msk [vmem:[#allocation4 + $0x20] sm:$0xf] %vm359_vm7, %v806_v63 }
 0x159   : > { %v962_v0 = vpop.permute.xlu1 %961 }
 0x15a   : > { %v910_v1 = vpop.permute.xlu0 %909  ;;  %964 = vst.msk [vmem:[#allocation4 + $0x2c] sm:$0xf] %vm359_vm7, %v962_v0 }
 0x15b   : > { %912 = vst.msk [vmem:[#allocation4 + $0x28] sm:$0xf] %vm359_vm7, %v910_v1 }
 0x15d   : > { %v1060_v2 = vpop.permute.xlu1 %1059 }
 0x15e   : > { %v1008_v3 = vpop.permute.xlu0 %1007  ;;  %1062 = vst.msk [vmem:[#allocation4 + $0x34] sm:$0xf] %vm351_vm6, %v1060_v2 }
 0x15f   : > { %1010 = vst.msk [vmem:[#allocation4 + $0x30] sm:$0xf] %vm351_vm6, %v1008_v3 }
 0x161   : > { %v1164_v4 = vpop.permute.xlu1 %1163 }
 0x162   : > { %v1112_v5 = vpop.permute.xlu0 %1111  ;;  %1166 = vst.msk [vmem:[#allocation4 + $0x3c] sm:$0xf] %vm351_vm6, %v1164_v4 }
 0x163   : > { %1114 = vst.msk [vmem:[#allocation4 + $0x38] sm:$0xf] %vm351_vm6, %v1112_v5  ;;  %vm1370_vm6 = vcmask 519552  }
 0x165   : > { %v865_v7 = vpop.permute.xlu1 %864 }
 0x166   : > { %v813_v8 = vpop.permute.xlu0 %812  ;;  %867 = vst.msk [vmem:[#allocation4 + $0x24] sm:$0xf] %vm367_vm8, %v865_v7 }
 0x167   : > { %815 = vst.msk [vmem:[#allocation4 + $0x20] sm:$0xf] %vm367_vm8, %v813_v8 }
 0x169   : > { %v969_v9 = vpop.permute.xlu1 %968 }
 0x16a   : > { %v917_v10 = vpop.permute.xlu0 %916  ;;  %971 = vst.msk [vmem:[#allocation4 + $0x2c] sm:$0xf] %vm367_vm8, %v969_v9 }
 0x16b   : > { %919 = vst.msk [vmem:[#allocation4 + $0x28] sm:$0xf] %vm367_vm8, %v917_v10 }
 0x16d   : > { %v1066_v12 = vpop.permute.xlu1 %1065 }
 0x16e   : > { %v1014_v13 = vpop.permute.xlu0 %1013  ;;  %1068 = vst.msk [vmem:[#allocation4 + $0x34] sm:$0xf] %vm359_vm7, %v1066_v12 }
 0x16f   : > { %1016 = vst.msk [vmem:[#allocation4 + $0x30] sm:$0xf] %vm359_vm7, %v1014_v13 }
 0x171   : > { %v1170_v15 = vpop.permute.xlu1 %1169 }
 0x172   : > { %v1118_v16 = vpop.permute.xlu0 %1117  ;;  %1172 = vst.msk [vmem:[#allocation4 + $0x3c] sm:$0xf] %vm359_vm7, %v1170_v15 }
 0x173   : > { %1120 = vst.msk [vmem:[#allocation4 + $0x38] sm:$0xf] %vm359_vm7, %v1118_v16  ;;  %vm1377_vm7 = vcmask 650752  }
 0x175   : > { %v871_v17 = vpop.permute.xlu1 %870 }
 0x176   : > { %v819_v18 = vpop.permute.xlu0 %818  ;;  %873 = vst.msk [vmem:[#allocation4 + $0x24] sm:$0xf] %vm375_vm9, %v871_v17 }
 0x177   : > { %821 = vst.msk [vmem:[#allocation4 + $0x20] sm:$0xf] %vm375_vm9, %v819_v18 }
 0x179   : > { %v975_v19 = vpop.permute.xlu1 %974 }
 0x17a   : > { %v923_v20 = vpop.permute.xlu0 %922  ;;  %977 = vst.msk [vmem:[#allocation4 + $0x2c] sm:$0xf] %vm375_vm9, %v975_v19 }
 0x17b   : > { %925 = vst.msk [vmem:[#allocation4 + $0x28] sm:$0xf] %vm375_vm9, %v923_v20 }
 0x17d   : > { %v1073_v21 = vpop.permute.xlu1 %1072 }
 0x17e   : > { %v1021_v22 = vpop.permute.xlu0 %1020  ;;  %1075 = vst.msk [vmem:[#allocation4 + $0x34] sm:$0xf] %vm367_vm8, %v1073_v21  ;;  %v1190_v25 = vld [vmem:[#allocation4 + $0x20] sm:$0xff] }
 0x17f   : > { %1023 = vst.msk [vmem:[#allocation4 + $0x30] sm:$0xf] %vm367_vm8, %v1021_v22 }
 0x181   : > { %v1177_v23 = vpop.permute.xlu1 %1176 }
 0x182   : > { %v1125_v24 = vpop.permute.xlu0 %1124  ;;  %v1191_v26 = vld [vmem:[#allocation4 + $0x28] sm:$0xff]  ;;  %1179 = vst.msk [vmem:[#allocation4 + $0x3c] sm:$0xf] %vm367_vm8, %v1177_v23  ;;  %v2653_v23 = vmov 0  }
 0x183   : > { %1127 = vst.msk [vmem:[#allocation4 + $0x38] sm:$0xf] %vm367_vm8, %v1125_v24  ;;  %v1196_v27 = vpack.c.bf16 %v1191_v26, %v1190_v25  ;;  %1662 = vmatprep.subr.bf16.mxu1 %v2653_v23  ;;  %v2551_v24 = vld [vmem:[%s3523_s2] sm:$0xff]   ;;  %vm1429_vm8 = vcmask 523652  }
 0x184   : > { %1663 = vmatpush1.bf16.msra.mxu1 %v2551_v24 }
 0x185   : > { %2478 = vmatprep.mubr.msk.bf16.mxu0 %vm1225_vm10, %v1196_v27  ;;  %v1079_v28 = vpop.permute.xlu1 %1078  ;;  %1664 = vmatprep.subr.bf16.mxu1 %v2653_v23 }
 0x186   : > { %v1027_v29 = vpop.permute.xlu0 %1026  ;;  %1081 = vst.msk [vmem:[#allocation4 + $0x34] sm:$0xf] %vm375_vm9, %v1079_v28 }
 0x187   : > { %1029 = vst.msk [vmem:[#allocation4 + $0x30] sm:$0xf] %vm375_vm9, %v1027_v29 }
 0x189   : > { %v1183_v30 = vpop.permute.xlu1 %1182 }
 0x18a   : > { %v1131_v31 = vpop.permute.xlu0 %1130  ;;  %1185 = vst.msk [vmem:[#allocation4 + $0x3c] sm:$0xf] %vm375_vm9, %v1183_v30 }
 0x18b   : > { %1133 = vst.msk [vmem:[#allocation4 + $0x38] sm:$0xf] %vm375_vm9, %v1131_v31  ;;  %vm1384_vm9 = vcmask 781952  }
 0x18e   : > { %v1192_v33 = vld [vmem:[#allocation4 + $0x30] sm:$0xff]  ;;  %v1354_v36 = vpop.permute.xlu0 %1353 }
 0x18f   : > { %1357 = vst.msk [vmem:[#allocation5] sm:$0xf] %vm1356_vm14, %v1354_v36 }
 0x192   : > { %v1193_v34 = vld [vmem:[#allocation4 + $0x38] sm:$0xff]  ;;  %v1361_v37 = vpop.permute.xlu0 %1360 }
 0x193   : > { %v1197_v35 = vpack.c.bf16 %v1193_v34, %v1192_v33  ;;  %1364 = vst.msk [vmem:[#allocation5] sm:$0xf] %vm1363_vm15, %v1361_v37  ;;  %v2552_v37 = vld [vmem:[%s3523_s2 + $0x8] sm:$0xff]  }
 0x194   : > { %1665 = vmatpush1.bf16.msra.mxu1 %v2552_v37 }
 0x195   : > { %2479 = vmatmul.mubr.msk.bf16.gmra.mrb[4].mxu0 %vm1225_vm10, %v1197_v35  ;;  %1666 = vmatprep.subr.bf16.mxu1 %v2653_v23  ;;  %vm1437_vm10 = vcmask 654852  }
 0x1e8   : > { %v2476_v39 = vpop.f32.mrb[0].mxu0 }
 0x1e9   : > { %v1285_v40 = vadd.f32 %v2476_v39, %v2391_v38  ;;  %v1276_v41 = vpop.f32.mrb[1].mxu0  ;;  %v2553_v39 = vld [vmem:[%s3523_s2 + $0x10] sm:$0xff]  }
 0x1ea   : > { %v1277_v42 = vadd.f32 %v2391_v38, %v1276_v41  ;;  %v2477_v43 = vpop.f32.mrb[2].mxu0  ;;  %1667 = vmatpush1.bf16.msra.mxu1 %v2553_v39  ;;  %v2561_v39 = vld [vmem:[%s3524_s3 + $0x88] sm:$0xff]  }
 0x1eb   : > { %v1309_v44 = vmax.f32 %v1285_v40, 0.0  ;;  %v1288_v45 = vadd.f32 %v2477_v43, %v2391_v38  ;;  %v1279_v46 = vpop.f32.mrb[3].mxu0  ;;  %1668 = vmatprep.subr.bf16.mxu1 %v2653_v23 }
 0x1ec   : > { %v1307_v47 = vmax.f32 %v1277_v42, 0.0  ;;  %v1280_v48 = vadd.f32 %v2391_v38, %v1279_v46 }
 0x1ed   : > { %1326 = vst.msk [vmem:[#allocation2 + $0x78] sm:$0xf] %vm1316_vm13, %v1309_v44  ;;  %v1310_v49 = vmax.f32 %v1288_v45, 0.0 }
 0x1ee   : > { %1328 = vst.msk [vmem:[#allocation2 + $0x7c] sm:$0xf0] %vm1319_vm0, %v1309_v44  ;;  %1320 = vst.msk [vmem:[#allocation2 + $0x5c] sm:$0xf0] %vm1319_vm0, %v1307_v47  ;;  %v1308_v50 = vmax.f32 %v1280_v48, 0.0  ;;  %v2554_v48 = vld [vmem:[%s3523_s2 + $0x18] sm:$0xff]  }
 0x1ef   : > { %1317 = vst.msk [vmem:[#allocation2 + $0x58] sm:$0xf] %vm1316_vm13, %v1307_v47  ;;  %1330 = vst.msk [vmem:[#allocation2 + $0x88] sm:$0xf] %vm1316_vm13, %v1310_v49  ;;  %1669 = vmatpush1.bf16.msra.mxu1 %v2554_v48 }
 0x1f0   : > { %1332 = vst.msk [vmem:[#allocation2 + $0x8c] sm:$0xf0] %vm1319_vm0, %v1310_v49  ;;  %1324 = vst.msk [vmem:[#allocation2 + $0x6c] sm:$0xf0] %vm1319_vm0, %v1308_v50  ;;  %1670 = vmatprep.subr.bf16.mxu1 %v2653_v23 }
 0x1f1   : > { %1322 = vst.msk [vmem:[#allocation2 + $0x68] sm:$0xf] %vm1316_vm13, %v1308_v50  ;;  %v2555_v50 = vld [vmem:[%s3523_s2 + $0x20] sm:$0xff]  }
 0x1f3   : > { %1671 = vmatpush1.bf16.msra.mxu1 %v2555_v50 }
 0x1f4   : > { %v1488_v51 = vld [vmem:[#allocation2 + $0x78] sm:$0xf]  ;;  %1672 = vmatprep.subr.bf16.mxu1 %v2653_v23 }
 0x1f5   : > { %v1519_v52 = vld [vmem:[#allocation2 + $0x80] sm:$0xf]  ;;  %1490 = vrot.lane.b32.xlu0 %v1488_v51, %s2651_s20 }
 0x1f6   : > { %v1521_v53 = vrot.slane %v1519_v52, 4  ;;  %v1407_v54 = vld [vmem:[#allocation2 + $0x60] sm:$0xf]  ;;  %v1372_v55 = vld [vmem:[#allocation2 + $0x58] sm:$0xf] }
 0x1f7   : > { %v1409_v56 = vrot.slane %v1407_v54, 4  ;;  %v1540_v57 = vld [vmem:[#allocation2 + $0x88] sm:$0xf]  ;;  %v1470_v58 = vld [vmem:[#allocation2 + $0x70] sm:$0xf] }
 0x1f8   : > { %1522 = vrot.lane.b32.xlu1 %v1521_v53, %s2645_s21  ;;  %v1542_v59 = vrot.slane %v1540_v57, 4  ;;  %v1431_v60 = vld [vmem:[#allocation2 + $0x68] sm:$0xf]  ;;  %v1455_v36 = vld [vmem:[#allocation2 + $0x70] sm:$0xf] }
 0x1f9   : > { %1374 = vrot.lane.b32.xlu0 %v1372_v55, %s2651_s20  ;;  %v1433_v61 = vrot.slane %v1431_v60, 4  ;;  %v2556_v54 = vld [vmem:[%s3523_s2 + $0x28] sm:$0xff]  }
 0x1fa   : > { %1673 = vmatpush1.bf16.msra.mxu1 %v2556_v54 }
 0x1fb   : > { %1674 = vmatprep.subr.bf16.mxu1 %v2653_v23 }
 0x1fc   : > { %1410 = vrot.lane.b32.xlu1 %v1409_v56, %s2645_s21 }
 0x1fd   : > { %1472 = vrot.lane.b32.xlu0 %v1470_v58, %s2645_s21  ;;  %s2652_s21 = smov 48   ;;  %v2557_v58 = vld [vmem:[%s3523_s2 + $0x30] sm:$0xff]  }
 0x1fe   : > { %1675 = vmatpush1.bf16.msra.mxu1 %v2557_v58  ;;  %v2563_v58 = vld [vmem:[%s3524_s3] sm:$0xff]  }
 0x1ff   : > { %1676 = vmatprep.subr.bf16.mxu1 %v2653_v23 }
 0x200   : > { %1543 = vrot.lane.b32.xlu1 %v1542_v59, %s2651_s20  ;;  %v1393_v59 = vld [vmem:[#allocation2 + $0x60] sm:$0xf] }
 0x204   : > { %1434 = vrot.lane.b32.xlu1 %v1433_v61, %s2651_s20 }
 0x267   : > { %v3218_v7 = vpop.permute.xlu0 %1490 }
 0x268   : > { %v2480_v62 = vpop.f32.mrb[4].mxu0 }
 0x269   : > { %v1301_v63 = vadd.f32 %v2480_v62, %v2391_v38  ;;  %v1292_v0 = vpop.f32.mrb[5].mxu0  ;;  %v2558_v62 = vld [vmem:[%s3523_s2 + $0x38] sm:$0xff]  }
 0x26a   : > { %v1293_v1 = vadd.f32 %v2391_v38, %v1292_v0  ;;  %v2481_v2 = vpop.f32.mrb[6].mxu0  ;;  %v1523_v12 = vpop.permute.xlu1 %1522  ;;  %1677 = vmatpush1.bf16.msra.mxu1 %v2558_v62  ;;  %v2564_v62 = vld [vmem:[%s3524_s3 + $0x48] sm:$0xff]  }
 0x26b   : > { %v1313_v3 = vmax.f32 %v1301_v63, 0.0  ;;  %v1304_v4 = vadd.f32 %v2481_v2, %v2391_v38  ;;  %v1295_v5 = vpop.f32.mrb[7].mxu0  ;;  %v3228_v13 = vpop.permute.xlu0 %1374  ;;  %v1506_v63 = vld [vmem:[#allocation2 + $0x80] sm:$0xf]  ;;  %1678 = vmatprep.subr.bf16.mxu1 %v2653_v23 }
 0x26c   : > { %v1311_v8 = vmax.f32 %v1293_v1, 0.0  ;;  %v1296_v9 = vadd.f32 %v2391_v38, %v1295_v5  ;;  %v1457_v38 = vrot.slane %v1455_v36, 4  ;;  %v2559_v2 = vld [vmem:[%s3523_s2 + $0x40] sm:$0xff]   ;;  %v1914_v36 = vld [vmem:[#allocation3 + $0x2a] sm:$0xf] }
 0x26d   : > { %1342 = vst.msk [vmem:[#allocation2 + $0x29] sm:$0xf] %vm1316_vm13, %v1313_v3  ;;  %v1314_v10 = vmax.f32 %v1304_v4, 0.0  ;;  %v1916_v37 = vrot.slane %v1914_v36, 4  ;;  %v2573_v36 = vld [vmem:[%s3524_s3 + $0x28] sm:$0xff]  }
 0x26e   : > { %1344 = vst.msk [vmem:[#allocation2 + $0x2d] sm:$0xf0] %vm1319_vm0, %v1313_v3  ;;  %1336 = vst.msk [vmem:[#allocation2 + $0xd] sm:$0xf0] %vm1319_vm0, %v1311_v8  ;;  %v1312_v11 = vmax.f32 %v1296_v9, 0.0  ;;  %v1411_v30 = vpop.permute.xlu1 %1410  ;;  %1679 = vmatpush1.bf16.msra.mxu1 %v2559_v2 }
 0x26f   : > { %1334 = vst.msk [vmem:[#allocation2 + $0x9] sm:$0xf] %vm1316_vm13, %v1311_v8  ;;  %1346 = vst.msk [vmem:[#allocation2 + $0x39] sm:$0xf] %vm1316_vm13, %v1314_v10  ;;  %v1473_v31 = vpop.permute.xlu0 %1472  ;;  %v1561_v3 = vld [vmem:[#allocation2 + $0x90] sm:$0xf]  ;;  %2482 = vmatprep.subr.bf16.mxu1 %v2650_v6 }
 0x270   : > { %1348 = vst.msk [vmem:[#allocation2 + $0x3d] sm:$0xf0] %vm1319_vm0, %v1314_v10  ;;  %1340 = vst.msk [vmem:[#allocation2 + $0x1d] sm:$0xf0] %vm1319_vm0, %v1312_v11  ;;  %v1563_v4 = vrot.slane %v1561_v3, 4 }
 0x271   : > { %1338 = vst.msk [vmem:[#allocation2 + $0x19] sm:$0xf] %vm1316_vm13, %v1312_v11 }
 0x272   : > { %v1544_v5 = vpop.permute.xlu1 %1543 }
 0x274   : > { %v1482_v16 = vld [vmem:[#allocation2 + $0x28] sm:$0xf] }
 0x275   : > { %v1512_v14 = vld [vmem:[#allocation2 + $0x31] sm:$0xf]  ;;  %1484 = vrot.lane.b32.xlu0 %v1482_v16, %s2652_s21  ;;  %v1494_v32 = vld [vmem:[#allocation2 + $0x29] sm:$0xf] }
 0x276   : > { %v1514_v15 = vld [vmem:[#allocation2 + $0x30] sm:$0xf]  ;;  %1513 = vst.msk [vmem:[#allocation5 + $0x18] sm:$0xf] %vm1316_vm13, %v1512_v14  ;;  %v1365_v40 = vld [vmem:[#allocation2 + $0x8] sm:$0xf]  ;;  %v1435_v8 = vpop.permute.xlu1 %1434 }
 0x277   : > { %v1516_v17 = vrot.slane %v1514_v15, 4  ;;  %v1400_v18 = vld [vmem:[#allocation2 + $0x11] sm:$0xf]  ;;  %v1568_v20 = vld [vmem:[#allocation2 + $0x41] sm:$0xf] }
 0x278   : > { %v1402_v19 = vld [vmem:[#allocation2 + $0x10] sm:$0xf]  ;;  %1401 = vst.msk [vmem:[#allocation5 + $0x8] sm:$0xf] %vm1316_vm13, %v1400_v18  ;;  %v1570_v25 = vrot.slane %v1568_v20, 4 }
 0x279   : > { %v1404_v21 = vrot.slane %v1402_v19, 4  ;;  %v1526_v22 = vld [vmem:[#allocation2 + $0x31] sm:$0xf]  ;;  %1518 = vst.msk [vmem:[#allocation5 + $0x10] sm:$0xf0] %vm1319_vm0, %v1516_v17  ;;  %1496 = vrot.lane.b32.xlu0 %v1494_v32, %s2654_s29 }
 0x27a   : > { %v1463_v26 = vld [vmem:[#allocation2 + $0x21] sm:$0xf]  ;;  %v1528_v28 = vrot.slane %v1526_v22, 4  ;;  %1525 = vst.msk [vmem:[#allocation5 + $0x10] sm:$0xf0] %vm1413_vm1, %v1523_v12 }
 0x27b   : > { %v1468_v27 = vld [vmem:[#allocation2 + $0x20] sm:$0xf]  ;;  %v1465_v29 = vrot.slane %v1463_v26, 4  ;;  %1406 = vst.msk [vmem:[#allocation5] sm:$0xf0] %vm1319_vm0, %v1404_v21 }
 0x27c   : > { %1469 = vst.msk [vmem:[#allocation5 + $0x10] sm:$0xf] %vm1316_vm13, %v1468_v27  ;;  %v1415_v33 = vld [vmem:[#allocation2 + $0x11] sm:$0xf]  ;;  %1529 = vrot.lane.b32.xlu1 %v1528_v28, %s2649_s8  ;;  %v1533_v41 = vld [vmem:[#allocation2 + $0x38] sm:$0xf] }
 0x27d   : > { %1572 = vst.msk [vmem:[#allocation5 + $0x18] sm:$0xf0] %vm1319_vm0, %v1570_v25  ;;  %1467 = vst.msk [vmem:[#allocation5 + $0x8] sm:$0xf0] %vm1319_vm0, %v1465_v29  ;;  %v1417_v34 = vrot.slane %v1415_v33, 4  ;;  %v1535_v45 = vrot.slane %v1533_v41, 4 }
 0x27e   : > { %1414 = vst.msk [vmem:[#allocation5] sm:$0xf0] %vm1413_vm1, %v1411_v30  ;;  %v1500_v35 = vld [vmem:[#allocation2 + $0x30] sm:$0xf]  ;;  %v1379_v46 = vld [vmem:[#allocation2 + $0x9] sm:$0xf] }
 0x27f   : > { %1475 = vst.msk [vmem:[#allocation5 + $0x10] sm:$0xf] %vm1356_vm14, %v1473_v31  ;;  %1502 = vrot.lane.b32.xlu0 %v1500_v35, %s2655_s13  ;;  %v1547_v47 = vld [vmem:[#allocation2 + $0x39] sm:$0xf]  ;;  %v1386_v51 = vld [vmem:[#allocation2 + $0x10] sm:$0xf] }
 0x280   : > { %1418 = vrot.lane.b32.xlu1 %v1417_v34, %s2649_s8  ;;  %v1549_v49 = vrot.slane %v1547_v47, 4  ;;  %v1554_v52 = vld [vmem:[#allocation2 + $0x40] sm:$0xf]  ;;  %v1423_v56 = vld [vmem:[#allocation2 + $0x18] sm:$0xf]  ;;  %vm1453_vm13 = vcmask 917252  }
 0x281   : > { %v1556_v53 = vrot.slane %v1554_v52, 4  ;;  %v1476_v55 = vld [vmem:[#allocation2 + $0x21] sm:$0xf]  ;;  %v1425_v57 = vrot.slane %v1423_v56, 4  ;;  %v1439_v60 = vld [vmem:[#allocation2 + $0x19] sm:$0xf] }
 0x282   : > { %v1441_v61 = vrot.slane %v1439_v60, 4  ;;  %v1447_v0 = vld [vmem:[#allocation2 + $0x20] sm:$0xf]  ;;  %vm1398_vm14 = vcmask 1044352   ;;  %v1900_v30 = vld [vmem:[#allocation3 + $0x28] sm:$0xf] }
 0x283   : > { %1367 = vrot.lane.b32.xlu0 %v1365_v40, %s2652_s21  ;;  %v1449_v1 = vrot.slane %v1447_v0, 4  ;;  %v1902_v31 = vrot.slane %v1900_v30, 4  ;;  %v1717_v32 = vld [vmem:[#allocation3 + $0x1] sm:$0xf]  ;;  %v1907_v33 = vld [vmem:[#allocation3 + $0x29] sm:$0xf] }
 0x284   : > { %v1576_v42 = vld [vmem:[#allocation5 + $0x18] sm:$0xff]  ;;  %1458 = vrot.lane.b32.xlu1 %v1457_v38, %s2656_s17  ;;  %v1574_v43 = vld [vmem:[#allocation5 + $0x8] sm:$0xff]  ;;  %v1909_v34 = vrot.slane %v1907_v33, 4  ;;  %v1724_v35 = vld [vmem:[#allocation3 + $0x2] sm:$0xf]  ;;  %vm1709_vm0 = vcmask 261124  }
 0x285   : > { %v1578_v44 = vpack.c.bf16 %v1576_v42, %v1574_v43  ;;  %1918 = vst.msk [vmem:[#allocation6 + $0x28] sm:$0xf0] %vm1709_vm0, %v1916_v37  ;;  %v2560_v38 = vld [vmem:[%s3524_s3 + $0x80] sm:$0xff]   ;;  %vm2657_vm1 = vmmov 0   ;;  %v2565_v0 = vld [vmem:[%s3524_s3 + $0x8] sm:$0xff]  }
 0x286   : > { %v1715_v40 = vld [vmem:[#allocation3] sm:$0xf]  ;;  %v2572_v33 = vld [vmem:[%s3524_s3 + $0x68] sm:$0xff]  }
 0x287   : > { %2409 = vmatprep.mubr.msk.bf16.mxu1 %vm1658_vm2, %v1578_v44  ;;  %1381 = vrot.lane.b32.xlu0 %v1379_v46, %s2654_s29  ;;  %vm1706_vm2 = vcmask 257024   ;;  %v2399_v42 = vld [vmem:[%s3526_s5] ss:$0 sm:$0xff] }
 0x288   : > { %1536 = vrot.lane.b32.xlu1 %v1535_v45, %s2652_s21  ;;  %1716 = vst.msk [vmem:[#allocation6] sm:$0xf] %vm1706_vm2, %v1715_v40  ;;  %v2562_v56 = vld [vmem:[%s3524_s3 + $0x40] sm:$0xff]  }
 0x289   : > { %2443 = vmatprep.subr.bf16.mxu0 %v2562_v56  ;;  %v2571_v30 = vld [vmem:[%s3524_s3 + $0x20] sm:$0xff]  }
 0x28a   : > { %2444 = vmatpush3.bf16.msra.mxu0 %v2563_v58 }
 0x28b   : > { %1388 = vrot.lane.b32.xlu0 %v1386_v51, %s2655_s13  ;;  %2445 = vmatprep.subr.bf16.mxu0 %v2564_v62 }
 0x28c   : > { %1550 = vrot.lane.b32.xlu1 %v1549_v49, %s2654_s29 }
 0x28e   : > { %2446 = vmatpush3.bf16.msra.mxu0 %v2565_v0 }
 0x28f   : > { %1478 = vrot.lane.b32.xlu0 %v1476_v55, %s2649_s8 }
 0x290   : > { %1557 = vrot.lane.b32.xlu1 %v1556_v53, %s2655_s13 }
 0x293   : > { %1395 = vrot.lane.b32.xlu0 %v1393_v59, %s2656_s17 }
 0x294   : > { %1426 = vrot.lane.b32.xlu1 %v1425_v57, %s2652_s21  ;;  %s2435_s21 = sshll.u32 %s2721_s28, 8 }
 0x295   : > { %s3473_s9 = scalar_lea.hbm %s3528_s7, %s2435_s21 }
 0x297   : > { %1508 = vrot.lane.b32.xlu0 %v1506_v63, %s2656_s17 }
 0x298   : > { %1442 = vrot.lane.b32.xlu1 %v1441_v61, %s2654_s29 }
 0x29b   : > { %1719 = vrot.lane.b32.xlu0 %v1717_v32, %s2649_s8 }
 0x29c   : > { %1450 = vrot.lane.b32.xlu1 %v1449_v1, %s2655_s13 }
 0x29f   : > { %1726 = vrot.lane.b32.xlu0 %v1724_v35, %s2651_s20 }
 0x2a0   : > { %1564 = vrot.lane.b32.xlu1 %v1563_v4, %s2656_s17 }
 0x2a4   : > { %1903 = vrot.lane.b32.xlu1 %v1902_v31, %s2651_s20 }
 0x2a8   : > { %1910 = vrot.lane.b32.xlu1 %v1909_v34, %s2655_s13 }
 0x2e7   : > { %v1485_v9 = vpop.permute.xlu0 %1484 }
 0x2eb   : > { %v1497_v11 = vpop.permute.xlu0 %1496 }
 0x2ee   : > { %v1530_v10 = vpop.permute.xlu1 %1529 }
 0x2ef   : > { %1532 = vst.msk [vmem:[#allocation5 + $0x10] sm:$0xf0] %vm1421_vm5, %v1530_v10 }
 0x2f1   : > { %v1503_v14 = vpop.permute.xlu0 %1502 }
 0x2f2   : > { %v1419_v12 = vpop.permute.xlu1 %1418 }
 0x2f3   : > { %1422 = vst.msk [vmem:[#allocation5] sm:$0xf0] %vm1421_vm5, %v1419_v12  ;;  %vm2079_vm5 = vcmask 261120  }
 0x2f5   : > { %v1368_v16 = vpop.permute.xlu0 %1367 }
 0x2f6   : > { %v1459_v15 = vpop.permute.xlu1 %1458  ;;  %1371 = vst.msk [vmem:[#allocation5] sm:$0xf] %vm1370_vm6, %v1368_v16  ;;  %v2566_v16 = vld [vmem:[%s3524_s3 + $0x50] sm:$0xff]  }
 0x2f7   : > { %1378 = vst.msk [vmem:[#allocation5] sm:$0xf] %vm1377_vm7, %v3228_v13  ;;  %2447 = vmatprep.subr.bf16.mxu0 %v2566_v16 }
 0x2f9   : > { %v1382_v18 = vpop.permute.xlu0 %1381 }
 0x2fa   : > { %v1537_v17 = vpop.permute.xlu1 %1536  ;;  %1385 = vst.msk [vmem:[#allocation5] sm:$0xf] %vm1384_vm9, %v1382_v18 }
 0x2fb   : > { %1539 = vst.msk [vmem:[#allocation5 + $0x10] sm:$0xf0] %vm1429_vm8, %v1537_v17  ;;  %v2567_v17 = vld [vmem:[%s3524_s3 + $0x10] sm:$0xff]  }
 0x2fc   : > { %1546 = vst.msk [vmem:[#allocation5 + $0x10] sm:$0xf0] %vm1437_vm10, %v1544_v5  ;;  %2448 = vmatpush3.bf16.msra.mxu0 %v2567_v17 }
 0x2fd   : > { %v1389_v20 = vpop.permute.xlu0 %1388 }
 0x2fe   : > { %v1551_v19 = vpop.permute.xlu1 %1550  ;;  %1392 = vst.msk [vmem:[#allocation5] sm:$0xf] %vm1391_vm12, %v1389_v20 }
 0x2ff   : > { %1553 = vst.msk [vmem:[#allocation5 + $0x10] sm:$0xf0] %vm1445_vm11, %v1551_v19 }
 0x301   : > { %v1479_v21 = vpop.permute.xlu0 %1478 }
 0x302   : > { %v1558_v13 = vpop.permute.xlu1 %1557  ;;  %1481 = vst.msk [vmem:[#allocation5 + $0x10] sm:$0xf] %vm1363_vm15, %v1479_v21  ;;  %vm1461_vm15 = vcmask 1048452   ;;  %v2568_v21 = vld [vmem:[%s3524_s3 + $0x58] sm:$0xff]  }
 0x303   : > { %1560 = vst.msk [vmem:[#allocation5 + $0x10] sm:$0xf0] %vm1453_vm13, %v1558_v13  ;;  %2449 = vmatprep.subr.bf16.mxu0 %v2568_v21 }
 0x304   : > { %1487 = vst.msk [vmem:[#allocation5 + $0x10] sm:$0xf] %vm1370_vm6, %v1485_v9  ;;  %vm1736_vm6 = vcmask 1044224  }
 0x305   : > { %1493 = vst.msk [vmem:[#allocation5 + $0x10] sm:$0xf] %vm1377_vm7, %v3218_v7  ;;  %v1396_v23 = vpop.permute.xlu0 %1395  ;;  %vm1771_vm7 = vcmask 523524  }
 0x306   : > { %1499 = vst.msk [vmem:[#allocation5 + $0x10] sm:$0xf] %vm1384_vm9, %v1497_v11  ;;  %v1427_v22 = vpop.permute.xlu1 %1426  ;;  %vm1787_vm9 = vcmask 1048324  }
 0x307   : > { %1505 = vst.msk [vmem:[#allocation5 + $0x10] sm:$0xf] %vm1391_vm12, %v1503_v14 }
 0x308   : > { %1430 = vst.msk [vmem:[#allocation5] sm:$0xf0] %vm1429_vm8, %v1427_v22  ;;  %vm1779_vm8 = vcmask 785924  }
 0x309   : > { %1399 = vst.msk [vmem:[#allocation5] sm:$0xf] %vm1398_vm14, %v1396_v23  ;;  %v1509_v25 = vpop.permute.xlu0 %1508 }
 0x30a   : > { %1438 = vst.msk [vmem:[#allocation5] sm:$0xf0] %vm1437_vm10, %v1435_v8  ;;  %v1443_v24 = vpop.permute.xlu1 %1442 }
 0x30b   : > { %1446 = vst.msk [vmem:[#allocation5] sm:$0xf0] %vm1445_vm11, %v1443_v24 }
 0x30c   : > { %1511 = vst.msk [vmem:[#allocation5 + $0x10] sm:$0xf] %vm1398_vm14, %v1509_v25  ;;  %v2569_v25 = vld [vmem:[%s3524_s3 + $0x18] sm:$0xff]  }
 0x30d   : > { %v1720_v41 = vpop.permute.xlu0 %1719  ;;  %2450 = vmatpush3.bf16.msra.mxu0 %v2569_v25 }
 0x30e   : > { %v1451_v26 = vpop.permute.xlu1 %1450  ;;  %1723 = vst.msk [vmem:[#allocation6] sm:$0xf] %vm1722_vm3, %v1720_v41 }
 0x30f   : > { %1454 = vst.msk [vmem:[#allocation5] sm:$0xf0] %vm1453_vm13, %v1451_v26 }
 0x310   : > { %1462 = vst.msk [vmem:[#allocation5] sm:$0xf0] %vm1461_vm15, %v1459_v15 }
 0x311   : > { %v1727_v43 = vpop.permute.xlu0 %1726 }
 0x312   : > { %v1565_v7 = vpop.permute.xlu1 %1564  ;;  %1730 = vst.msk [vmem:[#allocation6] sm:$0xf] %vm1729_vm4, %v1727_v43 }
 0x313   : > { %1567 = vst.msk [vmem:[#allocation5 + $0x10] sm:$0xf0] %vm1461_vm15, %v1565_v7 }
 0x317   : > { %v1573_v27 = vld [vmem:[#allocation5] sm:$0xff] }
 0x31a   : > { %v1575_v28 = vld [vmem:[#allocation5 + $0x10] sm:$0xff] }
 0x31b   : > { %v1577_v29 = vpack.c.bf16 %v1575_v28, %v1573_v27  ;;  %v2570_v27 = vld [vmem:[%s3524_s3 + $0x60] sm:$0xff]  }
 0x31c   : > { %2451 = vmatprep.subr.bf16.mxu0 %v2570_v27 }
 0x31d   : > { %1695 = vmatmul.mubr.bf16.vlgmr.msra.gmra.mrb[0].mxu1 %v1577_v29  ;;  %2452 = vmatpush3.bf16.msra.mxu0 %v2571_v30 }
 0x31e   : > { %2483 = vmatpush3.bf16.msra.mxu1 %v2560_v38  ;;  %2486 = vmatprep.mubr.msk.bf16.mxu1 %vm2657_vm1, %v2650_v6 }
 0x31f   : > { %2484 = vmatprep.subr.bf16.mxu1 %v2650_v6  ;;  %2453 = vmatprep.subr.bf16.mxu0 %v2572_v33 }
 0x321   : > { %2454 = vmatpush3.bf16.msra.mxu0 %v2573_v36 }
 0x322   : > { %2485 = vmatpush3.bf16.msra.mxu1 %v2561_v39  ;;  %v2574_v39 = vld [vmem:[%s3524_s3 + $0x70] sm:$0xff]  }
 0x323   : > { %2455 = vmatprep.subr.bf16.mxu0 %v2574_v39 }
 0x3f0   : > { %v1696_v44 = vpop.f32.mrb[0].mxu1 }
 0x3f1   : > { %v1697_v45 = vadd.f32 %v2399_v42, %v1696_v44  ;;  %v1698_v46 = vpop.f32.mrb[1].mxu1 }
 0x3f2   : > { %v1699_v6 = vpop.f32.mrb[2].mxu1 }
 0x3f3   : > { %v1703_v47 = vmax.f32 %v1697_v45, 0.0  ;;  %v1700_v48 = vadd.f32 %v2399_v42, %v1699_v6  ;;  %v1701_v49 = vpop.f32.mrb[3].mxu1  ;;  %v2575_v42 = vld [vmem:[%s3524_s3 + $0x30] sm:$0xff]   ;;  %v2576_v45 = vld [vmem:[%s3524_s3 + $0x78] sm:$0xff]  }
 0x3f4   : > { %2456 = vmatpush3.bf16.msra.mxu0 %v2575_v42 }
 0x3f5   : > { %1707 = vst.msk [vmem:[#allocation3 + $0x9] sm:$0xf] %vm1706_vm2, %v1703_v47  ;;  %v1704_v50 = vmax.f32 %v1700_v48, 0.0  ;;  %2457 = vmatprep.subr.bf16.mxu0 %v2576_v45 }
 0x3f6   : > { %1710 = vst.msk [vmem:[#allocation3 + $0xd] sm:$0xf0] %vm1709_vm0, %v1703_v47  ;;  %v2577_v47 = vld [vmem:[%s3524_s3 + $0x38] sm:$0xff]  }
 0x3f7   : > { %1712 = vst.msk [vmem:[#allocation3 + $0x19] sm:$0xf] %vm1706_vm2, %v1704_v50 }
 0x3f8   : > { %1714 = vst.msk [vmem:[#allocation3 + $0x1d] sm:$0xf0] %vm1709_vm0, %v1704_v50  ;;  %2458 = vmatpush3.bf16.msra.mxu0 %v2577_v47 }
 0x3fc   : > { %v1740_v53 = vld [vmem:[#allocation3 + $0xa] sm:$0xf] }
 0x3fd   : > { %v1758_v51 = vld [vmem:[#allocation3 + $0x12] sm:$0xf]  ;;  %1742 = vrot.lane.b32.xlu0 %v1740_v53, %s2649_s8  ;;  %v1731_v3 = vld [vmem:[#allocation3 + $0x8] sm:$0xf] }
 0x3fe   : > { %v1746_v52 = vld [vmem:[#allocation3 + $0x10] sm:$0xf]  ;;  %1759 = vst.msk [vmem:[#allocation6 + $0x10] sm:$0xf] %vm1706_vm2, %v1758_v51  ;;  %v1815_v54 = vld [vmem:[#allocation3 + $0x1a] sm:$0xf]  ;;  %v1904_v51 = vpop.permute.xlu1 %1903 }
 0x3ff   : > { %1748 = vrot.lane.b32.xlu1 %v1746_v52, %s2651_s20  ;;  %v1860_v55 = vld [vmem:[#allocation3 + $0x22] sm:$0xf]  ;;  %v1817_v57 = vrot.slane %v1815_v54, 4  ;;  %v1752_v59 = vld [vmem:[#allocation3 + $0x11] sm:$0xf] }
 0x400   : > { %1861 = vst.msk [vmem:[#allocation6 + $0x28] sm:$0xf] %vm1706_vm2, %v1860_v55  ;;  %v1822_v60 = vld [vmem:[#allocation3 + $0x11] sm:$0xf]  ;;  %v1848_v2 = vld [vmem:[#allocation3 + $0x20] sm:$0xf] }
 0x401   : > { %v1794_v61 = vld [vmem:[#allocation3 + $0x12] sm:$0xf]  ;;  %1819 = vst.msk [vmem:[#allocation6 + $0x10] sm:$0xf0] %vm1709_vm0, %v1817_v57  ;;  %1824 = vrot.lane.b32.xlu0 %v1822_v60, %s2649_s8  ;;  %v1738_v5 = vld [vmem:[#allocation3 + $0x9] sm:$0xf] }
 0x402   : > { %v1796_v63 = vrot.slane %v1794_v61, 4  ;;  %v1828_v1 = vld [vmem:[#allocation3 + $0x12] sm:$0xf]  ;;  %1739 = vst.msk [vmem:[#allocation6 + $0x8] sm:$0xf] %vm1706_vm2, %v1738_v5  ;;  %v1911_v52 = vpop.permute.xlu1 %1910 }
 0x403   : > { %1754 = vrot.lane.b32.xlu1 %v1752_v59, %s2655_s13  ;;  %v1820_v8 = vld [vmem:[#allocation3 + $0x10] sm:$0xf]  ;;  %v1840_v10 = vld [vmem:[#allocation3 + $0x19] sm:$0xf]  ;;  %v1760_v11 = vld [vmem:[#allocation3 + $0x8] sm:$0xf] }
 0x404   : > { %1821 = vst.msk [vmem:[#allocation6 + $0x18] sm:$0xf] %vm1706_vm2, %v1820_v8  ;;  %v1789_v9 = vld [vmem:[#allocation3 + $0x11] sm:$0xf]  ;;  %1841 = vst.msk [vmem:[#allocation6 + $0x20] sm:$0xf] %vm1706_vm2, %v1840_v10 }
 0x405   : > { %1830 = vrot.lane.b32.xlu0 %v1828_v1, %s2651_s20  ;;  %v1791_v14 = vrot.slane %v1789_v9, 4  ;;  %v1762_v15 = vrot.slane %v1760_v11, 4  ;;  %v1888_v19 = vld [vmem:[#allocation3 + $0x21] sm:$0xf]  ;;  %v1862_v20 = vld [vmem:[#allocation3 + $0x18] sm:$0xf] }
 0x406   : > { %v1890_v13 = vrot.slane %v1888_v19, 4  ;;  %v1864_v22 = vrot.slane %v1862_v20, 4  ;;  %v1854_v23 = vld [vmem:[#allocation3 + $0x21] sm:$0xf]  ;;  %v1842_v24 = vld [vmem:[#allocation3 + $0x1a] sm:$0xf] }
 0x407   : > { %1797 = vrot.lane.b32.xlu1 %v1796_v63, %s2649_s8  ;;  %v1924_v4 = vld [vmem:[#allocation6 + $0x28] sm:$0xff]  ;;  %1793 = vst.msk [vmem:[#allocation6 + $0x8] sm:$0xf0] %vm1709_vm0, %v1791_v14  ;;  %1764 = vst.msk [vmem:[#allocation6] sm:$0xf0] %vm1709_vm0, %v1762_v15 }
 0x408   : > { %v1921_v12 = vld [vmem:[#allocation6 + $0x10] sm:$0xff]  ;;  %v1781_v26 = vld [vmem:[#allocation3 + $0x10] sm:$0xf]  ;;  %v1765_v7 = vld [vmem:[#allocation3 + $0x9] sm:$0xf] }
 0x409   : > { %1733 = vrot.lane.b32.xlu0 %v1731_v3, %s2655_s13  ;;  %v1927_v18 = vpack.c.bf16 %v1924_v4, %v1921_v12  ;;  %1892 = vst.msk [vmem:[#allocation6 + $0x20] sm:$0xf0] %vm1709_vm0, %v1890_v13  ;;  %1866 = vst.msk [vmem:[#allocation6 + $0x18] sm:$0xf0] %vm1709_vm0, %v1864_v22  ;;  %v1783_v28 = vrot.slane %v1781_v26, 4  ;;  %v1767_v29 = vrot.slane %v1765_v7, 4 }
 0x40a   : > { %v1893_v31 = vld [vmem:[#allocation3 + $0x22] sm:$0xf]  ;;  %v1773_v32 = vld [vmem:[#allocation3 + $0xa] sm:$0xf]  ;;  %v1801_v37 = vld [vmem:[#allocation3 + $0x18] sm:$0xf] }
 0x40b   : > { %1850 = vrot.lane.b32.xlu1 %v1848_v2, %s2651_s20  ;;  %2487 = vmatmul.mubr.msk.bf16.vlgmr.msra.gmra.mrb[4].mxu1 %vm2079_vm5, %v1927_v18  ;;  %v1895_v34 = vrot.slane %v1893_v31, 4  ;;  %v1775_v35 = vrot.slane %v1773_v32, 4  ;;  %v1867_v38 = vld [vmem:[#allocation3 + $0x19] sm:$0xf]  ;;  %v1803_v40 = vrot.slane %v1801_v37, 4 }
 0x40c   : > { %v1869_v41 = vrot.slane %v1867_v38, 4  ;;  %v1808_v43 = vld [vmem:[#allocation3 + $0x19] sm:$0xf]  ;;  %v1881_v48 = vld [vmem:[#allocation3 + $0x20] sm:$0xf] }
 0x40d   : > { %1844 = vrot.lane.b32.xlu0 %v1842_v24, %s2649_s8  ;;  %v1874_v44 = vld [vmem:[#allocation3 + $0x1a] sm:$0xf]  ;;  %v1810_v46 = vrot.slane %v1808_v43, 4  ;;  %v1883_v49 = vrot.slane %v1881_v48, 4  ;;  %v2410_v22 = vld [vmem:[%s3527_s6] ss:$0 sm:$0xff] }
 0x40e   : > { %v1876_v6 = vrot.slane %v1874_v44, 4  ;;  %v1834_v50 = vld [vmem:[#allocation3 + $0x18] sm:$0xf] }
 0x40f   : > { %1856 = vrot.lane.b32.xlu1 %v1854_v23, %s2655_s13 }
 0x411   : > { %1768 = vrot.lane.b32.xlu0 %v1767_v29, %s2649_s8 }
 0x413   : > { %1784 = vrot.lane.b32.xlu1 %v1783_v28, %s2655_s13 }
 0x415   : > { %1776 = vrot.lane.b32.xlu0 %v1775_v35, %s2651_s20 }
 0x417   : > { %1896 = vrot.lane.b32.xlu1 %v1895_v34, %s2649_s8 }
 0x419   : > { %1870 = vrot.lane.b32.xlu0 %v1869_v41, %s2649_s8  ;;  %s269_s8 = sand.u32 1, %s2632_s25  }
 0x41a   : > { %s3479_s28 = scalar_lea.sflag [#allocation8], %s269_s8 }
 0x41b   : > { %1804 = vrot.lane.b32.xlu1 %v1803_v40, %s2651_s20 }
 0x41d   : > { %1877 = vrot.lane.b32.xlu0 %v1876_v6, %s2651_s20  ;;  %s2247_s20 = sshll.u32 %s269_s8, 4 }
 0x41e   : > { %s271_s29 = scalar_lea.vmem [#allocation7], %s2247_s20  ;;  %s2584_s20 = scalar_lea.vmem %s2583_s23, 512 }
 0x41f   : > { %1811 = vrot.lane.b32.xlu1 %v1810_v46, %s2655_s13  ;;  %s2181_s17 = sshll.u32 %s271_s29, 4  ;;  %s3476_s17 = int_to_ptr.vmem [resolvable:$true] %s2181_s17 }
 0x420   : > { %s2578_s18 = scalar_lea.vmem %s3476_s17, 256  ;;  %p2585_p0 = scmp.lt.s32.totalorder %s3476_s17, %s2583_s23 }
 0x421   : > { %1836 = vrot.lane.b32.xlu0 %v1834_v50, %s2655_s13  ;;  %p2579_p11 = scmp.ne.s32.totalorder %s3476_s17, %s2578_s18  ;;  %p2586_p1 = scmp.lt.s32.totalorder %s2584_s20, %s2578_s18 }
 0x423   : > { %1884 = vrot.lane.b32.xlu1 %v1883_v49, %s2655_s13  ;;  %p2580_p12 = pnand %p2579_p11, %p2738_p5  ;;  %p2587_p2 = por %p2586_p1, %p2585_p0 }
 0x425   : > { %p2581_p13 = pneg %p2580_p12 }
 0x427   : > { %p2588_p3 = pnand %p2587_p2, %p2581_p13 }
 0x46f   : > { %v1743_v54 = vpop.permute.xlu0 %1742 }
 0x470   : > { %1745 = vst.msk [vmem:[#allocation6 + $0x8] sm:$0xf] %vm1722_vm3, %v1743_v54 }
 0x471   : > { %v1749_v53 = vpop.permute.xlu1 %1748 }
 0x472   : > { %1751 = vst.msk [vmem:[#allocation6 + $0x8] sm:$0xf] %vm1729_vm4, %v1749_v53 }
 0x473   : > { %v1825_v56 = vpop.permute.xlu0 %1824 }
 0x474   : > { %1827 = vst.msk [vmem:[#allocation6 + $0x18] sm:$0xf] %vm1722_vm3, %v1825_v56 }
 0x475   : > { %v1755_v55 = vpop.permute.xlu1 %1754 }
 0x476   : > { %1757 = vst.msk [vmem:[#allocation6 + $0x8] sm:$0xf] %vm1736_vm6, %v1755_v55 }
 0x477   : > { %v1831_v58 = vpop.permute.xlu0 %1830 }
 0x478   : > { %1833 = vst.msk [vmem:[#allocation6 + $0x18] sm:$0xf] %vm1729_vm4, %v1831_v58 }
 0x479   : > { %v1798_v57 = vpop.permute.xlu1 %1797 }
 0x47a   : > { %1800 = vst.msk [vmem:[#allocation6 + $0x8] sm:$0xf0] %vm1771_vm7, %v1798_v57 }
 0x47b   : > { %v1734_v60 = vpop.permute.xlu0 %1733 }
 0x47c   : > { %1737 = vst.msk [vmem:[#allocation6] sm:$0xf] %vm1736_vm6, %v1734_v60 }
 0x47d   : > { %v1851_v59 = vpop.permute.xlu1 %1850 }
 0x47f   : > { %v1845_v62 = vpop.permute.xlu0 %1844 }
 0x480   : > { %1847 = vst.msk [vmem:[#allocation6 + $0x20] sm:$0xf] %vm1722_vm3, %v1845_v62 }
 0x481   : > { %v1857_v61 = vpop.permute.xlu1 %1856  ;;  %1853 = vst.msk [vmem:[#allocation6 + $0x20] sm:$0xf] %vm1729_vm4, %v1851_v59 }
 0x482   : > { %1859 = vst.msk [vmem:[#allocation6 + $0x20] sm:$0xf] %vm1736_vm6, %v1857_v61 }
 0x483   : > { %v1769_v0 = vpop.permute.xlu0 %1768 }
 0x484   : > { %1772 = vst.msk [vmem:[#allocation6] sm:$0xf0] %vm1771_vm7, %v1769_v0 }
 0x485   : > { %v1785_v63 = vpop.permute.xlu1 %1784 }
 0x487   : > { %v1777_v2 = vpop.permute.xlu0 %1776 }
 0x488   : > { %1780 = vst.msk [vmem:[#allocation6] sm:$0xf0] %vm1779_vm8, %v1777_v2 }
 0x489   : > { %v1897_v1 = vpop.permute.xlu1 %1896  ;;  %1788 = vst.msk [vmem:[#allocation6] sm:$0xf0] %vm1787_vm9, %v1785_v63 }
 0x48a   : > { %1899 = vst.msk [vmem:[#allocation6 + $0x20] sm:$0xf0] %vm1771_vm7, %v1897_v1 }
 0x48b   : > { %1906 = vst.msk [vmem:[#allocation6 + $0x20] sm:$0xf0] %vm1779_vm8, %v1904_v51  ;;  %v1871_v4 = vpop.permute.xlu0 %1870 }
 0x48c   : > { %1913 = vst.msk [vmem:[#allocation6 + $0x20] sm:$0xf0] %vm1787_vm9, %v1911_v52 }
 0x48d   : > { %v1805_v3 = vpop.permute.xlu1 %1804  ;;  %1873 = vst.msk [vmem:[#allocation6 + $0x18] sm:$0xf0] %vm1771_vm7, %v1871_v4 }
 0x48e   : > { %1807 = vst.msk [vmem:[#allocation6 + $0x8] sm:$0xf0] %vm1779_vm8, %v1805_v3 }
 0x48f   : > { %v1878_v8 = vpop.permute.xlu0 %1877 }
 0x490   : > { %1880 = vst.msk [vmem:[#allocation6 + $0x18] sm:$0xf0] %vm1779_vm8, %v1878_v8  ;;  %v1919_v15 = vld [vmem:[#allocation6] sm:$0xff] }
 0x491   : > { %v1812_v5 = vpop.permute.xlu1 %1811 }
 0x492   : > { %1814 = vst.msk [vmem:[#allocation6 + $0x8] sm:$0xf0] %vm1787_vm9, %v1812_v5 }
 0x493   : > { %v1837_v10 = vpop.permute.xlu0 %1836  ;;  %v1923_v12 = vld [vmem:[#allocation6 + $0x20] sm:$0xff] }
 0x494   : > { %1839 = vst.msk [vmem:[#allocation6 + $0x18] sm:$0xf] %vm1736_vm6, %v1837_v10 }
 0x495   : > { %v1885_v9 = vpop.permute.xlu1 %1884 }
 0x496   : > { %1887 = vst.msk [vmem:[#allocation6 + $0x18] sm:$0xf0] %vm1787_vm9, %v1885_v9 }
 0x499   : > { %v1920_v11 = vld [vmem:[#allocation6 + $0x8] sm:$0xff] }
 0x49a   : > { %v1926_v14 = vpack.c.bf16 %v1923_v12, %v1920_v11 }
 0x49c   : > { %2115 = vmatprep.mubr.bf16.mxu0 %v1926_v14 }
 0x49d   : > { %v1922_v16 = vld [vmem:[#allocation6 + $0x18] sm:$0xff] }
 0x49e   : > { %v1925_v17 = vpack.c.bf16 %v1922_v16, %v1919_v15 }
 0x4a0   : > { %2116 = vmatmul.mubr.bf16.vlgmr.msra.gmra.mrb[8].mxu0 %v1925_v17 }
 0x4de   : > { %v2158_v18 = vpop.f32.mrb[4].mxu1 }
 0x4df   : > { %v2488_v19 = vpop.f32.mrb[5].mxu1 }
 0x4e0   : > { %v2161_v20 = vpop.f32.mrb[6].mxu1 }
 0x4e1   : > { %v2489_v13 = vpop.f32.mrb[7].mxu1 }
 0x573   : > { %v2459_v21 = vpop.f32.mrb[8].mxu0 }
 0x574   : > { %v2460_v23 = vpop.f32.mrb[9].mxu0 }
 0x575   : > { %v2461_v24 = vadd.f32 %v2460_v23, %v2459_v21  ;;  %v2462_v25 = vpop.f32.mrb[10].mxu0 }
 0x576   : > { %v2463_v26 = vpop.f32.mrb[11].mxu0 }
 0x577   : > { %v2118_v7 = vadd.f32 %v2461_v24, %v2410_v22  ;;  %v2464_v27 = vadd.f32 %v2463_v26, %v2462_v25 }
 0x579   : > { %v2159_v28 = vadd.f32 %v2158_v18, %v2118_v7  ;;  %v2121_v29 = vadd.f32 %v2464_v27, %v2410_v22 }
 0x57b   : > { %2165 = vst.msk [vmem:[%s271_s29] sm:$0xff] %vm2079_vm5, %v2159_v28  ;;  %v2162_v30 = vadd.f32 %v2161_v20, %v2121_v29 }
 0x57d   : > { %2166 = vst.msk [vmem:[%s271_s29 + $0x8] sm:$0xff] %vm2079_vm5, %v2162_v30 }
 0x57e   : > { %2591 = shalt.err (!%p2588_p3)
}
 0x57f   : > { %s2592_s8 = scalar_lea.hbm %s3473_s9, 256  ;;  %s2596_s21 = scalar_lea.hbm %s3528_s7, 512 }
 0x580   : > { %p2593_p4 = scmp.ne.s32.totalorder %s3473_s9, %s2592_s8  ;;  %p2597_p9 = scmp.lt.u32.totalorder %s3473_s9, %s3528_s7 }
 0x581   : > { %p2598_p10 = scmp.lt.u32.totalorder %s2596_s21, %s2592_s8  ;;  %p2600_p12 = scmp.lt.u32.totalorder %s2592_s8, %s3473_s9 }
 0x582   : > { %p2594_p7 = pnand %p2593_p4, %p2738_p5 }
 0x583   : > { %p2599_p11 = por %p2598_p10, %p2597_p9 }
 0x584   : > { %p2595_p8 = pneg %p2594_p7 }
 0x585   : > { %p2601_p13 = por %p2600_p12, %p2599_p11 }
 0x587   : > { %p2602_p0 = pnand %p2601_p13, %p2595_p8 }
 0x589   : > { %2605 = shalt.err (!%p2602_p0)
}
 0x58a   : > { %s2659_s16 = smov 128  }
 0x58b   : > { %2492 = dma.vmem_to_hbm [thread:$0]  (%p2738_p5), %s3476_s17, 256, %s3473_s9, %s3479_s28, %s2659_s16, %s2659_s16, %s2643_s19  }
 0x58c PF: > { %p2498_p1 = scmp.ge.s32.totalorder %s2640_s27, 2  ;;  %s2196_s18 = sand.u32 1, %s2628_s24  }
 0x58d   : > { %s2197_s22 = scalar_lea.sflag [#allocation8], %s2196_s18 }
 0x58e   : > { %p2495_p2 = pnand %p2498_p1, %p2742_p6 }
 0x590   : > { %2623 = dma.done.wait (!%p2495_p2), %s2197_s22, 256  }
 0x591   : > { %2625 = vsyncadd (!%p2495_p2), %s2197_s22, 4294967040  ;;  %p17_p3 = scmp.ge.s32.totalorder %s2725_s30, 4   ;;  %s3531_s24 = smov %s2632_s25 }
 0x592   : > { %s3532_s25 = smov %s2636_s26  ;;  %s3533_s26 = smov %s2736_s10 }
 0x593   : > { %s3534_s27 = smov %s2725_s30  ;;  %19 = sbr.rel (!%p17_p3) target bundleno = 3 (0x3), region = 172 }
 0x59a   :  { %2202 = vsyncpa [#allocation8], 1 }
 0x59b   :  { %2204 = vsyncpa [#allocation8 + $0x1], 1 }

</bundles_post_ra>
